<compile_context>
chip_gen: v7x
topology: tpu7x:2x2x1
jax: 0.10.0
libtpu: 0.0.40
codegen_flags: <defaults>
</compile_context>

<pallas_src>
import functools
import math

import jax
import jax.numpy as jnp
from jax.experimental import pallas as pl
from jax.experimental.pallas import tpu as pltpu


def _patch_embed_kernel(x_ref, w_ref, b_ref, o_ref):
    # x_ref: (tp, Kp)  w_ref: (Kp, Np)  b_ref: (1, Np)  o_ref: (tp, Np) -- all lane-dense.
    acc = jnp.dot(
        x_ref[...],
        w_ref[...],
        preferred_element_type=jnp.float32,
        precision=jax.lax.Precision.HIGHEST,
    )
    o_ref[...] = (acc + b_ref[...]).astype(o_ref.dtype)


def _round_up(x, m):
    return ((x + m - 1) // m) * m


def _choose_group(C, E, *, max_kp=1024, max_np=2048):
    """Smallest `group` s.t. group*C and group*E are multiples of 128 (lane-dense on both
    load and store side).  Falls back to store-side-only density, then to 1."""
    gC = 128 // math.gcd(C, 128)
    gE = 128 // math.gcd(E, 128)
    g_both = gC * gE // math.gcd(gC, gE)      # lcm
    if g_both * C <= max_kp and g_both * E <= max_np:
        return g_both
    if gE * E <= max_np:
        return gE                             # at least the heavy (store) side is lane-dense
    # TODO(synk): for embed dims with large odd factors, pad E up inside the packed weight
    # instead of falling back to masked stores.
    return 1


def _tpu_generation():
    try:
        kind = jax.devices()[0].device_kind.lower()
    except Exception:
        return 6
    if "v7" in kind or "7x" in kind:
        return 7
    if "v6" in kind:
        return 6
    if "v5" in kind:
        return 5
    if "v4" in kind:
        return 4
    return 6


@functools.partial(
    jax.jit,
    static_argnames=("out_tile_bytes", "min_grid_steps", "vmem_limit_bytes", "even_steps"),
)
def _patch_embedding_impl(x_nchw, weight, bias, *, out_tile_bytes, min_grid_steps,
                          vmem_limit_bytes, even_steps):
    B, C, H, W = x_nchw.shape
    weight = weight.reshape(weight.shape[0], -1)      # accept (E, C) or (E, C, 1, 1)
    E = weight.shape[0]
    M = B * H * W
    itemsize = jnp.dtype(x_nchw.dtype).itemsize

    # ---- lane packing: `group` spatial rows per matmul row --------------------------------
    group = _choose_group(C, E)
    Kp = group * C
    Np = group * E
    P = pl.cdiv(M, group)                             # total packed rows

    # ---- tile selection from an output-tile byte budget -----------------------------------
    tp = max(8, (out_tile_bytes // (Np * itemsize)) // 8 * 8)
    tp = min(tp, _round_up(P, 8))
    if pl.cdiv(P, tp) < min_grid_steps:               # keep pipeline (and both v7x TCs) fed
        tp = min(tp, max(8, _round_up(pl.cdiv(P, min_grid_steps), 8)))

    # VMEM fit: double-buffered in/out tiles + packed weight + bias, with headroom.
    def _footprint(t):
        return (2 * t * Kp + 2 * t * Np + Kp * Np + Np) * itemsize

    while tp > 8 and _footprint(tp) > (vmem_limit_bytes * 3) // 4:
        tp = max(8, (tp // 2) // 8 * 8)

    n_steps = pl.cdiv(P, tp)
    if even_steps and n_steps > 1 and n_steps % 2 == 1:
        n_steps += 1                                  # balanced split across the two v7x TCs
    P_pad = n_steps * tp

    # ---- XLA glue (candidate for input fusion into the pallas_call operand) ---------------
    x_rows = jnp.transpose(x_nchw, (0, 2, 3, 1)).reshape(M, C)
    x_rows = jnp.pad(x_rows, ((0, P_pad * group - M), (0, 0)))
    x_pack = x_rows.reshape(P_pad, Kp)

    # Block-diagonal packed weight:
    #   (x_pack @ w_pack)[p, q*E + e] == sum_c x_rows[group*p + q, c] * weight[e, c]
    w_pack = jnp.kron(jnp.eye(group, dtype=weight.dtype), weight.T).astype(x_pack.dtype)
    b_pack = jnp.tile(bias.astype(jnp.float32), group).reshape(1, Np)

    out_pack = pl.pallas_call(
        _patch_embed_kernel,
        out_shape=jax.ShapeDtypeStruct((P_pad, Np), x_nchw.dtype),
        grid_spec=pltpu.PrefetchScalarGridSpec(
            num_scalar_prefetch=0,
            grid=(n_steps,),
            in_specs=[
                pl.BlockSpec((tp, Kp), lambda i: (i, 0)),
                pl.BlockSpec((Kp, Np), lambda i: (0, 0)),
                pl.BlockSpec((1, Np), lambda i: (0, 0)),
            ],
            out_specs=pl.BlockSpec((tp, Np), lambda i: (i, 0)),
        ),
        compiler_params=pltpu.CompilerParams(
            # TODO(synk): on v7x, confirm in a profile that this axis really shards across
            # both TensorCores; if not, switch to pltpu.CORE_PARALLEL / a core_map split.
            dimension_semantics=("parallel",),
            vmem_limit_bytes=vmem_limit_bytes,
            # Let XLA fuse the NCHW->(M, C) transpose/pad/reshape into the x operand so the
            # repacked activations never take an extra HBM round trip.
            allow_input_fusion=[True, False, False],
        ),
    )(x_pack, w_pack, b_pack)

    # Packed (P_pad, group*E) row-major == (P_pad*group, E) row-major: this reshape is free.
    # Keep the [:M] slice -- padded rows carry bias (acc = 0 + bias) and must be dropped.
    return out_pack.reshape(P_pad * group, E)[:M].reshape(B, H * W, E)


def patch_embedding(x_nchw, weight, bias, *, out_tile_bytes=4 << 20):
    """x_nchw: (B, C, H, W); weight: (E, C) or (E, C, 1, 1) (torch Conv2d 1x1 weight);
    bias: (E,).  Returns (B, H*W, E), matching PatchEmbedding.forward."""
    gen = _tpu_generation()
    if gen >= 7:
        # 2 TensorCores, 64 MiB physical VMEM per core.
        min_grid_steps, vmem_limit, even_steps = 8, 48 * 1024 * 1024, True
    else:
        # Single TensorCore, 128 MiB physical VMEM.
        min_grid_steps, vmem_limit, even_steps = 3, 96 * 1024 * 1024, False
    return _patch_embedding_impl(
        x_nchw, weight, bias,
        out_tile_bytes=out_tile_bytes,
        min_grid_steps=min_grid_steps,
        vmem_limit_bytes=vmem_limit,
        even_steps=even_steps,
    )


if __name__ == "__main__":
    # Small shapes consistent with the module.
    B, C, H, W = 2, 4, 16, 16
    E = 32

    key = jax.random.PRNGKey(0)
    kx, kw, kb = jax.random.split(key, 3)

    x = jax.random.normal(kx, (B, C, H, W), dtype=jnp.float32)
    # Conv2d weight (E, C, 1, 1) squeezed to (E, C); bias (E,).
    weight = jax.random.normal(kw, (E, C), dtype=jnp.float32) * 0.1
    bias = jax.random.normal(kb, (E,), dtype=jnp.float32) * 0.1

    out = patch_embedding(x, weight, bias)
    jax.block_until_ready(out)

    # Reference (same math as torch 1x1 conv + flatten(2) + transpose(1, 2)), exact f32.
    ref = jnp.einsum(
        "bchw,ec->bhwe", x, weight, precision=jax.lax.Precision.HIGHEST
    ).reshape(B, H * W, E) + bias
    assert out.shape == (B, H * W, E)
    assert jnp.allclose(out, ref, atol=1e-5, rtol=1e-5)

    print("KERNEL_OK")
</pallas_src>

<mosaic_0001>
module attributes {stable_mosaic.version = 11 : i64} {
  func.func @_patch_embed_kernel(%arg0: i32, %arg1: memref<8x128xf32, #tpu.memory_space<vmem>>, %arg2: memref<128x1024xf32, #tpu.memory_space<vmem>>, %arg3: memref<1x1024xf32, #tpu.memory_space<vmem>>, %arg4: memref<8x1024xf32, #tpu.memory_space<vmem>>) attributes {dimension_semantics = [#tpu.dimension_semantics<parallel>], iteration_bounds = array<i64: 2>, scalar_prefetch = 0 : i64, scratch_operands = 0 : i64, tpu.core_type = #tpu.core_type<tc>, window_params = [{transform_indices = @transform_0, window_bounds = array<i64: 8, 128>}, {pipeline_mode = #tpu.pipeline_mode<synchronous>, transform_indices = @transform_1, window_bounds = array<i64: 128, 1024>}, {pipeline_mode = #tpu.pipeline_mode<synchronous>, transform_indices = @transform_2, window_bounds = array<i64: 1, 1024>}, {transform_indices = @transform_3, window_bounds = array<i64: 8, 1024>}]} {
    %c0 = arith.constant 0 : index
    %c0_0 = arith.constant 0 : index
    %0 = vector.load %arg1[%c0, %c0_0] : memref<8x128xf32, #tpu.memory_space<vmem>>, vector<8x128xf32>
    %c0_1 = arith.constant 0 : index
    %c0_2 = arith.constant 0 : index
    %1 = vector.load %arg2[%c0_1, %c0_2] : memref<128x1024xf32, #tpu.memory_space<vmem>>, vector<128x1024xf32>
    %cst = arith.constant dense<0.000000e+00> : vector<8x1024xf32>
    %2 = tpu.matmul %0, %1, %cst {dimension_numbers = #tpu.dot_dimension_numbers<[1], [0], [0], [1], [0, 0, 1, 1], [], []>, precision = #tpu.contract_precision<fp32>} : vector<8x128xf32>, vector<128x1024xf32>, vector<8x1024xf32> -> vector<8x1024xf32>
    %c0_3 = arith.constant 0 : index
    %c0_4 = arith.constant 0 : index
    %3 = vector.load %arg3[%c0_3, %c0_4] : memref<1x1024xf32, #tpu.memory_space<vmem>>, vector<1x1024xf32>
    %4 = vector.broadcast %3 : vector<1x1024xf32> to vector<8x1024xf32>
    %5 = arith.addf %2, %4 : vector<8x1024xf32>
    %c0_5 = arith.constant 0 : index
    %c0_6 = arith.constant 0 : index
    %6 = vector.load %arg4[%c0_5, %c0_6] : memref<8x1024xf32, #tpu.memory_space<vmem>>, vector<8x1024xf32>
    tpu.vector_store %arg4[%c0_5, %c0_6], %5 {strides = array<i32>} : memref<8x1024xf32, #tpu.memory_space<vmem>>, vector<8x1024xf32>,
    return
  }
  func.func @transform_0(%arg0: i32) -> (i32, i32) {
    %c0_i32 = arith.constant 0 : i32
    %c0_i32_0 = arith.constant 0 : i32
    return %arg0, %c0_i32 : i32, i32
  }
  func.func @transform_1(%arg0: i32) -> (i32, i32) {
    %c0_i32 = arith.constant 0 : i32
    %c0_i32_0 = arith.constant 0 : i32
    %c0_i32_1 = arith.constant 0 : i32
    return %c0_i32, %c0_i32_0 : i32, i32
  }
  func.func @transform_2(%arg0: i32) -> (i32, i32) {
    %c0_i32 = arith.constant 0 : i32
    %c0_i32_0 = arith.constant 0 : i32
    %c0_i32_1 = arith.constant 0 : i32
    return %c0_i32, %c0_i32_0 : i32, i32
  }
  func.func @transform_3(%arg0: i32) -> (i32, i32) {
    %c0_i32 = arith.constant 0 : i32
    %c0_i32_0 = arith.constant 0 : i32
    return %arg0, %c0_i32 : i32, i32
  }
}

</mosaic_0001>

<bundles_post_ra>
// kernel: tile.8
= control target key start
LH: loop header
LB: loop body
LE: loop exit
PB: predicated region body
PF: predicated region fallthrough
CT: control target
= control target key end

     0   :  { %s40_s0 = inlined_call_operand.vmem [shape: f32[32], index: 0, kind: input, shape index: {}]   ;;  %s41_s1 = inlined_call_operand.vmem [shape: f32[32,32], index: 1, kind: output, shape index: {}]  }
   0x1   :  { %v4_v0 = vld [vmem:[%s40_s0] ss:$0 sm:$0xff] }
   0x2   :  { %5 = vst [vmem:[%s41_s1] sm:$0xff] %v4_v0  ;;  %12 = vst [vmem:[%s41_s1 + $0x8] sm:$0xff] %v4_v0 }
   0x3   :  { %13 = vst [vmem:[%s41_s1 + $0x10] sm:$0xff] %v4_v0  ;;  %14 = vst [vmem:[%s41_s1 + $0x18] sm:$0xff] %v4_v0 }

// kernel: tile.9
= control target key start
LH: loop header
LB: loop body
LE: loop exit
PB: predicated region body
PF: predicated region fallthrough
CT: control target
= control target key end

     0   :  { %s122_s8 = smov 96   ;;  %vm4_vm0 = vcmask 261120   ;;  %s160_s0 = inlined_call_operand.vmem [shape: f32[32,32], index: 0, kind: input, shape index: {}]   ;;  %s161_s1 = inlined_call_operand.hbm [shape: f32[1,1024], index: 1, kind: output, shape index: {}]  }
   0x1   :  { %v91_v0 = vld [vmem:[%s160_s0 + $0x3] ss:$4 sm:$0xff]   ;;  %v93_v1 = vld [vmem:[%s160_s0 + $0x1] ss:$4 sm:$0xff]   ;;  %v3_v2 = vld [vmem:[%s160_s0] ss:$4 sm:$0xff]  }
   0x2   :  { %9 = vrot.lane.b32.xlu0 %v91_v0, %s122_s8  ;;  %v92_v3 = vld [vmem:[%s160_s0 + $0x2] ss:$4 sm:$0xff]   ;;  %s123_s0 = smov 32  }
   0x3   :  { %23 = vrot.lane.b32.xlu1 %v93_v1, %s123_s0 }
   0x4   :  { %2 = vsyncpa [#allocation1], 0  ;;  %5 = vst.msk [vmem:[#allocation2] ss:$8 sm:$0xf] %vm4_vm0, %v3_v2   ;;  %s124_s15 = smov 64  }
   0x5   :  { %6 = vst.msk [vmem:[#allocation2] ss:$8 sm:$0xf0] %vm4_vm0, %v3_v2   ;;  %vm11_vm1 = vcmask 1048320   ;;  %vm18_vm2 = vcmask 785920   ;;  %vm25_vm3 = vcmask 523520  }
   0x6   :  { %16 = vrot.lane.b32.xlu0 %v92_v3, %s124_s15  ;;  %s125_s16 = smov [#allocation0]  }
   0x7   :  { %s79_s17 = sshll.u32 %s125_s16, 4  ;;  %s80_s17 = int_to_ptr.vmem [resolvable:$true] %s79_s17 }
   0x8   :  { %s98_s18 = scalar_lea.vmem %s80_s17, 128  ;;  %p103_p1 = scmp.lt.s32.totalorder %s80_s17, %s80_s17 }
   0x9   :  { %p99_p0 = scmp.ne.s32.totalorder %s80_s17, %s98_s18  ;;  %p104_p2 = scmp.lt.s32.totalorder %s98_s18, %s98_s18 }
   0xb   :  { %p105_p3 = por %p104_p2, %p103_p1 }
   0xd   :  { %p106_p4 = pnand %p105_p3, %p99_p0 }
  0x74   :  { %v10_v4 = vpop.permute.xlu0 %9  }
  0x75   :  { %12 = vst.msk [vmem:[#allocation2] ss:$8 sm:$0xf] %vm11_vm1, %v10_v4   ;;  %13 = vst.msk [vmem:[#allocation2] ss:$8 sm:$0xf0] %vm11_vm1, %v10_v4   ;;  %v24_v5 = vpop.permute.xlu1 %23  }
  0x78   :  { %v17_v6 = vpop.permute.xlu0 %16  }
  0x79   :  { %19 = vst.msk [vmem:[#allocation2] ss:$8 sm:$0xf] %vm18_vm2, %v17_v6   ;;  %20 = vst.msk [vmem:[#allocation2] ss:$8 sm:$0xf0] %vm18_vm2, %v17_v6  }
  0x7a   :  { %26 = vst.msk [vmem:[#allocation2] ss:$8 sm:$0xf] %vm25_vm3, %v24_v5   ;;  %27 = vst.msk [vmem:[#allocation2] ss:$8 sm:$0xf0] %vm25_vm3, %v24_v5  }
  0x81   :  { %v31_v7 = vld [vmem:[#allocation2] sm:$0x1]  ;;  %v35_v8 = vld [vmem:[#allocation2 + $0x8] sm:$0x1]  ;;  %v40_v9 = vld [vmem:[#allocation2 + $0x10] sm:$0x1] }
  0x82   :  { %33 = vst [vmem:[#allocation0] sm:$0x1] %v31_v7  ;;  %38 = vst [vmem:[#allocation0 + $0x1] sm:$0x1] %v35_v8  ;;  %v46_v10 = vld [vmem:[#allocation2 + $0x18] sm:$0x1] }
  0x83   :  { %44 = vst [vmem:[#allocation0 + $0x2] sm:$0x1] %v40_v9  ;;  %v52_v11 = vld [vmem:[#allocation2 + $0x20] sm:$0x1]  ;;  %v58_v12 = vld [vmem:[#allocation2 + $0x28] sm:$0x1] }
  0x84   :  { %50 = vst [vmem:[#allocation0 + $0x3] sm:$0x1] %v46_v10  ;;  %56 = vst [vmem:[#allocation0 + $0x4] sm:$0x1] %v52_v11  ;;  %v64_v13 = vld [vmem:[#allocation2 + $0x30] sm:$0x1] }
  0x85   :  { %62 = vst [vmem:[#allocation0 + $0x5] sm:$0x1] %v58_v12  ;;  %v70_v14 = vld [vmem:[#allocation2 + $0x38] sm:$0x1]  ;;  %68 = vst [vmem:[#allocation0 + $0x6] sm:$0x1] %v64_v13 }
  0x86   :  { %74 = vst [vmem:[#allocation0 + $0x7] sm:$0x1] %v70_v14 }
  0x87   :  { %109 = shalt.err (!%p106_p4)
}
  0x88   :  { %s110_s21 = scalar_lea.hbm %s161_s1, 128 }
  0x89   :  { %p111_p5 = scmp.ne.s32.totalorder %s161_s1, %s110_s21  ;;  %p114_p6 = scmp.lt.u32.totalorder %s110_s21, %s161_s1 }
  0x8b   :  { %p116_p7 = pnand %p114_p6, %p111_p5 }
  0x8d   :  { %119 = shalt.err (!%p116_p7)
}
  0x8e   :  { %82 = dma.vmem_to_hbm [thread:$0]  %s80_s17, 128, %s161_s1, [#allocation1]  }
  0x8f   :  { %120 = dma.done.wait [#allocation1], 128  }
  0x90   :  { %121 = vsyncadd [#allocation1], 4294967168 }
  0x91   :  { %84 = vsyncpa [#allocation1], 1 }

// kernel: _patch_embedding_impl.1
= control target key start
LH: loop header
LB: loop body
LE: loop exit
PB: predicated region body
PF: predicated region fallthrough
CT: control target
= control target key end

     0   :  { %8 = vsyncpa [#allocation3], 0  ;;  %s7014_s0 = inlined_call_operand.hbm [shape: f32[16,128], index: 0, kind: input, shape index: {}]   ;;  %s7015_s1 = inlined_call_operand.hbm [shape: f32[128,1024], index: 1, kind: input, shape index: {}]   ;;  %s7016_s2 = inlined_call_operand.hbm [shape: f32[1,1024], index: 2, kind: input, shape index: {}]   ;;  %s7017_s3 = inlined_call_operand.hbm [shape: f32[16,1024], index: 3, kind: output, shape index: {}]  }
   0x1   :  { %10 = vsyncpa [#allocation3 + $0x1], 0 }
   0x2   :  { %11 = vsyncpa [#allocation6], 0 }
   0x3   :  { %12 = vsyncpa [#allocation4], 0 }
   0x4   :  { %14 = vsyncpa [#allocation4 + $0x1], 0  ;;  %s5005_s12 = smov 0   ;;  %s5007_s13 = smov 0  }
   0x5   :  { %s5009_s14 = smov 0   ;;  %s5011_s15 = smov 0  }
   0x6 LB: > { %s5026_s16 = sadd.s32 4294967295, %s4976_s15   ;;  %s3916_s17 = sadd.s32 4294967294, %s4976_s15   ;;  %s4976_s15 = sphi %s5011_s15, %s8016_s15   ;;  %s4972_s14 = sphi %s5009_s14, %s8015_s14   ;;  %s4968_s13 = sphi %s5007_s13, %s8014_s13   ;;  %s4964_s12 = sphi %s5005_s12, %s8013_s12  }
   0x7   : > { %p40_p0 = scmp.ne.s32.totalorder %s4968_s13, %s4964_s12  ;;  %p7018_p1 = scmp.eq.s32.totalorder %s5026_s16, 0 }
   0x8   : > { %p112_p3 = scmp.eq.s32.totalorder %s3916_s17, 1  ;;  %p3917_p5 = scmp.ge.s32.totalorder %s4976_s15, 1 }
   0x9   : > { %p5035_p4 = por %p7018_p1, %p40_p0  ;;  %p119_p7 = scmp.lt.s32.totalorder %s4976_s15, 3 }
   0xa   : > { %p5040_p6 = por %p112_p3, %p40_p0  ;;  %s4978_s21 = smov [#allocation5]  }
   0xb   : > { %s7356_s18 = scalar_select %p5035_p4, 1, 0 }
   0xc   : > { %s7357_s19 = scalar_select %p5040_p6, 1, 0 }
   0xd   : > { %p5045_p8 = pnand %p3917_p5, %p119_p7  ;;  %s131_s22 = sshll.u32 %s4978_s21, 4  ;;  %s5049_s22 = int_to_ptr.vmem [resolvable:$true] %s131_s22 }
   0xe   : > { %s4979_s24 = smov [#allocation7]   ;;  %s4820_s28 = scalar_lea.hbm %s7015_s1, 16384 }
   0xf   : > { %p4762_p9 = pneg %p5045_p8  ;;  %s145_s25 = sshll.u32 %s4979_s24, 4  ;;  %s5060_s25 = int_to_ptr.vmem [resolvable:$true] %s145_s25 }
  0x10   : > { %p4821_p12 = scmp.ne.s32.totalorder %s7015_s1, %s4820_s28  ;;  %p4827_p5 = scmp.lt.u32.totalorder %s4820_s28, %s7015_s1 }
  0x11   : > { %p5056_p11 = pnand %p4762_p9, %p7018_p1 }
  0x13   : > { %p4822_p13 = pneg %p5056_p11 }
  0x15   : > { %p4823_p0 = pnand %p4822_p13, %p4821_p12 }
  0x17   : > { %p4824_p3 = pneg %p4823_p0 }
  0x19   : > { %p4829_p7 = pnand %p4827_p5, %p4824_p3 }
  0x1b   : > { %4832 = shalt.err (!%p4829_p7)
}
  0x1c   : > { %s4833_s6 = scalar_lea.vmem %s5049_s22, 16384  ;;  %p4841_p2 = scmp.lt.s32.totalorder %s5049_s22, %s5049_s22 }
  0x1d   : > { %p4834_p9 = scmp.ne.s32.totalorder %s5049_s22, %s4833_s6  ;;  %p4842_p12 = scmp.lt.s32.totalorder %s4833_s6, %s4833_s6 }
  0x1f   : > { %p4836_p10 = pnand %p4834_p9, %p4822_p13  ;;  %p4843_p0 = por %p4842_p12, %p4841_p2 }
  0x21   : > { %p4837_p1 = pneg %p4836_p10 }
  0x23   : > { %p4844_p6 = pnand %p4843_p0, %p4837_p1 }
  0x25   : > { %4847 = shalt.err (!%p4844_p6)
}
  0x26   : > { %s4980_s7 = smov 1024   ;;  %s4981_s8 = smov 64  }
  0x27   : > { %4765 = dma.hbm_to_vmem [thread:$0]  (!%p5056_p11), %s7015_s1, 16384, %s5049_s22, [#allocation6], %s4980_s7, %s4980_s7, %s4981_s8  }
  0x28   : > { %s4848_s21 = scalar_lea.hbm %s7016_s2, 128 }
  0x29   : > { %p4849_p2 = scmp.ne.s32.totalorder %s7016_s2, %s4848_s21  ;;  %p4855_p10 = scmp.lt.u32.totalorder %s4848_s21, %s7016_s2 }
  0x2b   : > { %p4851_p1 = pnand %p4849_p2, %p4822_p13 }
  0x2d   : > { %p4852_p6 = pneg %p4851_p1 }
  0x2f   : > { %p4857_p3 = pnand %p4855_p10, %p4852_p6 }
  0x31   : > { %4860 = shalt.err (!%p4857_p3)
}
  0x32   : > { %s4861_s22 = scalar_lea.vmem %s5060_s25, 128  ;;  %p4869_p12 = scmp.lt.s32.totalorder %s5060_s25, %s5060_s25 }
  0x33   : > { %p4862_p5 = scmp.ne.s32.totalorder %s5060_s25, %s4861_s22  ;;  %p4870_p0 = scmp.lt.s32.totalorder %s4861_s22, %s4861_s22 }
  0x35   : > { %p4864_p7 = pnand %p4862_p5, %p4822_p13  ;;  %p4871_p2 = por %p4870_p0, %p4869_p12 }
  0x37   : > { %p4865_p9 = pneg %p4864_p7 }
  0x39   : > { %p4872_p1 = pnand %p4871_p2, %p4865_p9 }
  0x3b   : > { %4875 = shalt.err (!%p4872_p1)
}
  0x3c   : > { %4768 = dma.hbm_to_vmem [thread:$0]  (!%p5056_p11), %s7016_s2, 128, %s5060_s25, [#allocation6]  }
  0x3d   : > { %s5115_s4 = sadd.s32 1, %s4976_s15   ;;  %s27_s23 = sadd.s32 1, %s4972_s14 }
  0x3e   : > { %s24_s5 = ssub.s32 %s4976_s15, %s5115_s4  ;;  %p34_p13 = scmp.ne.s32.totalorder %s4972_s14, %s4968_s13 }
  0x3f   : > { %p25_p6 = scmp.eq.s32.totalorder %s24_s5, 0  ;;  %p35_p10 = scmp.eq.s32.totalorder %s4976_s15, 0 }
  0x40   : > { %p7360_p3 = scmp.eq.s32.totalorder %s5026_s16, 1  ;;  %p4779_p7 = scmp.lt.s32.totalorder %s4976_s15, 2 }
  0x41   : > { %s5131_s7 = scalar_select %p25_p6, %s4972_s14, %s27_s23  }
  0x42   : > { %p5125_p5 = por %p7360_p3, %p34_p13  ;;  %p36_p9 = por %p35_p10, %p34_p13 }
  0x43   : > { %s156_s8 = sand.u32 1, %s4972_s14   ;;  %s3922_s25 = sshll.u32 %s4976_s15, 7 }
  0x44   : > { %s7361_s6 = scalar_select %p5125_p5, 1, 0 }
  0x45   : > { %s3921_s9 = sshll.u32 %s156_s8, 3  ;;  %s5138_s17 = scalar_lea.hbm %s7014_s0, %s3922_s25 }
  0x46   : > { %s160_s21 = scalar_lea.vmem [#allocation2], %s3921_s9  ;;  %p5142_p11 = pnand %p4779_p7, %p36_p9 }
  0x47   : > { %s167_s24 = sshll.u32 %s160_s21, 4  ;;  %s157_s27 = scalar_lea.sflag [#allocation3], %s156_s8  ;;  %s5140_s24 = int_to_ptr.vmem [resolvable:$true] %s167_s24 }
  0x48   : > { %s4876_s28 = scalar_lea.hbm %s5138_s17, 128  ;;  %p4878_p0 = pneg %p5142_p11 }
  0x49   : > { %p4877_p12 = scmp.ne.s32.totalorder %s5138_s17, %s4876_s28  ;;  %s4881_s30 = scalar_lea.hbm %s7014_s0, 256 }
  0x4a   : > { %p4882_p13 = scmp.lt.u32.totalorder %s5138_s17, %s7014_s0  ;;  %p4883_p6 = scmp.lt.u32.totalorder %s4881_s30, %s4876_s28 }
  0x4b   : > { %p4879_p2 = pnand %p4878_p0, %p4877_p12  ;;  %p4885_p3 = scmp.lt.u32.totalorder %s4876_s28, %s5138_s17 }
  0x4c   : > { %p4884_p10 = por %p4883_p6, %p4882_p13 }
  0x4d   : > { %p4880_p1 = pneg %p4879_p2 }
  0x4e   : > { %p4886_p7 = por %p4885_p3, %p4884_p10 }
  0x50   : > { %p4887_p9 = pnand %p4886_p7, %p4880_p1 }
  0x52   : > { %4890 = shalt.err (!%p4887_p9)
}
  0x53   : > { %s4891_s8 = scalar_lea.vmem %s5140_s24, 128  ;;  %s4982_s9 = smov [#allocation2]  }
  0x54   : > { %p4892_p12 = scmp.ne.s32.totalorder %s5140_s24, %s4891_s8  ;;  %s4896_s25 = sshll.u32 %s4982_s9, 4  ;;  %s4897_s25 = int_to_ptr.vmem [resolvable:$false] %s4896_s25 }
  0x55   : > { %s4898_s10 = scalar_lea.vmem %s4897_s25, 256  ;;  %p4899_p4 = scmp.lt.s32.totalorder %s5140_s24, %s4897_s25 }
  0x56   : > { %p4894_p2 = pnand %p4892_p12, %p4878_p0  ;;  %p4900_p13 = scmp.lt.s32.totalorder %s4898_s10, %s4891_s8 }
  0x58   : > { %p4895_p5 = pneg %p4894_p2  ;;  %p4901_p6 = por %p4900_p13, %p4899_p4 }
  0x5a   : > { %p4902_p10 = pnand %p4901_p6, %p4895_p5 }
  0x5c   : > { %4905 = shalt.err (!%p4902_p10)
}
  0x5d   : > { %4772 = dma.hbm_to_vmem [thread:$0]  (!%p5142_p11), %s5138_s17, 128, %s5140_s24, %s157_s27  }
  0x5e   : > { %176 = sbr.rel (%p5045_p8) target bundleno = 784 (0x310), region = 32 }
  0x65   : > { %s5174_s11 = sand.u32 1, %s4968_s13   ;;  %p7363_p4 = scmp.ne.s32.totalorder %s7356_s18, 0 }
  0x66   : > { %s3924_s21 = sshll.u32 %s5174_s11, 3  ;;  %s179_s28 = scalar_lea.sflag [#allocation3], %s5174_s11 }
  0x67   : > { %s5178_s22 = scalar_lea.vmem [#allocation2], %s3924_s21 }
  0x68   : > { %4951 = dma.done.wait (%p7363_p4), %s179_s28, 128  }
  0x69   : > { %4953 = vsyncadd (%p7363_p4), %s179_s28, 4294967168  ;;  %p7364_p5 = scmp.eq.s32.totalorder %s5026_s16, 0 }
  0x6b   : > { %4955 = dma.done.wait (%p7364_p5), [#allocation6], 16512   ;;  %p7365_p8 = pmov %p7364_p5 }
  0x6c   : > { %v7021_v0 = vmov 0.0   ;;  %v215_v1 = vld [vmem:[#allocation5 + $0x8] sm:$0xff]  ;;  %v217_v3 = vld [vmem:[#allocation5 + $0x18] sm:$0xff]  ;;  %v214_v8 = vld [vmem:[#allocation5] sm:$0xff]  ;;  %s3927_s18 = sshll.u32 %s5174_s11, 6  ;;  %s3933_s17 = sshll.u32 %s5026_s16, 10 }
  0x6d   : > { %4957 = vsyncadd (%p7365_p8), [#allocation6], 4294950784  ;;  %480 = vmatprep.mubr.f32.mxu0 %v7021_v0  ;;  %1335 = vmatprep.mubr.f32.mxu1 %v7021_v0  ;;  %v223_v2 = vld [vmem:[#allocation5 + $0x48] sm:$0xff]  ;;  %v384_v4 = vand.u32 4294901760, %v215_v1  ;;  %v225_v6 = vld [vmem:[#allocation5 + $0x58] sm:$0xff]  ;;  %v1239_v7 = vand.u32 4294901760, %v217_v3  ;;  %s6968_s29 = scalar_lea.hbm %s7017_s3, %s3933_s17 }
  0x6e   : > { %v388_v5 = vand.u32 4294901760, %v223_v2  ;;  %v222_v9 = vld [vmem:[#allocation5 + $0x40] sm:$0xff]  ;;  %v1243_v10 = vand.u32 4294901760, %v225_v6  ;;  %v386_v11 = vand.u32 4294901760, %v214_v8  ;;  %v216_v13 = vld [vmem:[#allocation5 + $0x10] sm:$0xff]  ;;  %v231_v15 = vld [vmem:[#allocation5 + $0x88] sm:$0xff] }
  0x6f   : > { %v390_v12 = vand.u32 4294901760, %v222_v9  ;;  %v224_v14 = vld [vmem:[#allocation5 + $0x50] sm:$0xff]  ;;  %v5192_v17 = vsub.f32 %v215_v1, %v384_v4  ;;  %v5196_v19 = vsub.f32 %v217_v3, %v1239_v7  ;;  %v239_v20 = vld [vmem:[#allocation5 + $0xc8] sm:$0xff]  ;;  %v233_v21 = vld [vmem:[#allocation5 + $0x98] sm:$0xff]  ;;  %v1241_v29 = vand.u32 4294901760, %v216_v13  ;;  %s6955_s20 = scalar_lea.vmem [#allocation8], %s3927_s18 }
  0x70   : > { %v5190_v16 = vpack.c.bf16 %v388_v5, %v384_v4  ;;  %v5194_v18 = vsub.f32 %v223_v2, %v388_v5  ;;  %v241_v22 = vld [vmem:[#allocation5 + $0xd8] sm:$0xff]  ;;  %v5198_v23 = vpack.c.bf16 %v1243_v10, %v1239_v7  ;;  %v5200_v24 = vsub.f32 %v225_v6, %v1243_v10  ;;  %v230_v27 = vld [vmem:[#allocation5 + $0x80] sm:$0xff]  ;;  %v232_v37 = vld [vmem:[#allocation5 + $0x90] sm:$0xff]  ;;  %s3827_s24 = sshll.u32 %s6955_s20, 4  ;;  %s3813_s16 = scalar_lea.sflag [#allocation4], %s5174_s11  ;;  %s6970_s24 = int_to_ptr.vmem [resolvable:$true] %s3827_s24 }
  0x71   : > { %7367 = vst [vmem:[#allocation13_spill] sm:$0xff] %v5192_v17  ;;  %7369 = vst [vmem:[#allocation15_spill] sm:$0xff] %v5196_v19  ;;  %v5202_v25 = vpack.c.bf16 %v390_v12, %v386_v11  ;;  %v5204_v26 = vsub.f32 %v214_v8, %v386_v11  ;;  %v5207_v28 = vsub.f32 %v222_v9, %v390_v12  ;;  %v1245_v30 = vand.u32 4294901760, %v224_v14  ;;  %v238_v32 = vld [vmem:[#allocation5 + $0xc0] sm:$0xff]  ;;  %v240_v38 = vld [vmem:[#allocation5 + $0xd0] sm:$0xff]  ;;  %s4906_s30 = scalar_lea.vmem %s6970_s24, 1024 }
  0x72   : > { %7366 = vst [vmem:[#allocation12_spill] sm:$0xff] %v5190_v16  ;;  %7368 = vst [vmem:[#allocation14_spill] sm:$0xff] %v5194_v18  ;;  %3935 = vmatprep.subr.bf16.mxu0 %v5190_v16  ;;  %v392_v31 = vand.u32 4294901760, %v231_v15  ;;  %4127 = vmatprep.subr.bf16.mxu1 %v5198_v23  ;;  %v396_v33 = vand.u32 4294901760, %v239_v20  ;;  %v1247_v34 = vand.u32 4294901760, %v233_v21  ;;  %v1251_v35 = vand.u32 4294901760, %v241_v22  ;;  %p4907_p11 = scmp.ne.s32.totalorder %s6970_s24, %s4906_s30 }
  0x73   : > { %7370 = vst [vmem:[#allocation16_spill] sm:$0xff] %v5198_v23  ;;  %7371 = vst [vmem:[#allocation17_spill] sm:$0xff] %v5200_v24  ;;  %3937 = vmatpush1.bf16.msra.mxu0 %v5202_v25  ;;  %v394_v36 = vand.u32 4294901760, %v230_v27  ;;  %v5211_v39 = vpack.c.bf16 %v1245_v30, %v1241_v29  ;;  %v5213_v40 = vsub.f32 %v216_v13, %v1241_v29  ;;  %v247_v43 = vld [vmem:[#allocation5 + $0x108] sm:$0xff]  ;;  %v249_v45 = vld [vmem:[#allocation5 + $0x118] sm:$0xff]  ;;  %v398_v52 = vand.u32 4294901760, %v238_v32 }
  0x74   : > { %7372 = vst [vmem:[#allocation18_spill] sm:$0xff] %v5202_v25  ;;  %7373 = vst [vmem:[#allocation19_spill] sm:$0xff] %v5207_v28  ;;  %v5215_v41 = vsub.f32 %v224_v14, %v1245_v30  ;;  %v5217_v42 = vsub.f32 %v231_v15, %v392_v31  ;;  %v255_v44 = vld [vmem:[#allocation5 + $0x148] sm:$0xff]  ;;  %v5219_v46 = vpack.c.bf16 %v396_v33, %v392_v31  ;;  %v257_v50 = vld [vmem:[#allocation5 + $0x158] sm:$0xff]  ;;  %v1249_v54 = vand.u32 4294901760, %v232_v37  ;;  %p8010_p0 = scmp.ne.s32.totalorder %s7361_s6, 0 }
  0x75   : > { %7374 = vst [vmem:[#allocation20_spill] sm:$0xff] %v5211_v39  ;;  %v5221_v47 = vsub.f32 %v239_v20, %v396_v33  ;;  %v5223_v48 = vpack.c.bf16 %v1251_v35, %v1247_v34  ;;  %v5225_v49 = vsub.f32 %v233_v21, %v1247_v34  ;;  %4129 = vmatpush1.bf16.msra.mxu1 %v5211_v39  ;;  %v1253_v55 = vand.u32 4294901760, %v240_v38  ;;  %v246_v59 = vld [vmem:[#allocation5 + $0x100] sm:$0xff]  ;;  %v248_v2 = vld [vmem:[#allocation5 + $0x110] sm:$0xff]  ;;  %v263_v4 = vld [vmem:[#allocation5 + $0x188] sm:$0xff]  ;;  %s4984_s23 = smov [#allocation8]  }
  0x76   : > { %7375 = vst [vmem:[#allocation21_spill] sm:$0xff] %v5219_v46  ;;  %v5228_v51 = vsub.f32 %v241_v22, %v1251_v35  ;;  %v5230_v53 = vsub.f32 %v230_v27, %v394_v36  ;;  %3939 = vmatprep.subr.bf16.mxu0 %v5219_v46  ;;  %v400_v56 = vand.u32 4294901760, %v247_v43  ;;  %v404_v57 = vand.u32 4294901760, %v255_v44  ;;  %v254_v60 = vld [vmem:[#allocation5 + $0x140] sm:$0xff]  ;;  %v256_v3 = vld [vmem:[#allocation5 + $0x150] sm:$0xff]  ;;  %v271_v9 = vld [vmem:[#allocation5 + $0x1c8] sm:$0xff]  ;;  %p4908_p1 = pnand %p4907_p11, %p8010_p0 }
  0x77   : > { %7376 = vst [vmem:[#allocation22_spill] sm:$0xff] %v5223_v48  ;;  %4131 = vmatprep.subr.bf16.mxu1 %v5223_v48  ;;  %v1255_v58 = vand.u32 4294901760, %v249_v45  ;;  %v5234_v61 = vpack.c.bf16 %v398_v52, %v394_v36  ;;  %v5236_v62 = vsub.f32 %v238_v32, %v398_v52  ;;  %v5238_v63 = vsub.f32 %v232_v37, %v1249_v54  ;;  %v265_v10 = vld [vmem:[#allocation5 + $0x198] sm:$0xff]  ;;  %v262_v33 = vld [vmem:[#allocation5 + $0x180] sm:$0xff]  ;;  %v296_v39 = vld [vmem:[#allocation5 + $0x290] sm:$0xff]  ;;  %s4910_s5 = sshll.u32 %s4984_s23, 4  ;;  %s4911_s5 = int_to_ptr.vmem [resolvable:$false] %s4910_s5 }
  0x78   : > { %v1259_v1 = vand.u32 4294901760, %v257_v50  ;;  %v5240_v5 = vpack.c.bf16 %v1253_v55, %v1249_v54  ;;  %v5242_v6 = vsub.f32 %v240_v38, %v1253_v55  ;;  %v5244_v7 = vpack.c.bf16 %v404_v57, %v400_v56  ;;  %v273_v11 = vld [vmem:[#allocation5 + $0x1d8] sm:$0xff]  ;;  %v270_v38 = vld [vmem:[#allocation5 + $0x1c0] sm:$0xff]  ;;  %v279_v55 = vld [vmem:[#allocation5 + $0x208] sm:$0xff]  ;;  %p4909_p3 = pneg %p4908_p1  ;;  %s4912_s8 = scalar_lea.vmem %s4911_s5, 2048 }
  0x79   : > { %7377 = vst [vmem:[#allocation23_spill] sm:$0xff] %v5234_v61  ;;  %v5246_v8 = vsub.f32 %v247_v43, %v400_v56  ;;  %3941 = vmatpush1.bf16.msra.mxu0 %v5234_v61  ;;  %v5249_v12 = vsub.f32 %v255_v44, %v404_v57  ;;  %v5253_v14 = vsub.f32 %v249_v45, %v1255_v58  ;;  %v402_v20 = vand.u32 4294901760, %v246_v59  ;;  %v264_v43 = vld [vmem:[#allocation5 + $0x190] sm:$0xff]  ;;  %v287_v56 = vld [vmem:[#allocation5 + $0x248] sm:$0xff]  ;;  %v281_v57 = vld [vmem:[#allocation5 + $0x218] sm:$0xff]  ;;  %p4913_p7 = scmp.lt.s32.totalorder %s6970_s24, %s4911_s5  ;;  %p4914_p9 = scmp.lt.s32.totalorder %s4912_s8, %s4906_s30 }
  0x7a   : > { %7378 = vst [vmem:[#allocation24_spill] sm:$0xff] %v5240_v5  ;;  %7379 = vst [vmem:[#allocation25_spill] sm:$0xff] %v5244_v7  ;;  %v5251_v13 = vpack.c.bf16 %v1259_v1, %v1255_v58  ;;  %v5255_v15 = vsub.f32 %v257_v50, %v1259_v1  ;;  %4133 = vmatpush1.bf16.msra.mxu1 %v5240_v5  ;;  %3943 = vmatprep.subr.bf16.mxu0 %v5244_v7  ;;  %v406_v21 = vand.u32 4294901760, %v254_v60  ;;  %v272_v44 = vld [vmem:[#allocation5 + $0x1d0] sm:$0xff]  ;;  %v286_v0 = vld [vmem:[#allocation5 + $0x240] sm:$0xff] }
  0x7b   : > { %v1257_v22 = vand.u32 4294901760, %v248_v2  ;;  %v1261_v27 = vand.u32 4294901760, %v256_v3  ;;  %v408_v29 = vand.u32 4294901760, %v263_v4  ;;  %v412_v30 = vand.u32 4294901760, %v271_v9  ;;  %v297_v48 = vld [vmem:[#allocation5 + $0x298] sm:$0xff]  ;;  %v304_v16 = vld [vmem:[#allocation5 + $0x2d0] sm:$0xff]  ;;  %p4915_p12 = por %p4914_p9, %p4913_p7 }
  0x7c   : > { %7380 = vst [vmem:[#allocation26_spill] sm:$0xff] %v5251_v13  ;;  %4135 = vmatprep.subr.bf16.mxu1 %v5251_v13  ;;  %v1263_v31 = vand.u32 4294901760, %v265_v10  ;;  %v1267_v32 = vand.u32 4294901760, %v273_v11  ;;  %v5260_v34 = vpack.c.bf16 %v406_v21, %v402_v20  ;;  %v5262_v35 = vsub.f32 %v246_v59, %v402_v20  ;;  %v303_v13 = vld [vmem:[#allocation5 + $0x2c8] sm:$0xff] }
  0x7d   : > { %v5264_v36 = vsub.f32 %v254_v60, %v406_v21  ;;  %v5266_v37 = vpack.c.bf16 %v1261_v27, %v1257_v22  ;;  %v5268_v45 = vsub.f32 %v248_v2, %v1257_v22  ;;  %v5270_v50 = vsub.f32 %v256_v3, %v1261_v27  ;;  %v289_v21 = vld [vmem:[#allocation5 + $0x258] sm:$0xff]  ;;  %p4916_p2 = pnand %p4915_p12, %p4909_p3 }
  0x7e   : > { %7381 = vst [vmem:[#allocation27_spill] sm:$0xff] %v5260_v34  ;;  %v5272_v52 = vpack.c.bf16 %v412_v30, %v408_v29  ;;  %v5274_v54 = vsub.f32 %v263_v4, %v408_v29  ;;  %3945 = vmatpush1.bf16.msra.mxu0 %v5260_v34  ;;  %v5278_v58 = vsub.f32 %v271_v9, %v412_v30  ;;  %v410_v1 = vand.u32 4294901760, %v262_v33  ;;  %v278_v30 = vld [vmem:[#allocation5 + $0x200] sm:$0xff]  ;;  %v295_v34 = vld [vmem:[#allocation5 + $0x288] sm:$0xff] }
  0x7f   : > { %7382 = vst [vmem:[#allocation28_spill] sm:$0xff] %v5266_v37  ;;  %4137 = vmatpush1.bf16.msra.mxu1 %v5266_v37  ;;  %v5280_v59 = vpack.c.bf16 %v1267_v32, %v1263_v31  ;;  %v5282_v60 = vsub.f32 %v265_v10, %v1263_v31  ;;  %v5285_v2 = vsub.f32 %v273_v11, %v1267_v32  ;;  %v414_v3 = vand.u32 4294901760, %v270_v38  ;;  %v280_v10 = vld [vmem:[#allocation5 + $0x210] sm:$0xff] }
  0x80   : > { %7383 = vst [vmem:[#allocation29_spill] sm:$0xff] %v5272_v52  ;;  %3947 = vmatprep.subr.bf16.mxu0 %v5272_v52  ;;  %v1265_v4 = vand.u32 4294901760, %v264_v43  ;;  %v1269_v20 = vand.u32 4294901760, %v272_v44  ;;  %v5288_v22 = vsub.f32 %v262_v33, %v410_v1  ;;  %v416_v27 = vand.u32 4294901760, %v279_v55  ;;  %v288_v52 = vld [vmem:[#allocation5 + $0x250] sm:$0xff] }
  0x81   : > { %7384 = vst [vmem:[#allocation30_spill] sm:$0xff] %v5280_v59  ;;  %4139 = vmatprep.subr.bf16.mxu1 %v5280_v59  ;;  %v420_v9 = vand.u32 4294901760, %v287_v56  ;;  %v1271_v29 = vand.u32 4294901760, %v281_v57  ;;  %v5290_v31 = vpack.c.bf16 %v414_v3, %v410_v1  ;;  %v5292_v37 = vsub.f32 %v270_v38, %v414_v3 }
  0x82   : > { %v5294_v11 = vpack.c.bf16 %v1269_v20, %v1265_v4  ;;  %v5296_v32 = vsub.f32 %v264_v43, %v1265_v4  ;;  %v5298_v59 = vsub.f32 %v272_v44, %v1269_v20  ;;  %v5302_v5 = vsub.f32 %v279_v55, %v416_v27  ;;  %v305_v55 = vld [vmem:[#allocation5 + $0x2d8] sm:$0xff] }
  0x83   : > { %7385 = vst [vmem:[#allocation31_spill] sm:$0xff] %v5290_v31  ;;  %v5300_v33 = vpack.c.bf16 %v420_v9, %v416_v27  ;;  %v5304_v7 = vsub.f32 %v287_v56, %v420_v9  ;;  %3949 = vmatpush1.bf16.msra.mxu0 %v5290_v31  ;;  %v1275_v38 = vand.u32 4294901760, %v289_v21  ;;  %v5308_v1 = vsub.f32 %v281_v57, %v1271_v29  ;;  %v294_v57 = vld [vmem:[#allocation5 + $0x280] sm:$0xff] }
  0x84   : > { %7386 = vst [vmem:[#allocation32_spill] sm:$0xff] %v5294_v11  ;;  %7387 = vst [vmem:[#allocation33_spill] sm:$0xff] %v5296_v32  ;;  %4141 = vmatpush1.bf16.msra.mxu1 %v5294_v11  ;;  %v418_v43 = vand.u32 4294901760, %v278_v30  ;;  %v422_v3 = vand.u32 4294901760, %v286_v0  ;;  %v1273_v4 = vand.u32 4294901760, %v280_v10  ;;  %v1277_v44 = vand.u32 4294901760, %v288_v52 }
  0x85   : > { %7388 = vst [vmem:[#allocation34_spill] sm:$0xff] %v5298_v59  ;;  %7389 = vst [vmem:[#allocation35_spill] sm:$0xff] %v5300_v33  ;;  %3951 = vmatprep.subr.bf16.mxu0 %v5300_v33  ;;  %v424_v20 = vand.u32 4294901760, %v295_v34  ;;  %v428_v61 = vand.u32 4294901760, %v303_v13  ;;  %v5311_v27 = vpack.c.bf16 %v1275_v38, %v1271_v29  ;;  %v5313_v56 = vsub.f32 %v289_v21, %v1275_v38  ;;  %v302_v31 = vld [vmem:[#allocation5 + $0x2c0] sm:$0xff]  ;;  %v311_v29 = vld [vmem:[#allocation5 + $0x308] sm:$0xff] }
  0x86   : > { %7390 = vst [vmem:[#allocation36_spill] sm:$0xff] %v5302_v5  ;;  %7391 = vst [vmem:[#allocation37_spill] sm:$0xff] %v5304_v7  ;;  %v5315_v9 = vpack.c.bf16 %v422_v3, %v418_v43  ;;  %v5317_v11 = vsub.f32 %v278_v30, %v418_v43  ;;  %v5319_v46 = vsub.f32 %v286_v0, %v422_v3  ;;  %v1279_v0 = vand.u32 4294901760, %v297_v48 }
  0x87   : > { %7392 = vst [vmem:[#allocation38_spill] sm:$0xff] %v5308_v1  ;;  %7393 = vst [vmem:[#allocation39_spill] sm:$0xff] %v5311_v27  ;;  %v5321_v33 = vpack.c.bf16 %v1277_v44, %v1273_v4  ;;  %v5323_v25 = vsub.f32 %v280_v10, %v1273_v4  ;;  %v5325_v23 = vsub.f32 %v288_v52, %v1277_v44  ;;  %v319_v1 = vld [vmem:[#allocation5 + $0x348] sm:$0xff]  ;;  %4143 = vmatprep.subr.bf16.mxu1 %v5311_v27 }
  0x88   : > { %7394 = vst [vmem:[#allocation40_spill] sm:$0xff] %v5313_v56  ;;  %7395 = vst [vmem:[#allocation41_spill] sm:$0xff] %v5315_v9  ;;  %3953 = vmatpush1.bf16.msra.mxu0 %v5315_v9  ;;  %v5329_v21 = vpack.c.bf16 %v428_v61, %v424_v20  ;;  %v5331_v30 = vsub.f32 %v295_v34, %v424_v20  ;;  %v5333_v38 = vsub.f32 %v303_v13, %v428_v61  ;;  %v335_v56 = vld [vmem:[#allocation5 + $0x3c8] sm:$0xff] }
  0x89   : > { %7396 = vst [vmem:[#allocation42_spill] sm:$0xff] %v5317_v11  ;;  %7397 = vst [vmem:[#allocation43_spill] sm:$0xff] %v5319_v46  ;;  %4145 = vmatpush1.bf16.msra.mxu1 %v5321_v33  ;;  %v1283_v10 = vand.u32 4294901760, %v305_v55  ;;  %v426_v43 = vand.u32 4294901760, %v294_v57  ;;  %v430_v52 = vand.u32 4294901760, %v302_v31  ;;  %v1281_v3 = vand.u32 4294901760, %v296_v39 }
  0x8a   : > { %7398 = vst [vmem:[#allocation44_spill] sm:$0xff] %v5321_v33  ;;  %7399 = vst [vmem:[#allocation45_spill] sm:$0xff] %v5323_v25  ;;  %3955 = vmatprep.subr.bf16.mxu0 %v5329_v21  ;;  %v5337_v4 = vsub.f32 %v297_v48, %v1279_v0  ;;  %v1285_v44 = vand.u32 4294901760, %v304_v16  ;;  %v432_v27 = vand.u32 4294901760, %v311_v29  ;;  %v436_v9 = vand.u32 4294901760, %v319_v1  ;;  %v321_v25 = vld [vmem:[#allocation5 + $0x358] sm:$0xff] }
  0x8b   : > { %7400 = vst [vmem:[#allocation46_spill] sm:$0xff] %v5325_v23  ;;  %7401 = vst [vmem:[#allocation47_spill] sm:$0xff] %v5329_v21  ;;  %v313_v23 = vld [vmem:[#allocation5 + $0x318] sm:$0xff]  ;;  %v5339_v34 = vpack.c.bf16 %v1283_v10, %v1279_v0  ;;  %v5341_v61 = vsub.f32 %v305_v55, %v1283_v10  ;;  %v5343_v13 = vpack.c.bf16 %v430_v52, %v426_v43  ;;  %v310_v33 = vld [vmem:[#allocation5 + $0x300] sm:$0xff] }
  0x8c   : > { %7402 = vst [vmem:[#allocation48_spill] sm:$0xff] %v5331_v30  ;;  %7403 = vst [vmem:[#allocation49_spill] sm:$0xff] %v5333_v38  ;;  %v5345_v20 = vsub.f32 %v294_v57, %v426_v43  ;;  %v318_v38 = vld [vmem:[#allocation5 + $0x340] sm:$0xff]  ;;  %v312_v30 = vld [vmem:[#allocation5 + $0x310] sm:$0xff]  ;;  %v5347_v46 = vsub.f32 %v302_v31, %v430_v52  ;;  %v5349_v48 = vpack.c.bf16 %v1285_v44, %v1281_v3  ;;  %v1287_v31 = vand.u32 4294901760, %v313_v23 }
  0x8d   : > { %7404 = vst [vmem:[#allocation50_spill] sm:$0xff] %v5337_v4  ;;  %7405 = vst [vmem:[#allocation51_spill] sm:$0xff] %v5339_v34  ;;  %v5351_v21 = vsub.f32 %v296_v39, %v1281_v3  ;;  %v5353_v4 = vsub.f32 %v304_v16, %v1285_v44  ;;  %v320_v11 = vld [vmem:[#allocation5 + $0x350] sm:$0xff]  ;;  %v327_v0 = vld [vmem:[#allocation5 + $0x388] sm:$0xff]  ;;  %4147 = vmatprep.subr.bf16.mxu1 %v5339_v34  ;;  %3957 = vmatpush1.bf16.msra.mxu0 %v5343_v13  ;;  %v1291_v39 = vand.u32 4294901760, %v321_v25 }
  0x8e   : > { %7406 = vst [vmem:[#allocation52_spill] sm:$0xff] %v5341_v61  ;;  %7407 = vst [vmem:[#allocation53_spill] sm:$0xff] %v5343_v13  ;;  %v5357_v55 = vpack.c.bf16 %v436_v9, %v432_v27  ;;  %v5359_v57 = vsub.f32 %v311_v29, %v432_v27  ;;  %v5361_v10 = vsub.f32 %v319_v1, %v436_v9  ;;  %4149 = vmatpush1.bf16.msra.mxu1 %v5349_v48 }
  0x8f   : > { %7408 = vst [vmem:[#allocation54_spill] sm:$0xff] %v5345_v20  ;;  %7409 = vst [vmem:[#allocation55_spill] sm:$0xff] %v5347_v46  ;;  %v434_v43 = vand.u32 4294901760, %v310_v33  ;;  %v438_v16 = vand.u32 4294901760, %v318_v38  ;;  %v1289_v52 = vand.u32 4294901760, %v312_v30  ;;  %v5365_v3 = vsub.f32 %v313_v23, %v1287_v31  ;;  %v336_v20 = vld [vmem:[#allocation5 + $0x3d0] sm:$0xff] }
  0x90   : > { %7410 = vst [vmem:[#allocation56_spill] sm:$0xff] %v5349_v48  ;;  %7411 = vst [vmem:[#allocation57_spill] sm:$0xff] %v5351_v21  ;;  %3959 = vmatprep.subr.bf16.mxu0 %v5357_v55  ;;  %v1293_v44 = vand.u32 4294901760, %v320_v11  ;;  %v440_v34 = vand.u32 4294901760, %v327_v0  ;;  %v444_v13 = vand.u32 4294901760, %v335_v56  ;;  %v337_v21 = vld [vmem:[#allocation5 + $0x3d8] sm:$0xff]  ;;  %v5367_v27 = vpack.c.bf16 %v1291_v39, %v1287_v31 }
  0x91   : > { %7412 = vst [vmem:[#allocation58_spill] sm:$0xff] %v5353_v4  ;;  %7413 = vst [vmem:[#allocation59_spill] sm:$0xff] %v5357_v55  ;;  %v329_v4 = vld [vmem:[#allocation5 + $0x398] sm:$0xff]  ;;  %v5369_v1 = vsub.f32 %v321_v25, %v1291_v39  ;;  %v5371_v9 = vpack.c.bf16 %v438_v16, %v434_v43  ;;  %v5373_v29 = vsub.f32 %v310_v33, %v434_v43  ;;  %v326_v48 = vld [vmem:[#allocation5 + $0x380] sm:$0xff]  ;;  %v1299_v39 = vand.u32 4294901760, %v337_v21 }
  0x92   : > { %7414 = vst [vmem:[#allocation60_spill] sm:$0xff] %v5359_v57  ;;  %7415 = vst [vmem:[#allocation61_spill] sm:$0xff] %v5361_v10  ;;  %v334_v10 = vld [vmem:[#allocation5 + $0x3c0] sm:$0xff]  ;;  %v328_v57 = vld [vmem:[#allocation5 + $0x390] sm:$0xff]  ;;  %v5375_v46 = vsub.f32 %v318_v38, %v438_v16  ;;  %v5377_v23 = vpack.c.bf16 %v1293_v44, %v1289_v52  ;;  %v5379_v55 = vsub.f32 %v312_v30, %v1289_v52  ;;  %4151 = vmatprep.subr.bf16.mxu1 %v5367_v27 }
  0x93   : > { %7416 = vst [vmem:[#allocation62_spill] sm:$0xff] %v5365_v3  ;;  %7417 = vst [vmem:[#allocation63_spill] sm:$0xff] %v5367_v27  ;;  %v5381_v3 = vsub.f32 %v320_v11, %v1293_v44  ;;  %3961 = vmatpush1.bf16.msra.mxu0 %v5371_v9  ;;  %v5385_v25 = vpack.c.bf16 %v444_v13, %v440_v34  ;;  %v5387_v33 = vsub.f32 %v327_v0, %v440_v34 }
  0x94   : > { %7418 = vst [vmem:[#allocation64_spill] sm:$0xff] %v5371_v9  ;;  %7419 = vst [vmem:[#allocation65_spill] sm:$0xff] %v5377_v23  ;;  %v5389_v31 = vsub.f32 %v335_v56, %v444_v13  ;;  %v1295_v38 = vand.u32 4294901760, %v329_v4  ;;  %4153 = vmatpush1.bf16.msra.mxu1 %v5377_v23  ;;  %v442_v30 = vand.u32 4294901760, %v326_v48  ;;  %v446_v43 = vand.u32 4294901760, %v334_v10  ;;  %v213_v9 = vld [vmem:[%s5178_s22] sm:$0xff] }
  0x95   : > { %7420 = vst [vmem:[#allocation66_spill] sm:$0xff] %v5385_v25  ;;  %v1297_v11 = vand.u32 4294901760, %v328_v57  ;;  %3963 = vmatprep.subr.bf16.mxu0 %v5385_v25  ;;  %v1301_v52 = vand.u32 4294901760, %v336_v20  ;;  %v7099_v44 = vand.u32 4294901760, %v5192_v17  ;;  %v7098_v34 = vand.u32 4294901760, %v5194_v18 }
  0x96   : > { %7421 = vst [vmem:[#allocation67_spill] sm:$0xff] %v5389_v31  ;;  %v5393_v16 = vsub.f32 %v329_v4, %v1295_v38  ;;  %v5397_v0 = vpack.c.bf16 %v1299_v39, %v1295_v38  ;;  %v5399_v56 = vsub.f32 %v337_v21, %v1299_v39  ;;  %v5401_v13 = vpack.c.bf16 %v446_v43, %v442_v30 }
  0x97   : > { %v5403_v23 = vsub.f32 %v326_v48, %v442_v30  ;;  %v5406_v27 = vsub.f32 %v334_v10, %v446_v43  ;;  %v5408_v31 = vpack.c.bf16 %v1301_v52, %v1297_v11  ;;  %v5410_v4 = vsub.f32 %v328_v57, %v1297_v11 }
  0x98   : > { %7422 = vst [vmem:[#allocation68_spill] sm:$0xff] %v5393_v16  ;;  %7423 = vst [vmem:[#allocation69_spill] sm:$0xff] %v5397_v0  ;;  %v5412_v25 = vsub.f32 %v336_v20, %v1301_v52  ;;  %4155 = vmatprep.subr.bf16.mxu1 %v5397_v0  ;;  %3965 = vmatpush1.bf16.msra.mxu0 %v5401_v13  ;;  %v495_v21 = vsub.f32 %v5192_v17, %v7099_v44  ;;  %v7102_v10 = vand.u32 4294901760, %v5196_v19 }
  0x99   : > { %7424 = vst [vmem:[#allocation70_spill] sm:$0xff] %v5399_v56  ;;  %7425 = vst [vmem:[#allocation71_spill] sm:$0xff] %v5401_v13  ;;  %v507_v48 = vsub.f32 %v5194_v18, %v7098_v34  ;;  %v7107_v38 = vand.u32 4294901760, %v5200_v24  ;;  %4157 = vmatpush1.bf16.msra.mxu1 %v5408_v31  ;;  %v5425_v20 = vand.u32 4294901760, %v213_v9  ;;  %v7114_v57 = vand.u32 4294901760, %v5204_v26 }
  0x9a   : > { %7426 = vst [vmem:[#allocation72_spill] sm:$0xff] %v5403_v23  ;;  %7427 = vst [vmem:[#allocation73_spill] sm:$0xff] %v5406_v27  ;;  %v7115_v39 = vand.u32 4294901760, %v5207_v28  ;;  %v7121_v30 = vand.u32 4294901760, %v5213_v40  ;;  %v496_v43 = vand.u32 4294901760, %v495_v21  ;;  %v1350_v52 = vsub.f32 %v5196_v19, %v7102_v10 }
  0x9b   : > { %7428 = vst [vmem:[#allocation74_spill] sm:$0xff] %v5408_v31  ;;  %7429 = vst [vmem:[#allocation75_spill] sm:$0xff] %v5410_v4  ;;  %v508_v11 = vand.u32 4294901760, %v507_v48  ;;  %v1362_v34 = vsub.f32 %v5200_v24, %v7107_v38  ;;  %v5437_v44 = vsub.f32 %v213_v9, %v5425_v20  ;;  %v501_v31 = vsub.f32 %v5204_v26, %v7114_v57 }
  0x9c   : > { %7430 = vst [vmem:[#allocation76_spill] sm:$0xff] %v5412_v25  ;;  %7431 = vst [vmem:[#allocation77_spill] sm:$0xff] %v5425_v20  ;;  %v513_v21 = vsub.f32 %v5207_v28, %v7115_v39  ;;  %v1356_v48 = vsub.f32 %v5213_v40, %v7121_v30  ;;  %v1351_v13 = vand.u32 4294901760, %v1350_v52  ;;  %v7119_v38 = vand.u32 4294901760, %v5215_v41 }
  0x9d   : > { %7432 = vst [vmem:[#allocation78_spill] sm:$0xff] %v5437_v44  ;;  %v3966_v10 = vpack.c.bf16 %v508_v11, %v496_v43  ;;  %v1363_v0 = vand.u32 4294901760, %v1362_v34  ;;  %v5450_v9 = vand.u32 4294901760, %v5437_v44  ;;  %v502_v20 = vand.u32 4294901760, %v501_v31 }
  0x9e   : > { %v514_v24 = vand.u32 4294901760, %v513_v21  ;;  %v1357_v19 = vand.u32 4294901760, %v1356_v48  ;;  %v1368_v39 = vsub.f32 %v5215_v41, %v7119_v38  ;;  %v7118_v28 = vand.u32 4294901760, %v5217_v42 }
  0x9f   : > { %7433 = vst [vmem:[#allocation79_spill] sm:$0xff] %v5450_v9  ;;  %3967 = vmatprep.subr.bf16.mxu0 %v3966_v10  ;;  %v4158_v57 = vpack.c.bf16 %v1363_v0, %v1351_v13  ;;  %v7120_v43 = vand.u32 4294901760, %v5221_v47  ;;  %v484_v34 = vsub.f32 %v5437_v44, %v5450_v9  ;;  %v7122_v52 = vand.u32 4294901760, %v5225_v49 }
  0xa0   : > { %v3968_v11 = vpack.c.bf16 %v514_v24, %v502_v20  ;;  %v7123_v31 = vand.u32 4294901760, %v5228_v51  ;;  %v1369_v21 = vand.u32 4294901760, %v1368_v39  ;;  %v519_v0 = vsub.f32 %v5217_v42, %v7118_v28 }
  0xa1   : > { %4159 = vmatprep.subr.bf16.mxu1 %v4158_v57  ;;  %v531_v13 = vsub.f32 %v5221_v47, %v7120_v43  ;;  %v7124_v10 = vand.u32 4294901760, %v5230_v53  ;;  %v5468_v48 = vand.u32 4294901760, %v484_v34  ;;  %v1374_v24 = vsub.f32 %v5225_v49, %v7122_v52 }
  0xa2   : > { %v1386_v20 = vsub.f32 %v5228_v51, %v7123_v31  ;;  %v7133_v57 = vand.u32 4294901760, %v5236_v62  ;;  %v4160_v39 = vpack.c.bf16 %v1369_v21, %v1357_v19  ;;  %v520_v28 = vand.u32 4294901760, %v519_v0 }
  0xa3   : > { %7434 = vst [vmem:[#allocation80_spill] sm:$0xff] %v5468_v48  ;;  %v532_v38 = vand.u32 4294901760, %v531_v13  ;;  %v525_v43 = vsub.f32 %v5230_v53, %v7124_v10  ;;  %486 = vmatmul.mubr.f32.vlgmr.msra.gmra.mrb[0].mxu0 %v5468_v48  ;;  %1341 = vmatmul.mubr.f32.vlgmr.msra.gmra.mrb[0].mxu1 %v5468_v48  ;;  %v1375_v34 = vand.u32 4294901760, %v1374_v24  ;;  %v7129_v31 = vand.u32 4294901760, %v5238_v63 }
  0xa4   : > { %v1387_v30 = vand.u32 4294901760, %v1386_v20  ;;  %v537_v52 = vsub.f32 %v5236_v62, %v7133_v57  ;;  %3969 = vmatpush1.bf16.msra.mxu0 %v3968_v11  ;;  %4161 = vmatpush1.bf16.msra.mxu1 %v4160_v39  ;;  %v7130_v0 = vand.u32 4294901760, %v5242_v6  ;;  %v7131_v13 = vand.u32 4294901760, %v5246_v8 }
  0xa5   : > { %v3970_v19 = vpack.c.bf16 %v532_v38, %v520_v28  ;;  %v526_v21 = vand.u32 4294901760, %v525_v43  ;;  %v1380_v24 = vsub.f32 %v5238_v63, %v7129_v31  ;;  %v7132_v20 = vand.u32 4294901760, %v5249_v12 }
  0xa6   : > { %v4162_v10 = vpack.c.bf16 %v1387_v30, %v1375_v34  ;;  %v538_v9 = vand.u32 4294901760, %v537_v52  ;;  %v7435_v48 = vmov 0.0   ;;  %v1392_v28 = vsub.f32 %v5242_v6, %v7130_v0 }
  0xa7   : > { %716 = vmatprep.mubr.f32.mxu0 %v7435_v48  ;;  %1571 = vmatprep.mubr.f32.mxu1 %v7435_v48  ;;  %v543_v38 = vsub.f32 %v5246_v8, %v7131_v13  ;;  %v7134_v30 = vand.u32 4294901760, %v5253_v14  ;;  %v7145_v43 = vand.u32 4294901760, %v5255_v15  ;;  %v1381_v52 = vand.u32 4294901760, %v1380_v24 }
  0xa8   : > { %3971 = vmatprep.subr.bf16.mxu0 %v3970_v19  ;;  %4163 = vmatprep.subr.bf16.mxu1 %v4162_v10  ;;  %v3972_v11 = vpack.c.bf16 %v538_v9, %v526_v21  ;;  %v555_v39 = vsub.f32 %v5249_v12, %v7132_v20  ;;  %v7137_v34 = vand.u32 4294901760, %v5262_v35  ;;  %v1393_v19 = vand.u32 4294901760, %v1392_v28 }
  0xa9   : > { %v544_v31 = vand.u32 4294901760, %v543_v38  ;;  %v1398_v0 = vsub.f32 %v5253_v14, %v7134_v30  ;;  %v1410_v13 = vsub.f32 %v5255_v15, %v7145_v43  ;;  %v7138_v21 = vand.u32 4294901760, %v5264_v36 }
  0xaa   : > { %3973 = vmatpush1.bf16.msra.mxu0 %v3972_v11  ;;  %v556_v10 = vand.u32 4294901760, %v555_v39  ;;  %v549_v9 = vsub.f32 %v5262_v35, %v7137_v34  ;;  %v7142_v24 = vand.u32 4294901760, %v5268_v45  ;;  %v4164_v28 = vpack.c.bf16 %v1393_v19, %v1381_v52 }
  0xab   : > { %v1399_v38 = vand.u32 4294901760, %v1398_v0  ;;  %v1411_v20 = vand.u32 4294901760, %v1410_v13  ;;  %v7139_v57 = vand.u32 4294901760, %v5270_v50  ;;  %v561_v11 = vsub.f32 %v5264_v36, %v7138_v21 }
  0xac   : > { %v3974_v30 = vpack.c.bf16 %v556_v10, %v544_v31  ;;  %v550_v44 = vand.u32 4294901760, %v549_v9  ;;  %v1404_v39 = vsub.f32 %v5268_v45, %v7142_v24  ;;  %4165 = vmatpush1.bf16.msra.mxu1 %v4164_v28  ;;  %v7140_v0 = vand.u32 4294901760, %v5274_v54 }
  0xad   : > { %v4166_v34 = vpack.c.bf16 %v1411_v20, %v1399_v38  ;;  %v1416_v52 = vsub.f32 %v5270_v50, %v7139_v57  ;;  %v7141_v13 = vand.u32 4294901760, %v5278_v58  ;;  %v562_v31 = vand.u32 4294901760, %v561_v11 }
  0xae   : > { %3975 = vmatprep.subr.bf16.mxu0 %v3974_v30  ;;  %v1405_v19 = vand.u32 4294901760, %v1404_v39  ;;  %v7143_v10 = vand.u32 4294901760, %v5282_v60  ;;  %v7144_v9 = vand.u32 4294901760, %v5285_v2  ;;  %v567_v20 = vsub.f32 %v5274_v54, %v7140_v0 }
  0xaf   : > { %4167 = vmatprep.subr.bf16.mxu1 %v4166_v34  ;;  %v1417_v21 = vand.u32 4294901760, %v1416_v52  ;;  %v579_v28 = vsub.f32 %v5278_v58, %v7141_v13  ;;  %v7148_v38 = vand.u32 4294901760, %v5288_v22  ;;  %v3976_v57 = vpack.c.bf16 %v562_v31, %v550_v44 }
  0xb0   : > { %v1422_v30 = vsub.f32 %v5282_v60, %v7143_v10  ;;  %v1434_v34 = vsub.f32 %v5285_v2, %v7144_v9  ;;  %v7147_v11 = vand.u32 4294901760, %v5292_v37  ;;  %v568_v52 = vand.u32 4294901760, %v567_v20 }
  0xb1   : > { %v4168_v39 = vpack.c.bf16 %v1417_v21, %v1405_v19  ;;  %v580_v0 = vand.u32 4294901760, %v579_v28  ;;  %v573_v13 = vsub.f32 %v5288_v22, %v7148_v38  ;;  %3977 = vmatpush1.bf16.msra.mxu0 %v3976_v57  ;;  %v7146_v10 = vand.u32 4294901760, %v5296_v32 }
  0xb2   : > { %v1423_v24 = vand.u32 4294901760, %v1422_v30  ;;  %v1435_v44 = vand.u32 4294901760, %v1434_v34  ;;  %v585_v31 = vsub.f32 %v5292_v37, %v7147_v11  ;;  %v7151_v21 = vand.u32 4294901760, %v5298_v59 }
  0xb3   : > { %4169 = vmatpush1.bf16.msra.mxu1 %v4168_v39  ;;  %v3978_v9 = vpack.c.bf16 %v580_v0, %v568_v52  ;;  %v574_v43 = vand.u32 4294901760, %v573_v13  ;;  %v7152_v19 = vand.u32 4294901760, %v5302_v5  ;;  %v1428_v57 = vsub.f32 %v5296_v32, %v7146_v10  ;;  %v7436_v13 = vld [vmem:[#allocation38_spill] sm:$0xff]  ;;  %v7437_v52 = vld [vmem:[#allocation40_spill] sm:$0xff] }
  0xb4   : > { %v4170_v20 = vpack.c.bf16 %v1435_v44, %v1423_v24  ;;  %v586_v28 = vand.u32 4294901760, %v585_v31  ;;  %v7153_v30 = vand.u32 4294901760, %v5304_v7  ;;  %v1440_v34 = vsub.f32 %v5298_v59, %v7151_v21 }
  0xb5   : > { %3979 = vmatprep.subr.bf16.mxu0 %v3978_v9  ;;  %v591_v0 = vsub.f32 %v5302_v5, %v7152_v19  ;;  %v7161_v39 = vand.u32 4294901760, %v7436_v13  ;;  %v7164_v24 = vand.u32 4294901760, %v7437_v52  ;;  %v1429_v31 = vand.u32 4294901760, %v1428_v57  ;;  %v7438_v9 = vld [vmem:[#allocation42_spill] sm:$0xff] }
  0xb6   : > { %4171 = vmatprep.subr.bf16.mxu1 %v4170_v20  ;;  %v3980_v44 = vpack.c.bf16 %v586_v28, %v574_v43  ;;  %v603_v10 = vsub.f32 %v5304_v7, %v7153_v30  ;;  %v7163_v11 = vand.u32 4294901760, %v7438_v9  ;;  %v1441_v38 = vand.u32 4294901760, %v1440_v34  ;;  %v7439_v28 = vld [vmem:[#allocation43_spill] sm:$0xff]  ;;  %v7440_v30 = vld [vmem:[#allocation45_spill] sm:$0xff]  ;;  %v7441_v7 = vld [vmem:[#allocation46_spill] sm:$0xff] }
  0xb7   : > { %v592_v32 = vand.u32 4294901760, %v591_v0  ;;  %v1446_v21 = vsub.f32 %v7436_v13, %v7161_v39  ;;  %v1458_v19 = vsub.f32 %v7437_v52, %v7164_v24  ;;  %v7166_v57 = vand.u32 4294901760, %v7439_v28 }
  0xb8   : > { %3981 = vmatpush1.bf16.msra.mxu0 %v3980_v44  ;;  %v604_v20 = vand.u32 4294901760, %v603_v10  ;;  %v597_v43 = vsub.f32 %v7438_v9, %v7163_v11  ;;  %v7169_v59 = vand.u32 4294901760, %v7440_v30  ;;  %v4172_v34 = vpack.c.bf16 %v1441_v38, %v1429_v31  ;;  %v7443_v31 = vld [vmem:[#allocation49_spill] sm:$0xff] }
  0xb9   : > { %v1447_v0 = vand.u32 4294901760, %v1446_v21  ;;  %v1459_v48 = vand.u32 4294901760, %v1458_v19  ;;  %v7168_v5 = vand.u32 4294901760, %v7441_v7  ;;  %v609_v44 = vsub.f32 %v7439_v28, %v7166_v57  ;;  %v7442_v21 = vld [vmem:[#allocation48_spill] sm:$0xff] }
  0xba   : > { %v3982_v39 = vpack.c.bf16 %v604_v20, %v592_v32  ;;  %v598_v13 = vand.u32 4294901760, %v597_v43  ;;  %v1452_v10 = vsub.f32 %v7440_v30, %v7169_v59  ;;  %4173 = vmatpush1.bf16.msra.mxu1 %v4172_v34  ;;  %v7171_v19 = vand.u32 4294901760, %v7442_v21  ;;  %v7444_v43 = vld [vmem:[#allocation50_spill] sm:$0xff] }
  0xbb   : > { %v4174_v11 = vpack.c.bf16 %v1459_v48, %v1447_v0  ;;  %v1464_v38 = vsub.f32 %v7441_v7, %v7168_v5  ;;  %v7172_v24 = vand.u32 4294901760, %v7443_v31  ;;  %v610_v32 = vand.u32 4294901760, %v609_v44  ;;  %v7445_v0 = vld [vmem:[#allocation54_spill] sm:$0xff]  ;;  %v7446_v44 = vld [vmem:[#allocation55_spill] sm:$0xff] }
  0xbc   : > { %3983 = vmatprep.subr.bf16.mxu0 %v3982_v39  ;;  %v1453_v20 = vand.u32 4294901760, %v1452_v10  ;;  %v7174_v9 = vand.u32 4294901760, %v7444_v43  ;;  %v7176_v57 = vand.u32 4294901760, %v5341_v61  ;;  %v615_v48 = vsub.f32 %v7442_v21, %v7171_v19  ;;  %v7448_v21 = vld [vmem:[#allocation58_spill] sm:$0xff] }
  0xbd   : > { %4175 = vmatprep.subr.bf16.mxu1 %v4174_v11  ;;  %v1465_v28 = vand.u32 4294901760, %v1464_v38  ;;  %v627_v34 = vsub.f32 %v7443_v31, %v7172_v24  ;;  %v7183_v5 = vand.u32 4294901760, %v7445_v0  ;;  %v3984_v59 = vpack.c.bf16 %v610_v32, %v598_v13 }
  0xbe   : > { %v1470_v39 = vsub.f32 %v7444_v43, %v7174_v9  ;;  %v1482_v11 = vsub.f32 %v5341_v61, %v7176_v57  ;;  %v7181_v10 = vand.u32 4294901760, %v7446_v44  ;;  %v616_v7 = vand.u32 4294901760, %v615_v48  ;;  %v7447_v9 = vld [vmem:[#allocation57_spill] sm:$0xff] }
  0xbf   : > { %v4176_v38 = vpack.c.bf16 %v1465_v28, %v1453_v20  ;;  %v628_v19 = vand.u32 4294901760, %v627_v34  ;;  %v621_v24 = vsub.f32 %v7445_v0, %v7183_v5  ;;  %3985 = vmatpush1.bf16.msra.mxu0 %v3984_v59  ;;  %v7182_v43 = vand.u32 4294901760, %v7447_v9  ;;  %v7449_v20 = vld [vmem:[#allocation60_spill] sm:$0xff] }
  0xc0   : > { %v1471_v31 = vand.u32 4294901760, %v1470_v39  ;;  %v1483_v13 = vand.u32 4294901760, %v1482_v11  ;;  %v633_v32 = vsub.f32 %v7446_v44, %v7181_v10  ;;  %v7184_v28 = vand.u32 4294901760, %v7448_v21  ;;  %v7450_v39 = vld [vmem:[#allocation61_spill] sm:$0xff] }
  0xc1   : > { %4177 = vmatpush1.bf16.msra.mxu1 %v4176_v38  ;;  %v3986_v57 = vpack.c.bf16 %v628_v19, %v616_v7  ;;  %v622_v61 = vand.u32 4294901760, %v621_v24  ;;  %v7185_v48 = vand.u32 4294901760, %v7449_v20  ;;  %v1476_v59 = vsub.f32 %v7447_v9, %v7182_v43  ;;  %v7451_v24 = vld [vmem:[#allocation62_spill] sm:$0xff] }
  0xc2   : > { %v4178_v34 = vpack.c.bf16 %v1483_v13, %v1471_v31  ;;  %v634_v30 = vand.u32 4294901760, %v633_v32  ;;  %v7186_v11 = vand.u32 4294901760, %v7450_v39  ;;  %v1488_v10 = vsub.f32 %v7448_v21, %v7184_v28 }
  0xc3   : > { %3987 = vmatprep.subr.bf16.mxu0 %v3986_v57  ;;  %v639_v7 = vsub.f32 %v7449_v20, %v7185_v48  ;;  %v7188_v19 = vand.u32 4294901760, %v7451_v24  ;;  %v7192_v31 = vand.u32 4294901760, %v5369_v1  ;;  %v1477_v13 = vand.u32 4294901760, %v1476_v59 }
  0xc4   : > { %4179 = vmatprep.subr.bf16.mxu1 %v4178_v34  ;;  %v3988_v38 = vpack.c.bf16 %v634_v30, %v622_v61  ;;  %v651_v32 = vsub.f32 %v7450_v39, %v7186_v11  ;;  %v7190_v57 = vand.u32 4294901760, %v5373_v29  ;;  %v1489_v43 = vand.u32 4294901760, %v1488_v10 }
  0xc5   : > { %v640_v5 = vand.u32 4294901760, %v639_v7  ;;  %v1494_v28 = vsub.f32 %v7451_v24, %v7188_v19  ;;  %v1506_v48 = vsub.f32 %v5369_v1, %v7192_v31  ;;  %v7191_v30 = vand.u32 4294901760, %v5375_v46 }
  0xc6   : > { %3989 = vmatpush1.bf16.msra.mxu0 %v3988_v38  ;;  %v652_v34 = vand.u32 4294901760, %v651_v32  ;;  %v645_v61 = vsub.f32 %v5373_v29, %v7190_v57  ;;  %v7196_v59 = vand.u32 4294901760, %v5379_v55  ;;  %v4180_v10 = vpack.c.bf16 %v1489_v43, %v1477_v13 }
  0xc7   : > { %v1495_v7 = vand.u32 4294901760, %v1494_v28  ;;  %v1507_v11 = vand.u32 4294901760, %v1506_v48  ;;  %v7193_v39 = vand.u32 4294901760, %v5381_v3  ;;  %v657_v38 = vsub.f32 %v5375_v46, %v7191_v30  ;;  %v7452_v48 = vld [vmem:[#allocation67_spill] sm:$0xff] }
  0xc8   : > { %v3990_v19 = vpack.c.bf16 %v652_v34, %v640_v5  ;;  %v646_v24 = vand.u32 4294901760, %v645_v61  ;;  %v1500_v32 = vsub.f32 %v5379_v55, %v7196_v59  ;;  %4181 = vmatpush1.bf16.msra.mxu1 %v4180_v10  ;;  %v7194_v28 = vand.u32 4294901760, %v5387_v33 }
  0xc9   : > { %v4182_v57 = vpack.c.bf16 %v1507_v11, %v1495_v7  ;;  %v1512_v43 = vsub.f32 %v5381_v3, %v7193_v39  ;;  %v7195_v13 = vand.u32 4294901760, %v7452_v48  ;;  %v658_v5 = vand.u32 4294901760, %v657_v38 }
  0xca   : > { %3991 = vmatprep.subr.bf16.mxu0 %v3990_v19  ;;  %v1501_v34 = vand.u32 4294901760, %v1500_v32  ;;  %v7197_v61 = vand.u32 4294901760, %v5393_v16  ;;  %v7198_v30 = vand.u32 4294901760, %v5399_v56  ;;  %v663_v11 = vsub.f32 %v5387_v33, %v7194_v28 }
  0xcb   : > { %4183 = vmatprep.subr.bf16.mxu1 %v4182_v57  ;;  %v1513_v31 = vand.u32 4294901760, %v1512_v43  ;;  %v675_v10 = vsub.f32 %v7452_v48, %v7195_v13  ;;  %v7204_v7 = vand.u32 4294901760, %v5403_v23  ;;  %v3992_v39 = vpack.c.bf16 %v658_v5, %v646_v24 }
  0xcc   : > { %v1518_v19 = vsub.f32 %v5393_v16, %v7197_v61  ;;  %v1530_v57 = vsub.f32 %v5399_v56, %v7198_v30  ;;  %v7203_v38 = vand.u32 4294901760, %v5406_v27  ;;  %v664_v43 = vand.u32 4294901760, %v663_v11 }
  0xcd   : > { %v4184_v32 = vpack.c.bf16 %v1513_v31, %v1501_v34  ;;  %v676_v28 = vand.u32 4294901760, %v675_v10  ;;  %v669_v13 = vsub.f32 %v5403_v23, %v7204_v7  ;;  %3993 = vmatpush1.bf16.msra.mxu0 %v3992_v39  ;;  %v7201_v61 = vand.u32 4294901760, %v5410_v4 }
  0xce   : > { %v1519_v59 = vand.u32 4294901760, %v1518_v19  ;;  %v1531_v24 = vand.u32 4294901760, %v1530_v57  ;;  %v681_v5 = vsub.f32 %v5406_v27, %v7203_v38  ;;  %v7202_v31 = vand.u32 4294901760, %v5412_v25  ;;  %v7458_v38 = vld [vmem:[#allocation37_spill] sm:$0xff] }
  0xcf   : > { %4185 = vmatpush1.bf16.msra.mxu1 %v4184_v32  ;;  %v3994_v30 = vpack.c.bf16 %v676_v28, %v664_v43  ;;  %v670_v56 = vand.u32 4294901760, %v669_v13  ;;  %v1524_v10 = vsub.f32 %v5410_v4, %v7201_v61  ;;  %v3998_v19 = vpack.c.bf16 %v5194_v18, %v5192_v17  ;;  %v7453_v32 = vld [vmem:[#allocation15_spill] sm:$0xff] }
  0xd0   : > { %v4186_v34 = vpack.c.bf16 %v1531_v24, %v1519_v59  ;;  %v682_v11 = vand.u32 4294901760, %v681_v5  ;;  %v1536_v39 = vsub.f32 %v5412_v25, %v7202_v31  ;;  %v7454_v59 = vld [vmem:[#allocation17_spill] sm:$0xff]  ;;  %v7455_v24 = vld [vmem:[#allocation19_spill] sm:$0xff]  ;;  %v7459_v7 = vmov 0.0  }
  0xd1   : > { %3995 = vmatprep.subr.bf16.mxu0 %v3994_v30  ;;  %v1525_v28 = vand.u32 4294901760, %v1524_v10  ;;  %v4190_v43 = vpack.c.bf16 %v7454_v59, %v7453_v32  ;;  %v4000_v5 = vpack.c.bf16 %v7455_v24, %v5204_v26  ;;  %v4002_v30 = vpack.c.bf16 %v5221_v47, %v5217_v42  ;;  %v7456_v31 = vld [vmem:[#allocation77_spill] sm:$0xff] }
  0xd2   : > { %4187 = vmatprep.subr.bf16.mxu1 %v4186_v34  ;;  %v3996_v57 = vpack.c.bf16 %v682_v11, %v670_v56  ;;  %v1537_v13 = vand.u32 4294901760, %v1536_v39  ;;  %v4192_v56 = vpack.c.bf16 %v5215_v41, %v5213_v40  ;;  %v4194_v34 = vpack.c.bf16 %v5228_v51, %v5225_v49 }
  0xd3   : > { %v4004_v11 = vpack.c.bf16 %v5236_v62, %v5230_v53  ;;  %v4196_v10 = vpack.c.bf16 %v5242_v6, %v5238_v63  ;;  %v4006_v39 = vpack.c.bf16 %v5249_v12, %v5246_v8  ;;  %v7460_v18 = vand.u32 4294901760, %v7453_v32 }
  0xd4   : > { %3997 = vmatpush1.bf16.msra.mxu0 %v3996_v57  ;;  %v4188_v61 = vpack.c.bf16 %v1537_v13, %v1525_v28  ;;  %v4200_v57 = vpack.c.bf16 %v5270_v50, %v5268_v45  ;;  %v4010_v28 = vpack.c.bf16 %v5278_v58, %v5274_v54  ;;  %v4202_v13 = vpack.c.bf16 %v5285_v2, %v5282_v60 }
  0xd5   : > { %3999 = vmatprep.subr.bf16.mxu0 %v3998_v19  ;;  %v4008_v19 = vpack.c.bf16 %v5264_v36, %v5262_v35  ;;  %v7461_v17 = vand.u32 4294901760, %v7454_v59  ;;  %v7462_v4 = vand.u32 4294901760, %v5204_v26  ;;  %v7464_v23 = vand.u32 4294901760, %v5213_v40 }
  0xd6   : > { %4189 = vmatpush1.bf16.msra.mxu1 %v4188_v61  ;;  %v4198_v61 = vpack.c.bf16 %v5255_v15, %v5253_v14  ;;  %v7465_v16 = vand.u32 4294901760, %v5215_v41  ;;  %v7466_v32 = vand.u32 4294901760, %v5217_v42  ;;  %v7468_v26 = vand.u32 4294901760, %v5225_v49 }
  0xd7   : > { %718 = vmatmul.mubr.f32.vlgmr.msra.gmra.mrb[0].mxu0 %v7456_v31  ;;  %4191 = vmatprep.subr.bf16.mxu1 %v4190_v43  ;;  %v4012_v43 = vpack.c.bf16 %v5292_v37, %v5288_v22  ;;  %v5726_v25 = vpack.c.bf16 %v7461_v17, %v7460_v18  ;;  %v7467_v17 = vand.u32 4294901760, %v5221_v47  ;;  %v7469_v59 = vand.u32 4294901760, %v5228_v51 }
  0xd8   : > { %4001 = vmatpush1.bf16.msra.mxu0 %v4000_v5  ;;  %v7457_v5 = vld [vmem:[#allocation36_spill] sm:$0xff]  ;;  %852 = vmatprep.mubr.f32.mxu0 %v7459_v7  ;;  %v5739_v48 = vpack.c.bf16 %v7465_v16, %v7464_v23  ;;  %v7470_v40 = vand.u32 4294901760, %v5230_v53  ;;  %v7471_v41 = vand.u32 4294901760, %v5236_v62  ;;  %v7472_v42 = vand.u32 4294901760, %v5238_v63 }
  0xd9   : > { %4003 = vmatprep.subr.bf16.mxu0 %v4002_v30  ;;  %1573 = vmatmul.mubr.f32.vlgmr.msra.gmra.mrb[0].mxu1 %v7456_v31  ;;  %v4014_v30 = vpack.c.bf16 %v7458_v38, %v7457_v5  ;;  %v7463_v31 = vand.u32 4294901760, %v7455_v24  ;;  %v5745_v18 = vpack.c.bf16 %v7467_v17, %v7466_v32  ;;  %v7473_v47 = vand.u32 4294901760, %v5242_v6 }
  0xda   : > { %4193 = vmatpush1.bf16.msra.mxu1 %v4192_v56  ;;  %1707 = vmatprep.mubr.f32.mxu1 %v7459_v7  ;;  %v5757_v23 = vpack.c.bf16 %v7471_v41, %v7470_v40  ;;  %v7475_v49 = vand.u32 4294901760, %v5249_v12  ;;  %v7476_v24 = vand.u32 4294901760, %v5253_v14  ;;  %v7477_v53 = vand.u32 4294901760, %v5255_v15  ;;  %v7494_v41 = vld [vmem:[#allocation38_spill] sm:$0xff] }
  0xdb   : > { %v5733_v27 = vpack.c.bf16 %v7463_v31, %v7462_v4  ;;  %4195 = vmatprep.subr.bf16.mxu1 %v4194_v34  ;;  %v5751_v4 = vpack.c.bf16 %v7469_v59, %v7468_v26  ;;  %v5763_v16 = vpack.c.bf16 %v7473_v47, %v7472_v42  ;;  %v7474_v31 = vand.u32 4294901760, %v5246_v8  ;;  %v7490_v59 = vld [vmem:[#allocation34_spill] sm:$0xff] }
  0xdc   : > { %4005 = vmatpush1.bf16.msra.mxu0 %v4004_v11  ;;  %v5775_v62 = vpack.c.bf16 %v7477_v53, %v7476_v24  ;;  %v7478_v56 = vand.u32 4294901760, %v5262_v35  ;;  %v7479_v63 = vand.u32 4294901760, %v5264_v36  ;;  %v7480_v34 = vand.u32 4294901760, %v5268_v45  ;;  %v7497_v47 = vld [vmem:[#allocation42_spill] sm:$0xff] }
  0xdd   : > { %4007 = vmatprep.subr.bf16.mxu0 %v4006_v39  ;;  %v5769_v51 = vpack.c.bf16 %v7475_v49, %v7474_v31  ;;  %v7481_v8 = vand.u32 4294901760, %v5270_v50  ;;  %v7482_v12 = vand.u32 4294901760, %v5274_v54  ;;  %v7483_v14 = vand.u32 4294901760, %v5278_v58  ;;  %v7488_v50 = vld [vmem:[#allocation33_spill] sm:$0xff]  ;;  %v7499_v49 = vld [vmem:[#allocation43_spill] sm:$0xff] }
  0xde   : > { %v5781_v6 = vpack.c.bf16 %v7479_v63, %v7478_v56  ;;  %v7484_v15 = vand.u32 4294901760, %v5282_v60  ;;  %v7485_v35 = vand.u32 4294901760, %v5285_v2  ;;  %v7486_v36 = vand.u32 4294901760, %v5288_v22  ;;  %4197 = vmatpush1.bf16.msra.mxu1 %v4196_v10  ;;  %v7502_v56 = vld [vmem:[#allocation45_spill] sm:$0xff]  ;;  %v7504_v63 = vld [vmem:[#allocation46_spill] sm:$0xff] }
  0xdf   : > { %v5787_v11 = vpack.c.bf16 %v7481_v8, %v7480_v34  ;;  %v5793_v39 = vpack.c.bf16 %v7483_v14, %v7482_v12  ;;  %v7487_v45 = vand.u32 4294901760, %v5292_v37  ;;  %v7489_v26 = vand.u32 4294901760, %v7488_v50  ;;  %4199 = vmatprep.subr.bf16.mxu1 %v4198_v61  ;;  %v7509_v12 = vld [vmem:[#allocation49_spill] sm:$0xff] }
  0xe0   : > { %v5799_v32 = vpack.c.bf16 %v7485_v35, %v7484_v15  ;;  %v7491_v54 = vand.u32 4294901760, %v7490_v59  ;;  %v7492_v58 = vand.u32 4294901760, %v7457_v5  ;;  %v7493_v60 = vand.u32 4294901760, %v7458_v38  ;;  %4009 = vmatpush1.bf16.msra.mxu0 %v4008_v19  ;;  %v7507_v38 = vld [vmem:[#allocation48_spill] sm:$0xff]  ;;  %v7512_v35 = vld [vmem:[#allocation50_spill] sm:$0xff] }
  0xe1   : > { %v5805_v17 = vpack.c.bf16 %v7487_v45, %v7486_v36  ;;  %v7495_v42 = vand.u32 4294901760, %v7494_v41  ;;  %v7496_v22 = vand.u32 4294901760, %v7437_v52  ;;  %v7498_v31 = vand.u32 4294901760, %v7497_v47  ;;  %v7514_v45 = vld [vmem:[#allocation52_spill] sm:$0xff]  ;;  %4011 = vmatprep.subr.bf16.mxu0 %v4010_v28 }
  0xe2   : > { %v5811_v40 = vpack.c.bf16 %v7491_v54, %v7489_v26  ;;  %v5817_v2 = vpack.c.bf16 %v7493_v60, %v7492_v58  ;;  %v7500_v24 = vand.u32 4294901760, %v7499_v49  ;;  %v7503_v10 = vand.u32 4294901760, %v7502_v56  ;;  %4201 = vmatpush1.bf16.msra.mxu1 %v4200_v57 }
  0xe3   : > { %v5823_v37 = vpack.c.bf16 %v7496_v22, %v7495_v42  ;;  %v7505_v5 = vand.u32 4294901760, %v7504_v63  ;;  %v7508_v8 = vand.u32 4294901760, %v7507_v38  ;;  %v7510_v14 = vand.u32 4294901760, %v7509_v12  ;;  %4203 = vmatprep.subr.bf16.mxu1 %v4202_v13 }
  0xe4   : > { %v5829_v53 = vpack.c.bf16 %v7500_v24, %v7498_v31  ;;  %v7513_v36 = vand.u32 4294901760, %v7512_v35  ;;  %v7515_v26 = vand.u32 4294901760, %v7514_v45  ;;  %v7517_v58 = vand.u32 4294901760, %v7445_v0  ;;  %v7524_v24 = vld [vmem:[#allocation61_spill] sm:$0xff]  ;;  %4013 = vmatpush1.bf16.msra.mxu0 %v4012_v43 }
  0xe5   : > { %v5835_v34 = vpack.c.bf16 %v7505_v5, %v7503_v10  ;;  %v5841_v15 = vpack.c.bf16 %v7510_v14, %v7508_v8  ;;  %v7518_v60 = vand.u32 4294901760, %v7446_v44  ;;  %v7520_v61 = vand.u32 4294901760, %v7447_v9  ;;  %v7527_v8 = vld [vmem:[#allocation62_spill] sm:$0xff]  ;;  %4015 = vmatprep.subr.bf16.mxu0 %v4014_v30 }
  0xe6   : > { %7501 = vst [vmem:[#allocation40_spill] sm:$0xff] %v5829_v53  ;;  %v5847_v54 = vpack.c.bf16 %v7515_v26, %v7513_v36  ;;  %v7521_v19 = vand.u32 4294901760, %v7448_v21  ;;  %v7523_v31 = vand.u32 4294901760, %v7449_v20  ;;  %v7525_v10 = vand.u32 4294901760, %v7524_v24 }
  0xe7   : > { %7506 = vst [vmem:[#allocation54_spill] sm:$0xff] %v5835_v34  ;;  %7511 = vst [vmem:[#allocation55_spill] sm:$0xff] %v5841_v15  ;;  %v5853_v42 = vpack.c.bf16 %v7518_v60, %v7517_v58  ;;  %v7528_v14 = vand.u32 4294901760, %v7527_v8  ;;  %v7529_v36 = vand.u32 4294901760, %v5369_v1  ;;  %v7531_v28 = vand.u32 4294901760, %v5373_v29 }
  0xe8   : > { %7516 = vst [vmem:[#allocation57_spill] sm:$0xff] %v5847_v54  ;;  %v5859_v22 = vpack.c.bf16 %v7521_v19, %v7520_v61  ;;  %v5865_v5 = vpack.c.bf16 %v7525_v10, %v7523_v31  ;;  %v7532_v58 = vand.u32 4294901760, %v5375_v46  ;;  %v7534_v61 = vand.u32 4294901760, %v5379_v55  ;;  %v7538_v10 = vld [vmem:[#allocation67_spill] sm:$0xff] }
  0xe9   : > { %7519 = vst [vmem:[#allocation58_spill] sm:$0xff] %v5853_v42  ;;  %v5871_v26 = vpack.c.bf16 %v7529_v36, %v7528_v14  ;;  %v7535_v19 = vand.u32 4294901760, %v5381_v3  ;;  %v7537_v31 = vand.u32 4294901760, %v5387_v33  ;;  %v7541_v14 = vld [vmem:[#allocation68_spill] sm:$0xff]  ;;  %v4018_v57 = vpack.c.bf16 %v7509_v12, %v7507_v38  ;;  %v7563_v38 = vld [vmem:[#allocation26_spill] sm:$0xff]  ;;  %v7564_v12 = vld [vmem:[#allocation27_spill] sm:$0xff] }
  0xea   : > { %7522 = vst [vmem:[#allocation60_spill] sm:$0xff] %v5859_v22  ;;  %7526 = vst [vmem:[#allocation15_spill] sm:$0xff] %v5865_v5  ;;  %v5877_v60 = vpack.c.bf16 %v7532_v58, %v7531_v28  ;;  %v7539_v5 = vand.u32 4294901760, %v7538_v10  ;;  %v7542_v36 = vand.u32 4294901760, %v7541_v14  ;;  %v7545_v28 = vld [vmem:[#allocation72_spill] sm:$0xff]  ;;  %v4210_v13 = vpack.c.bf16 %v7514_v45, %v7512_v35  ;;  %v7567_v45 = vld [vmem:[#allocation30_spill] sm:$0xff] }
  0xeb   : > { %7530 = vst [vmem:[#allocation17_spill] sm:$0xff] %v5871_v26  ;;  %v5883_v22 = vpack.c.bf16 %v7535_v19, %v7534_v61  ;;  %v7543_v26 = vld [vmem:[#allocation70_spill] sm:$0xff]  ;;  %v7546_v58 = vand.u32 4294901760, %v7545_v28  ;;  %v4204_v61 = vpack.c.bf16 %v7490_v59, %v7488_v50  ;;  %v7549_v19 = vld [vmem:[#allocation75_spill] sm:$0xff]  ;;  %v4208_v50 = vpack.c.bf16 %v7504_v63, %v7502_v56  ;;  %v7561_v56 = vld [vmem:[#allocation25_spill] sm:$0xff] }
  0xec   : > { %7533 = vst [vmem:[#allocation19_spill] sm:$0xff] %v5877_v60  ;;  %v5889_v42 = vpack.c.bf16 %v7539_v5, %v7537_v31  ;;  %v7544_v54 = vand.u32 4294901760, %v7543_v26  ;;  %v7547_v60 = vld [vmem:[#allocation73_spill] sm:$0xff]  ;;  %v7551_v5 = vld [vmem:[#allocation76_spill] sm:$0xff]  ;;  %v4020_v43 = vpack.c.bf16 %v7446_v44, %v7445_v0  ;;  %v4212_v30 = vpack.c.bf16 %v7448_v21, %v7447_v9 }
  0xed   : > { %7536 = vst [vmem:[#allocation36_spill] sm:$0xff] %v5883_v22  ;;  %v7548_v15 = vand.u32 4294901760, %v7547_v60  ;;  %v7550_v22 = vand.u32 4294901760, %v7549_v19  ;;  %v7552_v31 = vand.u32 4294901760, %v7551_v5  ;;  %4205 = vmatpush1.bf16.msra.mxu1 %v4204_v61  ;;  %v4214_v59 = vpack.c.bf16 %v5369_v1, %v7527_v8  ;;  %v7553_v1 = vld [vmem:[#allocation12_spill] sm:$0xff]  ;;  %v7577_v61 = vld [vmem:[#allocation59_spill] sm:$0xff] }
  0xee   : > { %7540 = vst [vmem:[#allocation37_spill] sm:$0xff] %v5889_v42  ;;  %v5895_v34 = vpack.c.bf16 %v7544_v54, %v7542_v36  ;;  %v4206_v54 = vpack.c.bf16 %v7437_v52, %v7494_v41  ;;  %v4016_v36 = vpack.c.bf16 %v7499_v49, %v7497_v47  ;;  %v4022_v52 = vpack.c.bf16 %v7524_v24, %v7449_v20  ;;  %v7558_v20 = vld [vmem:[#allocation20_spill] sm:$0xff]  ;;  %v7559_v47 = vld [vmem:[#allocation22_spill] sm:$0xff]  ;;  %v7560_v49 = vld [vmem:[#allocation23_spill] sm:$0xff] }
  0xef   : > { %v5901_v53 = vpack.c.bf16 %v7548_v15, %v7546_v58  ;;  %v5909_v42 = vpack.c.bf16 %v7552_v31, %v7550_v22  ;;  %v4024_v41 = vpack.c.bf16 %v5375_v46, %v5373_v29  ;;  %v4026_v0 = vpack.c.bf16 %v7538_v10, %v5387_v33  ;;  %v7554_v29 = vld [vmem:[#allocation78_spill] sm:$0xff]  ;;  %v7557_v33 = vld [vmem:[#allocation21_spill] sm:$0xff]  ;;  %v7562_v63 = vld [vmem:[#allocation24_spill] sm:$0xff] }
  0xf0   : > { %4207 = vmatprep.subr.bf16.mxu1 %v4206_v54  ;;  %4017 = vmatpush1.bf16.msra.mxu0 %v4016_v36  ;;  %v4216_v44 = vpack.c.bf16 %v5381_v3, %v5379_v55  ;;  %v4218_v9 = vpack.c.bf16 %v7543_v26, %v7541_v14  ;;  %v4028_v21 = vpack.c.bf16 %v7547_v60, %v7545_v28  ;;  %v7555_v55 = vld [vmem:[#allocation16_spill] sm:$0xff]  ;;  %v7556_v3 = vld [vmem:[#allocation18_spill] sm:$0xff]  ;;  %v7565_v15 = vld [vmem:[#allocation29_spill] sm:$0xff] }
  0xf1   : > { %4019 = vmatprep.subr.bf16.mxu0 %v4018_v57  ;;  %4209 = vmatpush1.bf16.msra.mxu1 %v4208_v50  ;;  %v4220_v46 = vpack.c.bf16 %v7551_v5, %v7549_v19  ;;  %v7566_v35 = vld [vmem:[#allocation28_spill] sm:$0xff]  ;;  %v7568_v22 = vld [vmem:[#allocation31_spill] sm:$0xff]  ;;  %v7572_v60 = vld [vmem:[#allocation41_spill] sm:$0xff] }
  0xf2   : > { %4211 = vmatprep.subr.bf16.mxu1 %v4210_v13  ;;  %v7569_v24 = vld [vmem:[#allocation35_spill] sm:$0xff]  ;;  %v7570_v8 = vld [vmem:[#allocation32_spill] sm:$0xff]  ;;  %v7576_v58 = vld [vmem:[#allocation53_spill] sm:$0xff] }
  0xf3   : > { %v7571_v26 = vld [vmem:[#allocation39_spill] sm:$0xff]  ;;  %v7574_v14 = vld [vmem:[#allocation44_spill] sm:$0xff]  ;;  %v7581_v54 = vld [vmem:[#allocation66_spill] sm:$0xff] }
  0xf4   : > { %4021 = vmatpush1.bf16.msra.mxu0 %v4020_v43  ;;  %v7573_v10 = vld [vmem:[#allocation47_spill] sm:$0xff]  ;;  %v7578_v19 = vld [vmem:[#allocation56_spill] sm:$0xff]  ;;  %v7582_v36 = vld [vmem:[#allocation13_spill] sm:$0xff] }
  0xf5   : > { %4023 = vmatprep.subr.bf16.mxu0 %v4022_v52  ;;  %4213 = vmatpush1.bf16.msra.mxu1 %v4212_v30  ;;  %v7575_v28 = vld [vmem:[#allocation51_spill] sm:$0xff]  ;;  %v7580_v31 = vld [vmem:[#allocation64_spill] sm:$0xff]  ;;  %v7583_v57 = vand.u32 4294901760, %v7582_v36  ;;  %v7584_v50 = vld [vmem:[#allocation14_spill] sm:$0xff] }
  0xf6   : > { %4215 = vmatprep.subr.bf16.mxu1 %v4214_v59  ;;  %v7579_v5 = vld [vmem:[#allocation63_spill] sm:$0xff]  ;;  %v7585_v13 = vand.u32 4294901760, %v7584_v50  ;;  %v7586_v52 = vld [vmem:[#allocation65_spill] sm:$0xff]  ;;  %v237_v50 = vld [vmem:[#allocation5 + $0xb8] sm:$0xff] }
  0xf7   : > { %v7587_v30 = vld [vmem:[#allocation69_spill] sm:$0xff]  ;;  %v7588_v59 = vld [vmem:[#allocation71_spill] sm:$0xff] }
  0xf8   : > { %4025 = vmatpush1.bf16.msra.mxu0 %v4024_v41  ;;  %v4062_v43 = vpack.c.bf16 %v7585_v13, %v7583_v57  ;;  %v7589_v41 = vld [vmem:[#allocation74_spill] sm:$0xff] }
  0xf9   : > { %4027 = vmatprep.subr.bf16.mxu0 %v4026_v0  ;;  %4217 = vmatpush1.bf16.msra.mxu1 %v4216_v44  ;;  %v7590_v0 = vld [vmem:[#allocation79_spill] sm:$0xff]  ;;  %v7591_v44 = vld [vmem:[#allocation40_spill] sm:$0xff]  ;;  %v245_v13 = vld [vmem:[#allocation5 + $0xf8] sm:$0xff] }
  0xfa   : > { %4219 = vmatprep.subr.bf16.mxu1 %v4218_v9  ;;  %v235_v9 = vld [vmem:[#allocation5 + $0xa8] sm:$0xff] }
  0xfc   : > { %4029 = vmatpush1.bf16.msra.mxu0 %v4028_v21  ;;  %v243_v21 = vld [vmem:[#allocation5 + $0xe8] sm:$0xff] }
  0xfd   : > { %4031 = vmatprep.subr.bf16.mxu0 %v7553_v1  ;;  %4221 = vmatpush1.bf16.msra.mxu1 %v4220_v46  ;;  %v7592_v46 = vld [vmem:[#allocation55_spill] sm:$0xff] }
  0xfe   : > { %4223 = vmatprep.subr.bf16.mxu1 %v7555_v55 }
  0xff   : > { %855 = vmatmul.mubr.f32.vlgmr.msra.gmra.mrb[0].mxu0 %v7554_v29 }
 0x100   : > { %4033 = vmatpush1.bf16.msra.mxu0 %v7556_v3  ;;  %957 = vmatprep.mubr.f32.mxu0 %v7459_v7 }
 0x101   : > { %4035 = vmatprep.subr.bf16.mxu0 %v7557_v33  ;;  %1710 = vmatmul.mubr.f32.vlgmr.msra.gmra.mrb[0].mxu1 %v7554_v29  ;;  %v2106_v29 = vand.u32 4294901760, %v243_v21 }
 0x102   : > { %4225 = vmatpush1.bf16.msra.mxu1 %v7558_v20  ;;  %1812 = vmatprep.mubr.f32.mxu1 %v7459_v7 }
 0x103   : > { %4227 = vmatprep.subr.bf16.mxu1 %v7559_v47 }
 0x104   : > { %4037 = vmatpush1.bf16.msra.mxu0 %v7560_v49 }
 0x105   : > { %4039 = vmatprep.subr.bf16.mxu0 %v7561_v56 }
 0x106   : > { %4229 = vmatpush1.bf16.msra.mxu1 %v7562_v63 }
 0x107   : > { %4231 = vmatprep.subr.bf16.mxu1 %v7563_v38 }
 0x108   : > { %4041 = vmatpush1.bf16.msra.mxu0 %v7564_v12 }
 0x109   : > { %4043 = vmatprep.subr.bf16.mxu0 %v7565_v15 }
 0x10a   : > { %4233 = vmatpush1.bf16.msra.mxu1 %v7566_v35 }
 0x10b   : > { %4235 = vmatprep.subr.bf16.mxu1 %v7567_v45 }
 0x10c   : > { %4045 = vmatpush1.bf16.msra.mxu0 %v7568_v22 }
 0x10d   : > { %4047 = vmatprep.subr.bf16.mxu0 %v7569_v24 }
 0x10e   : > { %4237 = vmatpush1.bf16.msra.mxu1 %v7570_v8 }
 0x10f   : > { %4239 = vmatprep.subr.bf16.mxu1 %v7571_v26 }
 0x110   : > { %4049 = vmatpush1.bf16.msra.mxu0 %v7572_v60 }
 0x111   : > { %4051 = vmatprep.subr.bf16.mxu0 %v7573_v10 }
 0x112   : > { %4241 = vmatpush1.bf16.msra.mxu1 %v7574_v14 }
 0x113   : > { %4243 = vmatprep.subr.bf16.mxu1 %v7575_v28 }
 0x114   : > { %4053 = vmatpush1.bf16.msra.mxu0 %v7576_v58 }
 0x115   : > { %4055 = vmatprep.subr.bf16.mxu0 %v7577_v61 }
 0x116   : > { %4245 = vmatpush1.bf16.msra.mxu1 %v7578_v19 }
 0x117   : > { %4247 = vmatprep.subr.bf16.mxu1 %v7579_v5  ;;  %v251_v5 = vld [vmem:[#allocation5 + $0x128] sm:$0xff] }
 0x118   : > { %4057 = vmatpush1.bf16.msra.mxu0 %v7580_v31  ;;  %v2961_v31 = vand.u32 4294901760, %v245_v13 }
 0x119   : > { %4059 = vmatprep.subr.bf16.mxu0 %v7581_v54  ;;  %v2957_v54 = vand.u32 4294901760, %v237_v50 }
 0x11a   : > { %4249 = vmatpush1.bf16.msra.mxu1 %v7586_v52  ;;  %v236_v52 = vld [vmem:[#allocation5 + $0xb0] sm:$0xff] }
 0x11b   : > { %4251 = vmatprep.subr.bf16.mxu1 %v7587_v30  ;;  %v7598_v30 = vld [vmem:[#allocation57_spill] sm:$0xff] }
 0x11c   : > { %4061 = vmatpush1.bf16.msra.mxu0 %v7588_v59  ;;  %v242_v59 = vld [vmem:[#allocation5 + $0xe0] sm:$0xff] }
 0x11d   : > { %4063 = vmatprep.subr.bf16.mxu0 %v4062_v43  ;;  %v7595_v43 = vld [vmem:[#allocation54_spill] sm:$0xff] }
 0x11e   : > { %4253 = vmatpush1.bf16.msra.mxu1 %v7589_v41  ;;  %v234_v41 = vld [vmem:[#allocation5 + $0xa0] sm:$0xff] }
 0x11f   : > { %961 = vmatmul.mubr.f32.vlgmr.msra.gmra.mrb[0].mxu0 %v7590_v0  ;;  %4255 = vmatprep.subr.bf16.mxu1 %v5726_v25  ;;  %v227_v25 = vld [vmem:[#allocation5 + $0x68] sm:$0xff] }
 0x120   : > { %4065 = vmatpush1.bf16.msra.mxu0 %v5733_v27  ;;  %1127 = vmatprep.mubr.f32.mxu0 %v7459_v7  ;;  %v219_v27 = vld [vmem:[#allocation5 + $0x28] sm:$0xff] }
 0x121   : > { %4067 = vmatprep.subr.bf16.mxu0 %v5745_v18  ;;  %1816 = vmatmul.mubr.f32.vlgmr.msra.gmra.mrb[0].mxu1 %v7590_v0  ;;  %v229_v18 = vld [vmem:[#allocation5 + $0x78] sm:$0xff] }
 0x122   : > { %4257 = vmatpush1.bf16.msra.mxu1 %v5739_v48  ;;  %1982 = vmatprep.mubr.f32.mxu1 %v7459_v7  ;;  %v221_v48 = vld [vmem:[#allocation5 + $0x38] sm:$0xff] }
 0x123   : > { %4259 = vmatprep.subr.bf16.mxu1 %v5751_v4  ;;  %v218_v4 = vld [vmem:[#allocation5 + $0x20] sm:$0xff] }
 0x124   : > { %4069 = vmatpush1.bf16.msra.mxu0 %v5757_v23  ;;  %v226_v23 = vld [vmem:[#allocation5 + $0x60] sm:$0xff] }
 0x125   : > { %4071 = vmatprep.subr.bf16.mxu0 %v5769_v51  ;;  %v2098_v51 = vand.u32 4294901760, %v227_v25 }
 0x126   : > { %4261 = vmatpush1.bf16.msra.mxu1 %v5763_v16  ;;  %v2094_v16 = vand.u32 4294901760, %v219_v27 }
 0x127   : > { %4263 = vmatprep.subr.bf16.mxu1 %v5775_v62  ;;  %v2949_v62 = vand.u32 4294901760, %v221_v48  ;;  %v6009_v0 = vsub.f32 %v227_v25, %v2098_v51  ;;  %v7603_v25 = vld [vmem:[#allocation15_spill] sm:$0xff] }
 0x128   : > { %4073 = vmatpush1.bf16.msra.mxu0 %v5781_v6  ;;  %v2953_v6 = vand.u32 4294901760, %v229_v18  ;;  %v6006_v36 = vsub.f32 %v219_v27, %v2094_v16 }
 0x129   : > { %4075 = vmatprep.subr.bf16.mxu0 %v5793_v39  ;;  %v220_v39 = vld [vmem:[#allocation5 + $0x30] sm:$0xff]  ;;  %7596 = vst [vmem:[#allocation38_spill] sm:$0xff] %v6009_v0  ;;  %v6015_v27 = vsub.f32 %v221_v48, %v2949_v62 }
 0x12a   : > { %4265 = vmatpush1.bf16.msra.mxu1 %v5787_v11  ;;  %v228_v11 = vld [vmem:[#allocation5 + $0x70] sm:$0xff]  ;;  %7594 = vst [vmem:[#allocation34_spill] sm:$0xff] %v6006_v36  ;;  %v2951_v57 = vand.u32 4294901760, %v220_v39 }
 0x12b   : > { %4267 = vmatprep.subr.bf16.mxu1 %v5799_v32  ;;  %v2096_v32 = vand.u32 4294901760, %v218_v4  ;;  %7600 = vst [vmem:[#allocation43_spill] sm:$0xff] %v6015_v27  ;;  %v7622_v27 = vld [vmem:[#allocation36_spill] sm:$0xff] }
 0x12c   : > { %4077 = vmatpush1.bf16.msra.mxu0 %v5805_v17  ;;  %v2100_v17 = vand.u32 4294901760, %v226_v23  ;;  %v6028_v48 = vsub.f32 %v220_v39, %v2951_v57  ;;  %v6039_v39 = vsub.f32 %v243_v21, %v2106_v29 }
 0x12d   : > { %4079 = vmatprep.subr.bf16.mxu0 %v5817_v2  ;;  %v6004_v2 = vpack.c.bf16 %v2098_v51, %v2094_v16  ;;  %v6017_v16 = vsub.f32 %v229_v18, %v2953_v6  ;;  %v6022_v51 = vsub.f32 %v218_v4, %v2096_v32  ;;  %v2104_v18 = vand.u32 4294901760, %v234_v41 }
 0x12e   : > { %4269 = vmatpush1.bf16.msra.mxu1 %v5811_v40  ;;  %v2955_v40 = vand.u32 4294901760, %v228_v11  ;;  %7607 = vst [vmem:[#allocation52_spill] sm:$0xff] %v6028_v48  ;;  %v2959_v4 = vand.u32 4294901760, %v236_v52  ;;  %7614 = vst [vmem:[#allocation68_spill] sm:$0xff] %v6039_v39  ;;  %v250_v48 = vld [vmem:[#allocation5 + $0x120] sm:$0xff]  ;;  %v267_v39 = vld [vmem:[#allocation5 + $0x1a8] sm:$0xff] }
 0x12f   : > { %4271 = vmatprep.subr.bf16.mxu1 %v5823_v37  ;;  %7593 = vst [vmem:[#allocation33_spill] sm:$0xff] %v6004_v2  ;;  %v6011_v37 = vpack.c.bf16 %v2953_v6, %v2949_v62  ;;  %7601 = vst [vmem:[#allocation45_spill] sm:$0xff] %v6017_v16  ;;  %v6019_v2 = vpack.c.bf16 %v2100_v17, %v2096_v32  ;;  %v2108_v62 = vand.u32 4294901760, %v242_v59  ;;  %v7608_v6 = vld [vmem:[#allocation60_spill] sm:$0xff] }
 0x130   : > { %4081 = vmatpush1.bf16.msra.mxu0 %v7591_v44  ;;  %v2102_v44 = vand.u32 4294901760, %v235_v9  ;;  %7604 = vst [vmem:[#allocation48_spill] sm:$0xff] %v6022_v51  ;;  %v6026_v19 = vpack.c.bf16 %v2955_v40, %v2951_v57  ;;  %v2110_v57 = vand.u32 4294901760, %v251_v5  ;;  %v6048_v16 = vsub.f32 %v234_v41, %v2104_v18 }
 0x131   : > { %4083 = vmatprep.subr.bf16.mxu0 %v7592_v46  ;;  %7597 = vst [vmem:[#allocation42_spill] sm:$0xff] %v6011_v37  ;;  %v7599_v46 = vld [vmem:[#allocation58_spill] sm:$0xff]  ;;  %7602 = vst [vmem:[#allocation46_spill] sm:$0xff] %v6019_v2  ;;  %v6024_v37 = vsub.f32 %v226_v23, %v2100_v17 }
 0x132   : > { %4273 = vmatpush1.bf16.msra.mxu1 %v7595_v43  ;;  %v244_v43 = vld [vmem:[#allocation5 + $0xf0] sm:$0xff]  ;;  %7606 = vst [vmem:[#allocation50_spill] sm:$0xff] %v6026_v19  ;;  %v6033_v2 = vpack.c.bf16 %v2106_v29, %v2102_v44  ;;  %v253_v23 = vld [vmem:[#allocation5 + $0x138] sm:$0xff]  ;;  %v6037_v51 = vsub.f32 %v235_v9, %v2102_v44  ;;  %7619 = vst [vmem:[#allocation75_spill] sm:$0xff] %v6048_v16  ;;  %v6050_v9 = vpack.c.bf16 %v2108_v62, %v2104_v18 }
 0x133   : > { %4275 = vmatprep.subr.bf16.mxu1 %v7598_v30  ;;  %7605 = vst [vmem:[#allocation49_spill] sm:$0xff] %v6024_v37  ;;  %v259_v30 = vld [vmem:[#allocation5 + $0x168] sm:$0xff]  ;;  %v2963_v32 = vand.u32 4294901760, %v244_v43  ;;  %v261_v17 = vld [vmem:[#allocation5 + $0x178] sm:$0xff]  ;;  %v7612_v37 = vld [vmem:[#allocation19_spill] sm:$0xff]  ;;  %v6052_v29 = vsub.f32 %v242_v59, %v2108_v62  ;;  %v2965_v21 = vand.u32 4294901760, %v253_v23 }
 0x134   : > { %4085 = vmatpush1.bf16.msra.mxu0 %v7599_v46  ;;  %v6031_v46 = vsub.f32 %v228_v11, %v2955_v40  ;;  %7610 = vst [vmem:[#allocation62_spill] sm:$0xff] %v6033_v2  ;;  %7613 = vst [vmem:[#allocation67_spill] sm:$0xff] %v6037_v51  ;;  %v2114_v19 = vand.u32 4294901760, %v259_v30  ;;  %v7615_v11 = vld [vmem:[#allocation37_spill] sm:$0xff]  ;;  %v6042_v40 = vpack.c.bf16 %v2961_v31, %v2957_v54  ;;  %v2969_v44 = vand.u32 4294901760, %v261_v17  ;;  %v275_v51 = vld [vmem:[#allocation5 + $0x1e8] sm:$0xff] }
 0x135   : > { %4087 = vmatprep.subr.bf16.mxu0 %v7603_v25  ;;  %v7611_v25 = vld [vmem:[#allocation17_spill] sm:$0xff]  ;;  %v6044_v2 = vsub.f32 %v237_v50, %v2957_v54  ;;  %7620 = vst [vmem:[#allocation76_spill] sm:$0xff] %v6050_v9  ;;  %7621 = vst [vmem:[#allocation12_spill] sm:$0xff] %v6052_v29  ;;  %v6057_v54 = vsub.f32 %v236_v52, %v2959_v4  ;;  %v6061_v41 = vsub.f32 %v244_v43, %v2963_v32  ;;  %v269_v62 = vld [vmem:[#allocation5 + $0x1b8] sm:$0xff] }
 0x136   : > { %4277 = vmatpush1.bf16.msra.mxu1 %v7608_v6  ;;  %7609 = vst [vmem:[#allocation61_spill] sm:$0xff] %v6031_v46  ;;  %v258_v6 = vld [vmem:[#allocation5 + $0x160] sm:$0xff]  ;;  %7616 = vst [vmem:[#allocation70_spill] sm:$0xff] %v6042_v40  ;;  %v6046_v46 = vsub.f32 %v245_v13, %v2961_v31  ;;  %v2112_v31 = vand.u32 4294901760, %v250_v48  ;;  %v6063_v59 = vpack.c.bf16 %v2114_v19, %v2110_v57  ;;  %v277_v9 = vld [vmem:[#allocation5 + $0x1f8] sm:$0xff] }
 0x137   : > { %4279 = vmatprep.subr.bf16.mxu1 %v7611_v25  ;;  %7617 = vst [vmem:[#allocation72_spill] sm:$0xff] %v6044_v2  ;;  %v252_v25 = vld [vmem:[#allocation5 + $0x130] sm:$0xff]  ;;  %7624 = vst [vmem:[#allocation18_spill] sm:$0xff] %v6057_v54  ;;  %v2116_v50 = vand.u32 4294901760, %v258_v6  ;;  %v6068_v52 = vsub.f32 %v259_v30, %v2114_v19  ;;  %v266_v40 = vld [vmem:[#allocation5 + $0x1a0] sm:$0xff]  ;;  %v6070_v54 = vpack.c.bf16 %v2969_v44, %v2965_v21  ;;  %v2973_v30 = vand.u32 4294901760, %v269_v62 }
 0x138   : > { %4089 = vmatpush1.bf16.msra.mxu0 %v7612_v37  ;;  %7618 = vst [vmem:[#allocation73_spill] sm:$0xff] %v6046_v46  ;;  %v260_v37 = vld [vmem:[#allocation5 + $0x170] sm:$0xff]  ;;  %7625 = vst [vmem:[#allocation21_spill] sm:$0xff] %v6061_v41  ;;  %v2967_v13 = vand.u32 4294901760, %v252_v25  ;;  %v6074_v43 = vsub.f32 %v261_v17, %v2969_v44  ;;  %v2120_v17 = vand.u32 4294901760, %v266_v40 }
 0x139   : > { %4091 = vmatprep.subr.bf16.mxu0 %v7615_v11  ;;  %v6055_v11 = vpack.c.bf16 %v2963_v32, %v2959_v4  ;;  %7626 = vst [vmem:[#allocation20_spill] sm:$0xff] %v6063_v59  ;;  %v2971_v18 = vand.u32 4294901760, %v260_v37  ;;  %7628 = vst [vmem:[#allocation23_spill] sm:$0xff] %v6068_v52  ;;  %v2118_v4 = vand.u32 4294901760, %v267_v39  ;;  %v6076_v32 = vsub.f32 %v250_v48, %v2112_v31  ;;  %v268_v59 = vld [vmem:[#allocation5 + $0x1b0] sm:$0xff]  ;;  %v283_v52 = vld [vmem:[#allocation5 + $0x228] sm:$0xff] }
 0x13a   : > { %4281 = vmatpush1.bf16.msra.mxu1 %v7622_v27  ;;  %v6066_v27 = vsub.f32 %v251_v5, %v2110_v57  ;;  %7629 = vst [vmem:[#allocation25_spill] sm:$0xff] %v6070_v54  ;;  %7631 = vst [vmem:[#allocation26_spill] sm:$0xff] %v6074_v43  ;;  %v276_v41 = vld [vmem:[#allocation5 + $0x1f0] sm:$0xff]  ;;  %v6080_v19 = vpack.c.bf16 %v2116_v50, %v2112_v31  ;;  %v6082_v5 = vsub.f32 %v258_v6, %v2116_v50  ;;  %v291_v54 = vld [vmem:[#allocation5 + $0x268] sm:$0xff] }
 0x13b   : > { %7623 = vst [vmem:[#allocation16_spill] sm:$0xff] %v6055_v11  ;;  %4283 = vmatprep.subr.bf16.mxu1 %v5895_v34  ;;  %v2122_v11 = vand.u32 4294901760, %v275_v51  ;;  %v274_v34 = vld [vmem:[#allocation5 + $0x1e0] sm:$0xff]  ;;  %7632 = vst [vmem:[#allocation27_spill] sm:$0xff] %v6076_v32  ;;  %v2977_v57 = vand.u32 4294901760, %v277_v9  ;;  %v6086_v48 = vpack.c.bf16 %v2971_v18, %v2967_v13  ;;  %v6092_v6 = vsub.f32 %v260_v37, %v2971_v18  ;;  %v285_v50 = vld [vmem:[#allocation5 + $0x238] sm:$0xff] }
 0x13c   : > { %4093 = vmatpush1.bf16.msra.mxu0 %v5901_v53  ;;  %7627 = vst [vmem:[#allocation22_spill] sm:$0xff] %v6066_v27  ;;  %v6072_v53 = vsub.f32 %v253_v23, %v2965_v21  ;;  %7634 = vst [vmem:[#allocation29_spill] sm:$0xff] %v6080_v19  ;;  %v6088_v23 = vsub.f32 %v252_v25, %v2967_v13  ;;  %v2975_v44 = vand.u32 4294901760, %v268_v59  ;;  %v2979_v31 = vand.u32 4294901760, %v276_v41  ;;  %v290_v19 = vld [vmem:[#allocation5 + $0x260] sm:$0xff] }
 0x13d   : > { %4095 = vmatprep.subr.bf16.mxu0 %v7553_v1  ;;  %v7633_v1 = vld [vmem:[#allocation77_spill] sm:$0xff]  ;;  %7635 = vst [vmem:[#allocation28_spill] sm:$0xff] %v6082_v5  ;;  %7636 = vst [vmem:[#allocation30_spill] sm:$0xff] %v6086_v48  ;;  %v6094_v21 = vpack.c.bf16 %v2122_v11, %v2118_v4  ;;  %v6099_v25 = vsub.f32 %v275_v51, %v2122_v11  ;;  %v2126_v13 = vand.u32 4294901760, %v283_v52  ;;  %v2130_v48 = vand.u32 4294901760, %v291_v54 }
 0x13e   : > { %7630 = vst [vmem:[#allocation24_spill] sm:$0xff] %v6072_v53  ;;  %4285 = vmatpush1.bf16.msra.mxu1 %v5909_v42  ;;  %7637 = vst [vmem:[#allocation31_spill] sm:$0xff] %v6088_v23  ;;  %v2124_v42 = vand.u32 4294901760, %v274_v34  ;;  %v6105_v37 = vsub.f32 %v269_v62, %v2973_v30  ;;  %v6107_v18 = vsub.f32 %v277_v9, %v2977_v57 }
 0x13f   : > { %1129 = vmatmul.mubr.f32.vlgmr.msra.gmra.mrb[0].mxu0 %v7633_v1  ;;  %4287 = vmatprep.subr.bf16.mxu1 %v7555_v55  ;;  %7638 = vst [vmem:[#allocation35_spill] sm:$0xff] %v6092_v6  ;;  %7639 = vst [vmem:[#allocation32_spill] sm:$0xff] %v6094_v21  ;;  %v293_v55 = vld [vmem:[#allocation5 + $0x278] sm:$0xff]  ;;  %v282_v21 = vld [vmem:[#allocation5 + $0x220] sm:$0xff]  ;;  %v6118_v62 = vpack.c.bf16 %v2979_v31, %v2975_v44 }
 0x140   : > { %4097 = vmatpush1.bf16.msra.mxu0 %v7556_v3  ;;  %1231 = vmatprep.mubr.f32.mxu0 %v7459_v7  ;;  %v6097_v3 = vsub.f32 %v267_v39, %v2118_v4  ;;  %7641 = vst [vmem:[#allocation41_spill] sm:$0xff] %v6099_v25  ;;  %7643 = vst [vmem:[#allocation44_spill] sm:$0xff] %v6105_v37  ;;  %v284_v6 = vld [vmem:[#allocation5 + $0x230] sm:$0xff]  ;;  %v6111_v51 = vpack.c.bf16 %v2124_v42, %v2120_v17  ;;  %v2985_v11 = vand.u32 4294901760, %v293_v55  ;;  %v299_v25 = vld [vmem:[#allocation5 + $0x2a8] sm:$0xff] }
 0x141   : > { %4099 = vmatprep.subr.bf16.mxu0 %v7557_v33  ;;  %1984 = vmatmul.mubr.f32.vlgmr.msra.gmra.mrb[0].mxu1 %v7633_v1  ;;  %v6103_v33 = vpack.c.bf16 %v2977_v57, %v2973_v30  ;;  %7644 = vst [vmem:[#allocation51_spill] sm:$0xff] %v6107_v18  ;;  %v6113_v39 = vsub.f32 %v266_v40, %v2120_v17  ;;  %v292_v4 = vld [vmem:[#allocation5 + $0x270] sm:$0xff]  ;;  %7648 = vst [vmem:[#allocation14_spill] sm:$0xff] %v6118_v62  ;;  %v2128_v40 = vand.u32 4294901760, %v282_v21  ;;  %v309_v18 = vld [vmem:[#allocation5 + $0x2f8] sm:$0xff] }
 0x142   : > { %7640 = vst [vmem:[#allocation39_spill] sm:$0xff] %v6097_v3  ;;  %4289 = vmatpush1.bf16.msra.mxu1 %v7558_v20  ;;  %2086 = vmatprep.mubr.f32.mxu1 %v7459_v7  ;;  %7645 = vst [vmem:[#allocation53_spill] sm:$0xff] %v6111_v51  ;;  %v2981_v20 = vand.u32 4294901760, %v285_v50  ;;  %v6116_v9 = vsub.f32 %v274_v34, %v2124_v42  ;;  %v6120_v30 = vsub.f32 %v268_v59, %v2975_v44  ;;  %v306_v62 = vld [vmem:[#allocation5 + $0x2e0] sm:$0xff] }
 0x143   : > { %7642 = vst [vmem:[#allocation47_spill] sm:$0xff] %v6103_v33  ;;  %4291 = vmatprep.subr.bf16.mxu1 %v7559_v47  ;;  %7646 = vst [vmem:[#allocation59_spill] sm:$0xff] %v6113_v39  ;;  %v307_v33 = vld [vmem:[#allocation5 + $0x2e8] sm:$0xff]  ;;  %v6122_v47 = vsub.f32 %v276_v41, %v2979_v31  ;;  %v6126_v57 = vsub.f32 %v283_v52, %v2126_v13  ;;  %v2132_v17 = vand.u32 4294901760, %v290_v19  ;;  %v301_v39 = vld [vmem:[#allocation5 + $0x2b8] sm:$0xff]  ;;  %v2983_v37 = vand.u32 4294901760, %v284_v6 }
 0x144   : > { %4101 = vmatpush1.bf16.msra.mxu0 %v7560_v49  ;;  %7647 = vst [vmem:[#allocation13_spill] sm:$0xff] %v6116_v9  ;;  %7649 = vst [vmem:[#allocation40_spill] sm:$0xff] %v6120_v30  ;;  %v6124_v49 = vpack.c.bf16 %v2130_v48, %v2126_v13  ;;  %v2134_v34 = vand.u32 4294901760, %v299_v25  ;;  %v2138_v42 = vand.u32 4294901760, %v307_v33  ;;  %v298_v9 = vld [vmem:[#allocation5 + $0x2a0] sm:$0xff]  ;;  %v6131_v41 = vsub.f32 %v291_v54, %v2130_v48  ;;  %v315_v48 = vld [vmem:[#allocation5 + $0x328] sm:$0xff] }
 0x145   : > { %4103 = vmatprep.subr.bf16.mxu0 %v7561_v56  ;;  %7650 = vst [vmem:[#allocation55_spill] sm:$0xff] %v6122_v47  ;;  %7652 = vst [vmem:[#allocation57_spill] sm:$0xff] %v6126_v57  ;;  %v2987_v56 = vand.u32 4294901760, %v292_v4  ;;  %v6133_v59 = vpack.c.bf16 %v2985_v11, %v2981_v20  ;;  %v6135_v52 = vsub.f32 %v285_v50, %v2981_v20  ;;  %v2989_v31 = vand.u32 4294901760, %v301_v39  ;;  %v300_v57 = vld [vmem:[#allocation5 + $0x2b0] sm:$0xff]  ;;  %v317_v20 = vld [vmem:[#allocation5 + $0x338] sm:$0xff] }
 0x146   : > { %7651 = vst [vmem:[#allocation54_spill] sm:$0xff] %v6124_v49  ;;  %4293 = vmatpush1.bf16.msra.mxu1 %v7562_v63  ;;  %7653 = vst [vmem:[#allocation58_spill] sm:$0xff] %v6131_v41  ;;  %v6138_v44 = vsub.f32 %v293_v55, %v2985_v11  ;;  %v6140_v63 = vsub.f32 %v282_v21, %v2128_v40  ;;  %v2993_v13 = vand.u32 4294901760, %v309_v18  ;;  %v308_v47 = vld [vmem:[#allocation5 + $0x2f0] sm:$0xff]  ;;  %v2140_v54 = vand.u32 4294901760, %v306_v62  ;;  %v323_v41 = vld [vmem:[#allocation5 + $0x368] sm:$0xff] }
 0x147   : > { %4295 = vmatprep.subr.bf16.mxu1 %v7563_v38  ;;  %7654 = vst [vmem:[#allocation15_spill] sm:$0xff] %v6133_v59  ;;  %v6142_v30 = vpack.c.bf16 %v2132_v17, %v2128_v40  ;;  %v6144_v38 = vsub.f32 %v290_v19, %v2132_v17  ;;  %v6147_v50 = vpack.c.bf16 %v2987_v56, %v2983_v37  ;;  %v325_v11 = vld [vmem:[#allocation5 + $0x378] sm:$0xff]  ;;  %v314_v40 = vld [vmem:[#allocation5 + $0x320] sm:$0xff]  ;;  %v2146_v59 = vand.u32 4294901760, %v323_v41 }
 0x148   : > { %4105 = vmatpush1.bf16.msra.mxu0 %v7564_v12  ;;  %v2136_v12 = vand.u32 4294901760, %v298_v9  ;;  %v6151_v21 = vsub.f32 %v292_v4, %v2987_v56  ;;  %v6153_v55 = vpack.c.bf16 %v2138_v42, %v2134_v34  ;;  %v6157_v19 = vsub.f32 %v299_v25, %v2134_v34 }
 0x149   : > { %4107 = vmatprep.subr.bf16.mxu0 %v7565_v15  ;;  %7655 = vst [vmem:[#allocation60_spill] sm:$0xff] %v6142_v30  ;;  %7656 = vst [vmem:[#allocation17_spill] sm:$0xff] %v6147_v50  ;;  %v6149_v15 = vsub.f32 %v284_v6, %v2983_v37  ;;  %v6159_v17 = vsub.f32 %v307_v33, %v2138_v42  ;;  %v2995_v30 = vand.u32 4294901760, %v308_v47  ;;  %v322_v50 = vld [vmem:[#allocation5 + $0x360] sm:$0xff]  ;;  %v316_v6 = vld [vmem:[#allocation5 + $0x330] sm:$0xff]  ;;  %v2997_v25 = vand.u32 4294901760, %v317_v20 }
 0x14a   : > { %4297 = vmatpush1.bf16.msra.mxu1 %v7566_v35  ;;  %7657 = vst [vmem:[#allocation19_spill] sm:$0xff] %v6153_v55  ;;  %7658 = vst [vmem:[#allocation37_spill] sm:$0xff] %v6157_v19  ;;  %v2991_v35 = vand.u32 4294901760, %v300_v57  ;;  %v324_v37 = vld [vmem:[#allocation5 + $0x370] sm:$0xff]  ;;  %v6162_v4 = vpack.c.bf16 %v2993_v13, %v2989_v31  ;;  %v6164_v56 = vsub.f32 %v301_v39, %v2989_v31  ;;  %v2142_v55 = vand.u32 4294901760, %v315_v48 }
 0x14b   : > { %4299 = vmatprep.subr.bf16.mxu1 %v7567_v45  ;;  %7659 = vst [vmem:[#allocation36_spill] sm:$0xff] %v6159_v17  ;;  %v6166_v45 = vsub.f32 %v309_v18, %v2993_v13  ;;  %v3001_v33 = vand.u32 4294901760, %v325_v11  ;;  %v2144_v34 = vand.u32 4294901760, %v314_v40  ;;  %v2148_v42 = vand.u32 4294901760, %v322_v50 }
 0x14c   : > { %4109 = vmatpush1.bf16.msra.mxu0 %v7568_v22  ;;  %7660 = vst [vmem:[#allocation81_spill] sm:$0xff] %v6162_v4  ;;  %v6168_v22 = vpack.c.bf16 %v2140_v54, %v2136_v12  ;;  %v2999_v17 = vand.u32 4294901760, %v316_v6  ;;  %v3003_v19 = vand.u32 4294901760, %v324_v37  ;;  %v6175_v39 = vsub.f32 %v306_v62, %v2140_v54  ;;  %v331_v4 = vld [vmem:[#allocation5 + $0x3a8] sm:$0xff]  ;;  %v341_v54 = vld [vmem:[#allocation5 + $0x3f8] sm:$0xff] }
 0x14d   : > { %4111 = vmatprep.subr.bf16.mxu0 %v7569_v24  ;;  %7661 = vst [vmem:[#allocation82_spill] sm:$0xff] %v6166_v45  ;;  %v6173_v24 = vsub.f32 %v298_v9, %v2136_v12  ;;  %v6177_v18 = vpack.c.bf16 %v2995_v30, %v2991_v35  ;;  %v6180_v31 = vsub.f32 %v300_v57, %v2991_v35  ;;  %v333_v12 = vld [vmem:[#allocation5 + $0x3b8] sm:$0xff]  ;;  %v7687_v35 = vld [vmem:[#allocation64_spill] sm:$0xff] }
 0x14e   : > { %7662 = vst [vmem:[#allocation83_spill] sm:$0xff] %v6168_v22  ;;  %4301 = vmatpush1.bf16.msra.mxu1 %v7570_v8  ;;  %7664 = vst [vmem:[#allocation85_spill] sm:$0xff] %v6175_v39  ;;  %v6182_v13 = vsub.f32 %v308_v47, %v2995_v30  ;;  %v6184_v8 = vpack.c.bf16 %v2146_v59, %v2142_v55  ;;  %v6186_v22 = vsub.f32 %v315_v48, %v2142_v55 }
 0x14f   : > { %4303 = vmatprep.subr.bf16.mxu1 %v7571_v26  ;;  %7663 = vst [vmem:[#allocation84_spill] sm:$0xff] %v6173_v24  ;;  %7665 = vst [vmem:[#allocation86_spill] sm:$0xff] %v6177_v18  ;;  %v339_v26 = vld [vmem:[#allocation5 + $0x3e8] sm:$0xff]  ;;  %v6188_v45 = vsub.f32 %v323_v41, %v2146_v59  ;;  %v6192_v9 = vsub.f32 %v317_v20, %v2997_v25  ;;  %v6194_v62 = vsub.f32 %v325_v11, %v3001_v33  ;;  %v330_v41 = vld [vmem:[#allocation5 + $0x3a0] sm:$0xff] }
 0x150   : > { %4113 = vmatpush1.bf16.msra.mxu0 %v7572_v60  ;;  %7666 = vst [vmem:[#allocation87_spill] sm:$0xff] %v6180_v31  ;;  %7667 = vst [vmem:[#allocation88_spill] sm:$0xff] %v6182_v13  ;;  %v6190_v60 = vpack.c.bf16 %v3001_v33, %v2997_v25  ;;  %v6199_v30 = vsub.f32 %v314_v40, %v2144_v34  ;;  %v6201_v47 = vsub.f32 %v322_v50, %v2148_v42  ;;  %v338_v20 = vld [vmem:[#allocation5 + $0x3e0] sm:$0xff]  ;;  %v332_v11 = vld [vmem:[#allocation5 + $0x3b0] sm:$0xff] }
 0x151   : > { %4115 = vmatprep.subr.bf16.mxu0 %v7573_v10  ;;  %7668 = vst [vmem:[#allocation89_spill] sm:$0xff] %v6184_v8  ;;  %7669 = vst [vmem:[#allocation90_spill] sm:$0xff] %v6186_v22  ;;  %v6197_v10 = vpack.c.bf16 %v2148_v42, %v2144_v34  ;;  %v6203_v57 = vpack.c.bf16 %v3003_v19, %v2999_v17  ;;  %v6207_v59 = vsub.f32 %v316_v6, %v2999_v17  ;;  %v340_v50 = vld [vmem:[#allocation5 + $0x3f0] sm:$0xff]  ;;  %v7680_v25 = vld [vmem:[#allocation43_spill] sm:$0xff] }
 0x152   : > { %7670 = vst [vmem:[#allocation91_spill] sm:$0xff] %v6188_v45  ;;  %7671 = vst [vmem:[#allocation92_spill] sm:$0xff] %v6190_v60  ;;  %4305 = vmatpush1.bf16.msra.mxu1 %v7574_v14  ;;  %v6209_v48 = vsub.f32 %v324_v37, %v3003_v19  ;;  %v2150_v14 = vand.u32 4294901760, %v331_v4  ;;  %v2154_v55 = vand.u32 4294901760, %v339_v26  ;;  %v3005_v17 = vand.u32 4294901760, %v333_v12  ;;  %v7683_v37 = vld [vmem:[#allocation56_spill] sm:$0xff] }
 0x153   : > { %7672 = vst [vmem:[#allocation93_spill] sm:$0xff] %v6192_v9  ;;  %7673 = vst [vmem:[#allocation94_spill] sm:$0xff] %v6194_v62  ;;  %4307 = vmatprep.subr.bf16.mxu1 %v7575_v28  ;;  %v7681_v28 = vld [vmem:[#allocation45_spill] sm:$0xff]  ;;  %v3009_v19 = vand.u32 4294901760, %v341_v54  ;;  %v2152_v6 = vand.u32 4294901760, %v330_v41  ;;  %v2156_v42 = vand.u32 4294901760, %v338_v20 }
 0x154   : > { %7674 = vst [vmem:[#allocation95_spill] sm:$0xff] %v6197_v10  ;;  %7675 = vst [vmem:[#allocation96_spill] sm:$0xff] %v6199_v30  ;;  %4117 = vmatpush1.bf16.msra.mxu0 %v7576_v58  ;;  %v6216_v58 = vsub.f32 %v331_v4, %v2150_v14  ;;  %v7684_v10 = vld [vmem:[#allocation48_spill] sm:$0xff]  ;;  %v7685_v60 = vld [vmem:[#allocation49_spill] sm:$0xff]  ;;  %v6223_v33 = vpack.c.bf16 %v2154_v55, %v2150_v14  ;;  %v3011_v34 = vand.u32 4294901760, %v340_v50 }
 0x155   : > { %7676 = vst [vmem:[#allocation97_spill] sm:$0xff] %v6201_v47  ;;  %7677 = vst [vmem:[#allocation98_spill] sm:$0xff] %v6203_v57  ;;  %4119 = vmatprep.subr.bf16.mxu0 %v7577_v61  ;;  %v3007_v57 = vand.u32 4294901760, %v332_v11  ;;  %v7686_v40 = vld [vmem:[#allocation63_spill] sm:$0xff]  ;;  %v7689_v4 = vld [vmem:[#allocation52_spill] sm:$0xff]  ;;  %v7693_v61 = vand.u32 4294901760, %v6009_v0  ;;  %v6246_v62 = vsub.f32 %v341_v54, %v3009_v19  ;;  %v6260_v54 = vsub.f32 %v330_v41, %v2152_v6 }
 0x156   : > { %7678 = vst [vmem:[#allocation99_spill] sm:$0xff] %v6207_v59  ;;  %7679 = vst [vmem:[#allocation100_spill] sm:$0xff] %v6209_v48  ;;  %4309 = vmatpush1.bf16.msra.mxu1 %v7683_v37  ;;  %v7690_v48 = vld [vmem:[#allocation61_spill] sm:$0xff]  ;;  %v7691_v47 = vld [vmem:[#allocation66_spill] sm:$0xff]  ;;  %v7692_v37 = vand.u32 4294901760, %v6006_v36  ;;  %v6242_v59 = vpack.c.bf16 %v3009_v19, %v3005_v17  ;;  %v6274_v41 = vsub.f32 %v338_v20, %v2156_v42 }
 0x157   : > { %7682 = vst [vmem:[#allocation101_spill] sm:$0xff] %v6216_v58  ;;  %4311 = vmatprep.subr.bf16.mxu1 %v7686_v40  ;;  %7688 = vst [vmem:[#allocation56_spill] sm:$0xff] %v6223_v33  ;;  %v2217_v18 = vsub.f32 %v6009_v0, %v7693_v61  ;;  %v7694_v40 = vand.u32 4294901760, %v7680_v25  ;;  %v6240_v33 = vsub.f32 %v339_v26, %v2154_v55  ;;  %v7699_v61 = vand.u32 4294901760, %v7684_v10  ;;  %v7701_v26 = vld [vmem:[#allocation67_spill] sm:$0xff]  ;;  %v7711_v20 = vld [vmem:[#allocation42_spill] sm:$0xff] }
 0x158   : > { %4121 = vmatpush1.bf16.msra.mxu0 %v7687_v35  ;;  %v2205_v30 = vsub.f32 %v6006_v36, %v7692_v37  ;;  %v7695_v35 = vand.u32 4294901760, %v7681_v28  ;;  %7696 = vst [vmem:[#allocation63_spill] sm:$0xff] %v6242_v59  ;;  %v7697_v37 = vld [vmem:[#allocation65_spill] sm:$0xff]  ;;  %v6249_v36 = vpack.c.bf16 %v2156_v42, %v2152_v6  ;;  %v6276_v6 = vpack.c.bf16 %v3011_v34, %v3007_v57 }
 0x159   : > { %4123 = vmatprep.subr.bf16.mxu0 %v7691_v47  ;;  %v3060_v14 = vsub.f32 %v7680_v25, %v7694_v40  ;;  %v6244_v47 = vsub.f32 %v333_v12, %v3005_v17  ;;  %v2211_v40 = vsub.f32 %v7684_v10, %v7699_v61  ;;  %v7700_v25 = vand.u32 4294901760, %v7685_v60  ;;  %v7703_v12 = vld [vmem:[#allocation71_spill] sm:$0xff]  ;;  %v7706_v10 = vld [vmem:[#allocation68_spill] sm:$0xff] }
 0x15a   : > { %v3072_v58 = vsub.f32 %v7681_v28, %v7695_v35  ;;  %4313 = vmatpush1.bf16.msra.mxu1 %v7697_v37  ;;  %7698 = vst [vmem:[#allocation64_spill] sm:$0xff] %v6249_v36  ;;  %v7702_v28 = vld [vmem:[#allocation69_spill] sm:$0xff]  ;;  %v7704_v17 = vand.u32 4294901760, %v7689_v4  ;;  %v7705_v37 = vand.u32 4294901760, %v7690_v48  ;;  %v2206_v55 = vand.u32 4294901760, %v2205_v30  ;;  %7708 = vst [vmem:[#allocation66_spill] sm:$0xff] %v6276_v6 }
 0x15b   : > { %v2223_v35 = vsub.f32 %v7685_v60, %v7700_v25  ;;  %4315 = vmatprep.subr.bf16.mxu1 %v7702_v28  ;;  %v7707_v60 = vld [vmem:[#allocation33_spill] sm:$0xff]  ;;  %v2218_v28 = vand.u32 4294901760, %v2217_v18  ;;  %v3061_v0 = vand.u32 4294901760, %v3060_v14  ;;  %v7709_v36 = vld [vmem:[#allocation74_spill] sm:$0xff]  ;;  %v2212_v25 = vand.u32 4294901760, %v2211_v40 }
 0x15c   : > { %4125 = vmatpush1.bf16.msra.mxu0 %v7703_v12  ;;  %v6265_v19 = vsub.f32 %v7689_v4, %v7704_v17  ;;  %v6270_v61 = vsub.f32 %v7690_v48, %v7705_v37  ;;  %v3073_v12 = vand.u32 4294901760, %v3072_v58  ;;  %v7287_v17 = vand.u32 4294901760, %v6044_v2  ;;  %v7712_v58 = vld [vmem:[#allocation46_spill] sm:$0xff] }
 0x15d   : > { %4319 = vmatprep.subr.bf16.mxu0 %v7707_v60  ;;  %v6282_v37 = vsub.f32 %v332_v11, %v3007_v57  ;;  %v2224_v60 = vand.u32 4294901760, %v2223_v35  ;;  %v7710_v18 = vand.u32 4294901760, %v7701_v26  ;;  %v6289_v42 = vsub.f32 %v340_v50, %v3011_v34  ;;  %v7715_v11 = vld [vmem:[#allocation62_spill] sm:$0xff] }
 0x15e   : > { %4317 = vmatpush1.bf16.msra.mxu1 %v7709_v36  ;;  %v3067_v14 = vand.u32 4294901760, %v6265_v19  ;;  %v3079_v36 = vand.u32 4294901760, %v6270_v61  ;;  %v7714_v4 = vand.u32 4294901760, %v7706_v10  ;;  %v6298_v40 = vpack.c.bf16 %v2218_v28, %v2206_v55  ;;  %v7717_v61 = vld [vmem:[#allocation18_spill] sm:$0xff]  ;;  %v7718_v55 = vld [vmem:[#allocation21_spill] sm:$0xff] }
 0x15f   : > { %1233 = vmatmul.mubr.f32.vlgmr.msra.gmra.mrb[0].mxu0 %v7633_v1  ;;  %v2229_v30 = vsub.f32 %v7701_v26, %v7710_v18  ;;  %4511 = vmatprep.subr.bf16.mxu1 %v7711_v20  ;;  %7713 = vst [vmem:[#allocation65_spill] sm:$0xff] %v6289_v42  ;;  %v6300_v35 = vpack.c.bf16 %v3073_v12, %v3061_v0  ;;  %v7719_v0 = vld [vmem:[#allocation50_spill] sm:$0xff]  ;;  %v7781_v26 = vld [vmem:[#allocation96_spill] sm:$0xff] }
 0x160   : > { %4321 = vmatpush1.bf16.msra.mxu0 %v7712_v58  ;;  %v2241_v57 = vsub.f32 %v7706_v10, %v7714_v4  ;;  %2190 = vmatprep.mubr.f32.mxu0 %v7459_v7  ;;  %v3084_v34 = vsub.f32 %v6044_v2, %v7287_v17  ;;  %v7716_v4 = vand.u32 4294901760, %v6046_v46  ;;  %v6315_v12 = vpack.c.bf16 %v2224_v60, %v2212_v25  ;;  %v7720_v58 = vld [vmem:[#allocation23_spill] sm:$0xff]  ;;  %v7721_v17 = vld [vmem:[#allocation70_spill] sm:$0xff]  ;;  %v7722_v2 = vld [vmem:[#allocation76_spill] sm:$0xff] }
 0x161   : > { %4323 = vmatprep.subr.bf16.mxu0 %v7715_v11  ;;  %2088 = vmatmul.mubr.f32.vlgmr.msra.gmra.mrb[0].mxu1 %v7633_v1  ;;  %v2230_v50 = vand.u32 4294901760, %v2229_v30  ;;  %v7724_v60 = vand.u32 4294901760, %v6048_v16  ;;  %v7725_v30 = vand.u32 4294901760, %v6052_v29  ;;  %v7731_v11 = vld [vmem:[#allocation35_spill] sm:$0xff]  ;;  %v7788_v10 = vand.u32 4294901760, %v6186_v22 }
 0x162   : > { %v3096_v19 = vsub.f32 %v6046_v46, %v7716_v4  ;;  %4513 = vmatpush1.bf16.msra.mxu1 %v7719_v0  ;;  %3045 = vmatprep.mubr.f32.mxu1 %v7459_v7  ;;  %v2242_v4 = vand.u32 4294901760, %v2241_v57  ;;  %v7723_v46 = vld [vmem:[#allocation20_spill] sm:$0xff]  ;;  %v3085_v18 = vand.u32 4294901760, %v3084_v34  ;;  %v7726_v0 = vand.u32 4294901760, %v7717_v61 }
 0x163   : > { %4515 = vmatprep.subr.bf16.mxu1 %v7721_v17  ;;  %v6328_v25 = vsub.f32 %v6048_v16, %v7724_v60  ;;  %v6333_v20 = vsub.f32 %v6052_v29, %v7725_v30  ;;  %v7728_v17 = vld [vmem:[#allocation16_spill] sm:$0xff]  ;;  %v7729_v30 = vand.u32 4294901760, %v6066_v27  ;;  %v7730_v34 = vand.u32 4294901760, %v7720_v58  ;;  %v7732_v29 = vld [vmem:[#allocation25_spill] sm:$0xff]  ;;  %v7760_v16 = vld [vmem:[#allocation82_spill] sm:$0xff] }
 0x164   : > { %4325 = vmatpush1.bf16.msra.mxu0 %v7722_v2  ;;  %v3097_v28 = vand.u32 4294901760, %v3096_v19  ;;  %v7727_v2 = vand.u32 4294901760, %v7718_v55  ;;  %v7797_v22 = vand.u32 4294901760, %v7781_v26 }
 0x165   : > { %4327 = vmatprep.subr.bf16.mxu0 %v7723_v46  ;;  %v6340_v46 = vsub.f32 %v7717_v61, %v7726_v0  ;;  %v6351_v57 = vsub.f32 %v6066_v27, %v7729_v30  ;;  %v6356_v19 = vsub.f32 %v7720_v58, %v7730_v34  ;;  %v7735_v30 = vand.u32 4294901760, %v6074_v43  ;;  %v7737_v61 = vld [vmem:[#allocation32_spill] sm:$0xff] }
 0x166   : > { %v6345_v60 = vsub.f32 %v7718_v55, %v7727_v2  ;;  %4517 = vmatpush1.bf16.msra.mxu1 %v7728_v17  ;;  %v7733_v2 = vld [vmem:[#allocation29_spill] sm:$0xff]  ;;  %v7734_v17 = vand.u32 4294901760, %v6072_v53  ;;  %v7736_v34 = vand.u32 4294901760, %v6076_v32  ;;  %v7738_v58 = vand.u32 4294901760, %v6082_v5 }
 0x167   : > { %4519 = vmatprep.subr.bf16.mxu1 %v7732_v29  ;;  %v6370_v27 = vsub.f32 %v6074_v43, %v7735_v30  ;;  %v6378_v29 = vpack.c.bf16 %v3079_v36, %v3067_v14  ;;  %v6392_v43 = vpack.c.bf16 %v3097_v28, %v3085_v18  ;;  %v7740_v36 = vld [vmem:[#allocation30_spill] sm:$0xff]  ;;  %v7743_v28 = vld [vmem:[#allocation47_spill] sm:$0xff]  ;;  %v7748_v14 = vld [vmem:[#allocation60_spill] sm:$0xff] }
 0x168   : > { %4329 = vmatpush1.bf16.msra.mxu0 %v7733_v2  ;;  %v6365_v55 = vsub.f32 %v6072_v53, %v7734_v17  ;;  %v6375_v0 = vsub.f32 %v6076_v32, %v7736_v34  ;;  %v6380_v2 = vpack.c.bf16 %v2242_v4, %v2230_v50  ;;  %v6385_v17 = vsub.f32 %v6082_v5, %v7738_v58  ;;  %v7749_v50 = vld [vmem:[#allocation44_spill] sm:$0xff]  ;;  %v7763_v58 = vld [vmem:[#allocation59_spill] sm:$0xff] }
 0x169   : > { %4331 = vmatprep.subr.bf16.mxu0 %v7737_v61  ;;  %v7739_v53 = vand.u32 4294901760, %v6088_v23  ;;  %v7741_v4 = vand.u32 4294901760, %v7731_v11  ;;  %v7751_v61 = vand.u32 4294901760, %v6140_v63  ;;  %v7754_v34 = vand.u32 4294901760, %v6149_v15 }
 0x16a   : > { %4521 = vmatpush1.bf16.msra.mxu1 %v7740_v36  ;;  %v7744_v36 = vld [vmem:[#allocation14_spill] sm:$0xff]  ;;  %v7755_v32 = vand.u32 4294901760, %v6151_v21 }
 0x16b   : > { %v6390_v30 = vsub.f32 %v6088_v23, %v7739_v53  ;;  %v6403_v5 = vsub.f32 %v7731_v11, %v7741_v4  ;;  %v7742_v53 = vand.u32 4294901760, %v6097_v3  ;;  %4523 = vmatprep.subr.bf16.mxu1 %v7743_v28  ;;  %v7316_v28 = vand.u32 4294901760, %v6138_v44  ;;  %v7750_v23 = vld [vmem:[#allocation51_spill] sm:$0xff] }
 0x16c   : > { %4333 = vmatpush1.bf16.msra.mxu0 %v6111_v51  ;;  %v7747_v51 = vld [vmem:[#allocation15_spill] sm:$0xff]  ;;  %v7752_v4 = vand.u32 4294901760, %v6144_v38 }
 0x16d   : > { %v6408_v18 = vsub.f32 %v6097_v3, %v7742_v53  ;;  %4335 = vmatprep.subr.bf16.mxu0 %v6124_v49  ;;  %v7317_v53 = vand.u32 4294901760, %v6135_v52  ;;  %v7745_v49 = vld [vmem:[#allocation41_spill] sm:$0xff] }
 0x16e   : > { %4525 = vmatpush1.bf16.msra.mxu1 %v7744_v36  ;;  %v6443_v3 = vpack.c.bf16 %v7752_v4, %v7751_v61  ;;  %v7767_v61 = vand.u32 4294901760, %v6164_v56  ;;  %v7768_v4 = vand.u32 4294901760, %v7760_v16 }
 0x16f   : > { %v6433_v11 = vpack.c.bf16 %v7316_v28, %v7317_v53  ;;  %4527 = vmatprep.subr.bf16.mxu1 %v7747_v51  ;;  %v6449_v28 = vpack.c.bf16 %v7755_v32, %v7754_v34  ;;  %v7757_v53 = vld [vmem:[#allocation19_spill] sm:$0xff]  ;;  %v7759_v51 = vld [vmem:[#allocation36_spill] sm:$0xff]  ;;  %v7761_v32 = vld [vmem:[#allocation17_spill] sm:$0xff]  ;;  %v7762_v34 = vand.u32 4294901760, %v7745_v49 }
 0x170   : > { %4337 = vmatpush1.bf16.msra.mxu0 %v7748_v14  ;;  %7753 = vst [vmem:[#allocation71_spill] sm:$0xff] %v6443_v3  ;;  %v7765_v48 = vand.u32 4294901760, %v7759_v51  ;;  %v6477_v3 = vpack.c.bf16 %v7768_v4, %v7767_v61  ;;  %v7777_v61 = vand.u32 4294901760, %v6180_v31  ;;  %v7778_v4 = vand.u32 4294901760, %v6182_v13  ;;  %v7794_v13 = vld [vmem:[#allocation92_spill] sm:$0xff] }
 0x171   : > { %7746 = vst [vmem:[#allocation69_spill] sm:$0xff] %v6433_v11  ;;  %7756 = vst [vmem:[#allocation74_spill] sm:$0xff] %v6449_v28  ;;  %4339 = vmatprep.subr.bf16.mxu0 %v7757_v53  ;;  %v7758_v11 = vld [vmem:[#allocation37_spill] sm:$0xff]  ;;  %v6464_v14 = vsub.f32 %v7745_v49, %v7762_v34  ;;  %v7771_v53 = vld [vmem:[#allocation83_spill] sm:$0xff]  ;;  %v7772_v34 = vand.u32 4294901760, %v7749_v50 }
 0x172   : > { %4529 = vmatpush1.bf16.msra.mxu1 %v7761_v32  ;;  %v7764_v36 = vand.u32 4294901760, %v7758_v11  ;;  %7769 = vst [vmem:[#allocation36_spill] sm:$0xff] %v6477_v3  ;;  %v7770_v32 = vld [vmem:[#allocation81_spill] sm:$0xff]  ;;  %v6497_v3 = vpack.c.bf16 %v7778_v4, %v7777_v61  ;;  %v7785_v61 = vld [vmem:[#allocation86_spill] sm:$0xff]  ;;  %v7786_v4 = vand.u32 4294901760, %v7750_v23 }
 0x173   : > { %4531 = vmatprep.subr.bf16.mxu1 %v7770_v32  ;;  %v6484_v28 = vsub.f32 %v7749_v50, %v7772_v34  ;;  %v7773_v49 = vld [vmem:[#allocation13_spill] sm:$0xff]  ;;  %v7780_v32 = vld [vmem:[#allocation94_spill] sm:$0xff]  ;;  %v7789_v50 = vand.u32 4294901760, %v6188_v45 }
 0x174   : > { %v6471_v1 = vpack.c.bf16 %v7765_v48, %v7764_v36  ;;  %4341 = vmatpush1.bf16.msra.mxu0 %v7771_v53  ;;  %v7774_v48 = vand.u32 4294901760, %v6173_v24  ;;  %v7775_v36 = vand.u32 4294901760, %v6175_v39  ;;  %7779 = vst [vmem:[#allocation102_spill] sm:$0xff] %v6497_v3  ;;  %v7784_v24 = vld [vmem:[#allocation100_spill] sm:$0xff]  ;;  %v3144_v53 = vsub.f32 %v7750_v23, %v7786_v4  ;;  %v7796_v23 = vld [vmem:[#allocation55_spill] sm:$0xff] }
 0x175   : > { %4343 = vmatprep.subr.bf16.mxu0 %v6184_v8  ;;  %v7787_v3 = vld [vmem:[#allocation40_spill] sm:$0xff]  ;;  %v6517_v8 = vpack.c.bf16 %v7789_v50, %v7788_v10  ;;  %v7792_v31 = vand.u32 4294901760, %v7780_v32  ;;  %v2290_v4 = vand.u32 4294901760, %v6464_v14  ;;  %v7807_v14 = vand.u32 4294901760, %v7773_v49 }
 0x176   : > { %7766 = vst [vmem:[#allocation37_spill] sm:$0xff] %v6471_v1  ;;  %v6491_v1 = vpack.c.bf16 %v7775_v36, %v7774_v48  ;;  %v7782_v48 = vld [vmem:[#allocation97_spill] sm:$0xff]  ;;  %4533 = vmatpush1.bf16.msra.mxu1 %v7785_v61  ;;  %v7791_v36 = vand.u32 4294901760, %v6192_v9  ;;  %v7795_v61 = vld [vmem:[#allocation95_spill] sm:$0xff] }
 0x177   : > { %7790 = vst [vmem:[#allocation94_spill] sm:$0xff] %v6517_v8  ;;  %4535 = vmatprep.subr.bf16.mxu1 %v7794_v13  ;;  %v7798_v45 = vand.u32 4294901760, %v7782_v48  ;;  %v7801_v8 = vand.u32 4294901760, %v7784_v24  ;;  %v2295_v34 = vsub.f32 %v7773_v49, %v7807_v14  ;;  %v7809_v48 = vand.u32 4294901760, %v6240_v33 }
 0x178   : > { %7776 = vst [vmem:[#allocation82_spill] sm:$0xff] %v6491_v1  ;;  %v7783_v1 = vld [vmem:[#allocation99_spill] sm:$0xff]  ;;  %v6523_v39 = vpack.c.bf16 %v7792_v31, %v7791_v36  ;;  %4345 = vmatpush1.bf16.msra.mxu0 %v7795_v61  ;;  %v7803_v36 = vld [vmem:[#allocation56_spill] sm:$0xff]  ;;  %v7825_v49 = vand.u32 4294901760, %v6340_v46  ;;  %v3133_v46 = vand.u32 4294901760, %v6484_v28 }
 0x179   : > { %v6533_v10 = vpack.c.bf16 %v7798_v45, %v7797_v22  ;;  %v7800_v50 = vand.u32 4294901760, %v7783_v1  ;;  %4347 = vmatprep.subr.bf16.mxu0 %v7803_v36  ;;  %v7811_v22 = vand.u32 4294901760, %v6244_v47  ;;  %v7816_v36 = vld [vmem:[#allocation57_spill] sm:$0xff] }
 0x17a   : > { %7793 = vst [vmem:[#allocation96_spill] sm:$0xff] %v6523_v39  ;;  %v7804_v39 = vld [vmem:[#allocation101_spill] sm:$0xff] }
 0x17b   : > { %7799 = vst [vmem:[#allocation99_spill] sm:$0xff] %v6533_v10  ;;  %v6539_v31 = vpack.c.bf16 %v7801_v8, %v7800_v50  ;;  %v7805_v8 = vld [vmem:[#allocation98_spill] sm:$0xff]  ;;  %v7806_v50 = vand.u32 4294901760, %v7763_v58  ;;  %v7808_v13 = vand.u32 4294901760, %v7804_v39  ;;  %v7812_v10 = vand.u32 4294901760, %v6246_v62 }
 0x17c   : > { %4537 = vmatpush1.bf16.msra.mxu1 %v7805_v8  ;;  %v7814_v8 = vld [vmem:[#allocation64_spill] sm:$0xff] }
 0x17d   : > { %7802 = vst [vmem:[#allocation100_spill] sm:$0xff] %v6539_v31  ;;  %v2283_v61 = vsub.f32 %v7763_v58, %v7806_v50  ;;  %v6561_v31 = vpack.c.bf16 %v7809_v48, %v7808_v13  ;;  %v6567_v45 = vpack.c.bf16 %v7812_v10, %v7811_v22  ;;  %4539 = vmatprep.subr.bf16.mxu1 %v6242_v59  ;;  %v7815_v50 = vand.u32 4294901760, %v7787_v3 }
 0x17e   : > { %4349 = vmatpush1.bf16.msra.mxu0 %v7814_v8  ;;  %v7817_v58 = vand.u32 4294901760, %v6260_v54  ;;  %v7818_v13 = vand.u32 4294901760, %v6274_v41  ;;  %v7821_v10 = vand.u32 4294901760, %v6289_v42  ;;  %v7826_v59 = vand.u32 4294901760, %v6345_v60 }
 0x17f   : > { %7810 = vst [vmem:[#allocation55_spill] sm:$0xff] %v6561_v31  ;;  %7813 = vst [vmem:[#allocation101_spill] sm:$0xff] %v6567_v45  ;;  %v3138_v14 = vsub.f32 %v7787_v3, %v7815_v50  ;;  %v7820_v31 = vand.u32 4294901760, %v6282_v37  ;;  %4351 = vmatprep.subr.bf16.mxu0 %v6298_v40  ;;  %v7823_v45 = vand.u32 4294901760, %v6328_v25  ;;  %v7824_v50 = vand.u32 4294901760, %v6333_v20 }
 0x180   : > { %v6579_v48 = vpack.c.bf16 %v7818_v13, %v7817_v58  ;;  %v4548_v3 = vpack.c.bf16 %v7826_v59, %v7825_v49  ;;  %v7827_v58 = vand.u32 4294901760, %v7796_v23  ;;  %v7830_v40 = vand.u32 4294901760, %v6356_v19  ;;  %4541 = vmatpush1.bf16.msra.mxu1 %v6276_v6  ;;  %v7833_v49 = vld [vmem:[#allocation80_spill] sm:$0xff] }
 0x181   : > { %v6585_v22 = vpack.c.bf16 %v7821_v10, %v7820_v31  ;;  %v4356_v8 = vpack.c.bf16 %v7824_v50, %v7823_v45  ;;  %v7829_v31 = vand.u32 4294901760, %v6351_v57  ;;  %v7831_v25 = vand.u32 4294901760, %v6365_v55  ;;  %2196 = vmatmul.mubr.f32.vlgmr.msra.gmra.mrb[2].mxu0 %v7833_v49  ;;  %4543 = vmatprep.subr.bf16.mxu1 %v6300_v35 }
 0x182   : > { %7819 = vst [vmem:[#allocation57_spill] sm:$0xff] %v6579_v48  ;;  %v3150_v13 = vsub.f32 %v7796_v23, %v7827_v58  ;;  %v7828_v48 = vld [vmem:[#allocation58_spill] sm:$0xff]  ;;  %v7832_v20 = vand.u32 4294901760, %v6370_v27  ;;  %v3145_v60 = vand.u32 4294901760, %v3144_v53  ;;  %v7834_v59 = vand.u32 4294901760, %v6375_v0  ;;  %4353 = vmatpush1.bf16.msra.mxu0 %v6315_v12  ;;  %2426 = vmatprep.mubr.f32.mxu0 %v7459_v7 }
 0x183   : > { %7822 = vst [vmem:[#allocation103_spill] sm:$0xff] %v6585_v22  ;;  %v7349_v42 = vand.u32 4294901760, %v7828_v48  ;;  %v4358_v10 = vpack.c.bf16 %v7830_v40, %v7829_v31  ;;  %v7835_v50 = vand.u32 4294901760, %v6385_v17  ;;  %v7836_v19 = vand.u32 4294901760, %v6390_v30  ;;  %4355 = vmatprep.subr.bf16.mxu0 %v6380_v2  ;;  %3051 = vmatmul.mubr.f32.vlgmr.msra.gmra.mrb[2].mxu1 %v7833_v49 }
 0x184   : > { %v4550_v45 = vpack.c.bf16 %v7832_v20, %v7831_v25  ;;  %v7837_v58 = vand.u32 4294901760, %v6403_v5  ;;  %v7838_v27 = vand.u32 4294901760, %v6408_v18  ;;  %v2284_v28 = vand.u32 4294901760, %v2283_v61  ;;  %4545 = vmatpush1.bf16.msra.mxu1 %v6378_v29  ;;  %3281 = vmatprep.mubr.f32.mxu1 %v7459_v7 }
 0x185   : > { %v4360_v57 = vpack.c.bf16 %v7835_v50, %v7834_v59  ;;  %v2296_v53 = vand.u32 4294901760, %v2295_v34  ;;  %v3139_v40 = vand.u32 4294901760, %v3138_v14  ;;  %v7839_v0 = vand.u32 4294901760, %v7816_v36  ;;  %4547 = vmatprep.subr.bf16.mxu1 %v6392_v43 }
 0x186   : > { %v4552_v55 = vpack.c.bf16 %v7837_v58, %v7836_v19  ;;  %v4362_v31 = vpack.c.bf16 %v2290_v4, %v7838_v27  ;;  %v3151_v30 = vand.u32 4294901760, %v3150_v13  ;;  %v2313_v5 = vsub.f32 %v7828_v48, %v7349_v42  ;;  %4357 = vmatpush1.bf16.msra.mxu0 %v4356_v8  ;;  %v7850_v42 = vld [vmem:[#allocation84_spill] sm:$0xff] }
 0x187   : > { %v2301_v17 = vsub.f32 %v7816_v36, %v7839_v0  ;;  %v7840_v18 = vand.u32 4294901760, %v6135_v52  ;;  %v7841_v12 = vand.u32 4294901760, %v6138_v44  ;;  %v4554_v61 = vpack.c.bf16 %v3145_v60, %v3133_v46  ;;  %4359 = vmatprep.subr.bf16.mxu0 %v4358_v10 }
 0x188   : > { %v7842_v2 = vand.u32 4294901760, %v6140_v63  ;;  %v7843_v14 = vand.u32 4294901760, %v6144_v38  ;;  %v7844_v25 = vand.u32 4294901760, %v6149_v15  ;;  %v7845_v59 = vand.u32 4294901760, %v6151_v21  ;;  %4549 = vmatpush1.bf16.msra.mxu1 %v4548_v3  ;;  %v7858_v3 = vld [vmem:[#allocation90_spill] sm:$0xff] }
 0x189   : > { %v3156_v35 = vsub.f32 %v6135_v52, %v7840_v18  ;;  %v3168_v34 = vsub.f32 %v6138_v44, %v7841_v12  ;;  %v7846_v46 = vand.u32 4294901760, %v7758_v11  ;;  %v7847_v49 = vand.u32 4294901760, %v7759_v51  ;;  %4551 = vmatprep.subr.bf16.mxu1 %v4550_v45 }
 0x18a   : > { %v2307_v4 = vsub.f32 %v6140_v63, %v7842_v2  ;;  %v2319_v13 = vsub.f32 %v6144_v38, %v7843_v14  ;;  %v3162_v20 = vsub.f32 %v6149_v15, %v7844_v25  ;;  %v3174_v50 = vsub.f32 %v6151_v21, %v7845_v59  ;;  %4361 = vmatpush1.bf16.msra.mxu0 %v4360_v57 }
 0x18b   : > { %v2325_v60 = vsub.f32 %v7758_v11, %v7846_v46  ;;  %v2337_v19 = vsub.f32 %v7759_v51, %v7847_v49  ;;  %v4364_v58 = vpack.c.bf16 %v2296_v53, %v2284_v28  ;;  %v2302_v27 = vand.u32 4294901760, %v2301_v17  ;;  %v7852_v28 = vld [vmem:[#allocation85_spill] sm:$0xff]  ;;  %4363 = vmatprep.subr.bf16.mxu0 %v4362_v31 }
 0x18c   : > { %v7848_v29 = vand.u32 4294901760, %v6164_v56  ;;  %v7849_v18 = vand.u32 4294901760, %v7760_v16  ;;  %v4556_v2 = vpack.c.bf16 %v3151_v30, %v3139_v40  ;;  %v2314_v14 = vand.u32 4294901760, %v2313_v5  ;;  %v7854_v30 = vld [vmem:[#allocation87_spill] sm:$0xff]  ;;  %4553 = vmatpush1.bf16.msra.mxu1 %v4552_v55 }
 0x18d   : > { %v3157_v25 = vand.u32 4294901760, %v3156_v35  ;;  %v3169_v59 = vand.u32 4294901760, %v3168_v34  ;;  %v2308_v46 = vand.u32 4294901760, %v2307_v4  ;;  %v2320_v49 = vand.u32 4294901760, %v2319_v13  ;;  %v7856_v34 = vld [vmem:[#allocation88_spill] sm:$0xff]  ;;  %4555 = vmatprep.subr.bf16.mxu1 %v4554_v61 }
 0x18e   : > { %v3180_v0 = vsub.f32 %v6164_v56, %v7848_v29  ;;  %v3192_v12 = vsub.f32 %v7760_v16, %v7849_v18  ;;  %v7851_v43 = vand.u32 4294901760, %v7850_v42  ;;  %v7853_v53 = vand.u32 4294901760, %v7852_v28  ;;  %4365 = vmatpush1.bf16.msra.mxu0 %v4364_v58 }
 0x18f   : > { %v3163_v29 = vand.u32 4294901760, %v3162_v20  ;;  %v3175_v22 = vand.u32 4294901760, %v3174_v50  ;;  %v2326_v6 = vand.u32 4294901760, %v2325_v60  ;;  %v2338_v18 = vand.u32 4294901760, %v2337_v19  ;;  %v7860_v60 = vld [vmem:[#allocation91_spill] sm:$0xff] }
 0x190   : > { %v2331_v8 = vsub.f32 %v7850_v42, %v7851_v43  ;;  %v2343_v17 = vsub.f32 %v7852_v28, %v7853_v53  ;;  %v3181_v10 = vand.u32 4294901760, %v3180_v0  ;;  %v3193_v40 = vand.u32 4294901760, %v3192_v12  ;;  %4557 = vmatpush1.bf16.msra.mxu1 %v4556_v2 }
 0x191   : > { %v7855_v5 = vand.u32 4294901760, %v7854_v30  ;;  %v7857_v4 = vand.u32 4294901760, %v7856_v34  ;;  %v4366_v43 = vpack.c.bf16 %v2314_v14, %v2302_v27  ;;  %v4558_v53 = vpack.c.bf16 %v3169_v59, %v3157_v25 }
 0x192   : > { %v7859_v20 = vand.u32 4294901760, %v7858_v3  ;;  %v7861_v45 = vand.u32 4294901760, %v7860_v60  ;;  %v2332_v19 = vand.u32 4294901760, %v2331_v8  ;;  %v2344_v0 = vand.u32 4294901760, %v2343_v17 }
 0x193   : > { %v3186_v35 = vsub.f32 %v7854_v30, %v7855_v5  ;;  %v3198_v13 = vsub.f32 %v7856_v34, %v7857_v4  ;;  %v7862_v12 = vand.u32 4294901760, %v6192_v9  ;;  %v7863_v30 = vand.u32 4294901760, %v7780_v32  ;;  %v7865_v4 = vld [vmem:[#allocation97_spill] sm:$0xff]  ;;  %4367 = vmatprep.subr.bf16.mxu0 %v4366_v43  ;;  %4559 = vmatprep.subr.bf16.mxu1 %v4558_v53 }
 0x194   : > { %v2349_v50 = vsub.f32 %v7858_v3, %v7859_v20  ;;  %v2361_v57 = vsub.f32 %v7860_v60, %v7861_v45  ;;  %v4368_v27 = vpack.c.bf16 %v2320_v49, %v2308_v46  ;;  %v4560_v14 = vpack.c.bf16 %v3175_v22, %v3163_v29 }
 0x195   : > { %v3204_v5 = vsub.f32 %v6192_v9, %v7862_v12  ;;  %v3216_v31 = vsub.f32 %v7780_v32, %v7863_v30  ;;  %v7864_v25 = vand.u32 4294901760, %v7781_v26  ;;  %v7866_v20 = vand.u32 4294901760, %v7865_v4 }
 0x196   : > { %v4370_v17 = vpack.c.bf16 %v2338_v18, %v2326_v6  ;;  %v4562_v45 = vpack.c.bf16 %v3193_v40, %v3181_v10  ;;  %v3187_v12 = vand.u32 4294901760, %v3186_v35  ;;  %v3199_v9 = vand.u32 4294901760, %v3198_v13  ;;  %4369 = vmatpush1.bf16.msra.mxu0 %v4368_v27  ;;  %4561 = vmatpush1.bf16.msra.mxu1 %v4560_v14 }
 0x197   : > { %v2355_v59 = vsub.f32 %v7781_v26, %v7864_v25  ;;  %v2367_v8 = vsub.f32 %v7865_v4, %v7866_v20  ;;  %v2350_v34 = vand.u32 4294901760, %v2349_v50  ;;  %v2362_v30 = vand.u32 4294901760, %v2361_v57 }
 0x198   : > { %v7867_v55 = vand.u32 4294901760, %v7804_v39  ;;  %v7868_v46 = vand.u32 4294901760, %v6240_v33  ;;  %v4372_v29 = vpack.c.bf16 %v2344_v0, %v2332_v19  ;;  %v3205_v25 = vand.u32 4294901760, %v3204_v5  ;;  %4371 = vmatprep.subr.bf16.mxu0 %v4370_v17  ;;  %4563 = vmatprep.subr.bf16.mxu1 %v4562_v45 }
 0x199   : > { %v3217_v20 = vand.u32 4294901760, %v3216_v31  ;;  %v7869_v61 = vand.u32 4294901760, %v7783_v1  ;;  %v2356_v58 = vand.u32 4294901760, %v2355_v59  ;;  %v2368_v18 = vand.u32 4294901760, %v2367_v8 }
 0x19a   : > { %v2373_v22 = vsub.f32 %v7804_v39, %v7867_v55  ;;  %v2385_v49 = vsub.f32 %v6240_v33, %v7868_v46  ;;  %v7870_v10 = vand.u32 4294901760, %v7784_v24  ;;  %v7871_v35 = vand.u32 4294901760, %v6244_v47  ;;  %4373 = vmatpush1.bf16.msra.mxu0 %v4372_v29  ;;  %v7880_v29 = vld [vmem:[#allocation43_spill] sm:$0xff] }
 0x19b   : > { %v3210_v6 = vsub.f32 %v7783_v1, %v7869_v61  ;;  %v7872_v43 = vand.u32 4294901760, %v6246_v62  ;;  %v7873_v57 = vand.u32 4294901760, %v6260_v54  ;;  %v7874_v19 = vand.u32 4294901760, %v6274_v41 }
 0x19c   : > { %v3222_v40 = vsub.f32 %v7784_v24, %v7870_v10  ;;  %v3228_v13 = vsub.f32 %v6244_v47, %v7871_v35  ;;  %v4374_v5 = vpack.c.bf16 %v2362_v30, %v2350_v34  ;;  %v2374_v31 = vand.u32 4294901760, %v2373_v22  ;;  %v7876_v35 = vld [vmem:[#allocation65_spill] sm:$0xff] }
 0x19d   : > { %v3240_v50 = vsub.f32 %v6246_v62, %v7872_v43  ;;  %v2379_v2 = vsub.f32 %v6260_v54, %v7873_v57  ;;  %v2391_v0 = vsub.f32 %v6274_v41, %v7874_v19  ;;  %v2386_v59 = vand.u32 4294901760, %v2385_v49 }
 0x19e   : > { %v4564_v8 = vpack.c.bf16 %v3199_v9, %v3187_v12  ;;  %v4566_v55 = vpack.c.bf16 %v3217_v20, %v3205_v25  ;;  %v3211_v53 = vand.u32 4294901760, %v3210_v6  ;;  %v4376_v27 = vpack.c.bf16 %v2368_v18, %v2356_v58  ;;  %4375 = vmatprep.subr.bf16.mxu0 %v4374_v5  ;;  %v7878_v6 = vld [vmem:[#allocation34_spill] sm:$0xff]  ;;  %v7885_v5 = vld [vmem:[#allocation68_spill] sm:$0xff] }
 0x19f   : > { %v3223_v46 = vand.u32 4294901760, %v3222_v40  ;;  %v7875_v61 = vand.u32 4294901760, %v6282_v37  ;;  %v7877_v43 = vand.u32 4294901760, %v7876_v35  ;;  %v3229_v17 = vand.u32 4294901760, %v3228_v13  ;;  %v7879_v58 = vld [vmem:[#allocation38_spill] sm:$0xff]  ;;  %v7881_v40 = vld [vmem:[#allocation45_spill] sm:$0xff] }
 0x1a0   : > { %v3241_v34 = vand.u32 4294901760, %v3240_v50  ;;  %v2380_v30 = vand.u32 4294901760, %v2379_v2  ;;  %v2392_v22 = vand.u32 4294901760, %v2391_v0  ;;  %v4378_v9 = vpack.c.bf16 %v2386_v59, %v2374_v31  ;;  %4565 = vmatpush1.bf16.msra.mxu1 %v4564_v8  ;;  %4377 = vmatpush1.bf16.msra.mxu0 %v4376_v27  ;;  %v7882_v50 = vld [vmem:[#allocation48_spill] sm:$0xff]  ;;  %v7883_v2 = vld [vmem:[#allocation49_spill] sm:$0xff]  ;;  %v7884_v0 = vld [vmem:[#allocation67_spill] sm:$0xff] }
 0x1a1   : > { %v3234_v10 = vsub.f32 %v6282_v37, %v7875_v61  ;;  %v3246_v57 = vsub.f32 %v7876_v35, %v7877_v43  ;;  %v4568_v14 = vpack.c.bf16 %v3223_v46, %v3211_v53  ;;  %4567 = vmatprep.subr.bf16.mxu1 %v4566_v55  ;;  %v4382_v18 = vpack.c.bf16 %v7879_v58, %v7878_v6  ;;  %v7886_v59 = vld [vmem:[#allocation77_spill] sm:$0xff]  ;;  %v7887_v8 = vld [vmem:[#allocation52_spill] sm:$0xff] }
 0x1a2   : > { %v4570_v25 = vpack.c.bf16 %v3241_v34, %v3229_v17  ;;  %v4380_v20 = vpack.c.bf16 %v2392_v22, %v2380_v30  ;;  %4379 = vmatprep.subr.bf16.mxu0 %v4378_v9  ;;  %v4574_v13 = vpack.c.bf16 %v7881_v40, %v7880_v29  ;;  %v4384_v19 = vpack.c.bf16 %v7883_v2, %v7882_v50  ;;  %v7888_v55 = vld [vmem:[#allocation61_spill] sm:$0xff]  ;;  %v7889_v27 = vld [vmem:[#allocation72_spill] sm:$0xff]  ;;  %v7893_v17 = vld [vmem:[#allocation22_spill] sm:$0xff] }
 0x1a3   : > { %v3235_v12 = vand.u32 4294901760, %v3234_v10  ;;  %v3247_v49 = vand.u32 4294901760, %v3246_v57  ;;  %v4386_v31 = vpack.c.bf16 %v7885_v5, %v7884_v0  ;;  %v4576_v53 = vpack.c.bf16 %v7888_v55, %v7887_v8  ;;  %v7890_v46 = vld [vmem:[#allocation73_spill] sm:$0xff]  ;;  %v7891_v10 = vld [vmem:[#allocation75_spill] sm:$0xff]  ;;  %v7892_v43 = vld [vmem:[#allocation12_spill] sm:$0xff] }
 0x1a4   : > { %4569 = vmatpush1.bf16.msra.mxu1 %v4568_v14  ;;  %4381 = vmatpush1.bf16.msra.mxu0 %v4380_v20  ;;  %v4578_v61 = vpack.c.bf16 %v7890_v46, %v7889_v27  ;;  %v4388_v57 = vpack.c.bf16 %v7892_v43, %v7891_v10  ;;  %v7894_v34 = vld [vmem:[#allocation23_spill] sm:$0xff]  ;;  %v7895_v22 = vld [vmem:[#allocation18_spill] sm:$0xff]  ;;  %v7896_v9 = vld [vmem:[#allocation21_spill] sm:$0xff] }
 0x1a5   : > { %v4572_v45 = vpack.c.bf16 %v3247_v49, %v3235_v12  ;;  %4571 = vmatprep.subr.bf16.mxu1 %v4570_v25  ;;  %4383 = vmatprep.subr.bf16.mxu0 %v4382_v18  ;;  %v4390_v30 = vpack.c.bf16 %v7894_v34, %v7893_v17  ;;  %v4580_v14 = vpack.c.bf16 %v7896_v9, %v7895_v22  ;;  %v7897_v12 = vld [vmem:[#allocation24_spill] sm:$0xff]  ;;  %v7898_v49 = vld [vmem:[#allocation26_spill] sm:$0xff]  ;;  %v7899_v20 = vld [vmem:[#allocation27_spill] sm:$0xff] }
 0x1a6   : > { %v4582_v25 = vpack.c.bf16 %v7898_v49, %v7897_v12  ;;  %v7900_v18 = vld [vmem:[#allocation28_spill] sm:$0xff]  ;;  %v7906_v22 = vld [vmem:[#allocation51_spill] sm:$0xff]  ;;  %v7908_v17 = vld [vmem:[#allocation13_spill] sm:$0xff] }
 0x1a7   : > { %2428 = vmatmul.mubr.f32.vlgmr.msra.gmra.mrb[2].mxu0 %v7886_v59  ;;  %v7905_v9 = vld [vmem:[#allocation44_spill] sm:$0xff] }
 0x1a8   : > { %4573 = vmatpush1.bf16.msra.mxu1 %v4572_v45  ;;  %4385 = vmatpush1.bf16.msra.mxu0 %v4384_v19  ;;  %v4392_v45 = vpack.c.bf16 %v7900_v18, %v7899_v20  ;;  %v7902_v19 = vld [vmem:[#allocation41_spill] sm:$0xff]  ;;  %v4398_v18 = vpack.c.bf16 %v7828_v48, %v7816_v36 }
 0x1a9   : > { %4575 = vmatprep.subr.bf16.mxu1 %v4574_v13  ;;  %4387 = vmatprep.subr.bf16.mxu0 %v4386_v31  ;;  %v7901_v13 = vld [vmem:[#allocation39_spill] sm:$0xff] }
 0x1aa   : > { %2562 = vmatprep.mubr.f32.mxu0 %v7459_v7  ;;  %v4394_v31 = vpack.c.bf16 %v7902_v19, %v7901_v13 }
 0x1ab   : > { %3283 = vmatmul.mubr.f32.vlgmr.msra.gmra.mrb[2].mxu1 %v7886_v59  ;;  %v7903_v59 = vld [vmem:[#allocation31_spill] sm:$0xff] }
 0x1ac   : > { %4577 = vmatpush1.bf16.msra.mxu1 %v4576_v53  ;;  %3417 = vmatprep.mubr.f32.mxu1 %v7459_v7  ;;  %v7904_v53 = vld [vmem:[#allocation35_spill] sm:$0xff] }
 0x1ad   : > { %4579 = vmatprep.subr.bf16.mxu1 %v4578_v61  ;;  %4389 = vmatpush1.bf16.msra.mxu0 %v4388_v57  ;;  %v4584_v34 = vpack.c.bf16 %v7904_v53, %v7903_v59  ;;  %v4586_v61 = vpack.c.bf16 %v7906_v22, %v7905_v9  ;;  %v7907_v57 = vld [vmem:[#allocation59_spill] sm:$0xff] }
 0x1ae   : > { %4391 = vmatprep.subr.bf16.mxu0 %v4390_v30  ;;  %v4396_v43 = vpack.c.bf16 %v7908_v17, %v7907_v57  ;;  %v7909_v30 = vld [vmem:[#allocation40_spill] sm:$0xff] }
 0x1af   : > { %v4588_v19 = vpack.c.bf16 %v7796_v23, %v7909_v30 }
 0x1b0   : > { %4581 = vmatpush1.bf16.msra.mxu1 %v4580_v14  ;;  %v4590_v14 = vpack.c.bf16 %v6138_v44, %v6135_v52  ;;  %v4406_v52 = vpack.c.bf16 %v7860_v60, %v7858_v3  ;;  %v7910_v44 = vld [vmem:[#allocation87_spill] sm:$0xff]  ;;  %v7924_v3 = vld [vmem:[#allocation29_spill] sm:$0xff]  ;;  %v7925_v60 = vld [vmem:[#allocation32_spill] sm:$0xff] }
 0x1b1   : > { %4583 = vmatprep.subr.bf16.mxu1 %v4582_v25  ;;  %4393 = vmatpush1.bf16.msra.mxu0 %v4392_v45  ;;  %v4400_v25 = vpack.c.bf16 %v6144_v38, %v6140_v63  ;;  %v4402_v45 = vpack.c.bf16 %v7759_v51, %v7758_v11  ;;  %v7911_v63 = vld [vmem:[#allocation88_spill] sm:$0xff]  ;;  %v7912_v38 = vld [vmem:[#allocation93_spill] sm:$0xff]  ;;  %v4412_v11 = vpack.c.bf16 %v6274_v41, %v6260_v54  ;;  %v7919_v54 = vld [vmem:[#allocation70_spill] sm:$0xff] }
 0x1b2   : > { %4395 = vmatprep.subr.bf16.mxu0 %v4394_v31  ;;  %v4592_v31 = vpack.c.bf16 %v6151_v21, %v6149_v15  ;;  %v4596_v51 = vpack.c.bf16 %v7911_v63, %v7910_v44  ;;  %v4598_v15 = vpack.c.bf16 %v7780_v32, %v7912_v38  ;;  %v4408_v21 = vpack.c.bf16 %v7865_v4, %v7781_v26  ;;  %v7920_v41 = vld [vmem:[#allocation76_spill] sm:$0xff]  ;;  %v7926_v4 = vld [vmem:[#allocation30_spill] sm:$0xff] }
 0x1b3   : > { %v4604_v26 = vpack.c.bf16 %v7876_v35, %v6282_v37  ;;  %v7921_v37 = vld [vmem:[#allocation20_spill] sm:$0xff]  ;;  %v7927_v35 = vld [vmem:[#allocation47_spill] sm:$0xff]  ;;  %v7938_v44 = vld [vmem:[#allocation86_spill] sm:$0xff] }
 0x1b4   : > { %4585 = vmatpush1.bf16.msra.mxu1 %v4584_v34  ;;  %v4594_v34 = vpack.c.bf16 %v7760_v16, %v6164_v56  ;;  %v4410_v16 = vpack.c.bf16 %v6240_v33, %v7804_v39  ;;  %v4600_v56 = vpack.c.bf16 %v7784_v24, %v7783_v1  ;;  %v7913_v39 = vld [vmem:[#allocation33_spill] sm:$0xff]  ;;  %v7914_v33 = vld [vmem:[#allocation78_spill] sm:$0xff]  ;;  %v7922_v32 = vld [vmem:[#allocation16_spill] sm:$0xff] }
 0x1b5   : > { %4587 = vmatprep.subr.bf16.mxu1 %v4586_v61  ;;  %4397 = vmatpush1.bf16.msra.mxu0 %v4396_v43  ;;  %v4404_v43 = vpack.c.bf16 %v7852_v28, %v7850_v42  ;;  %v4602_v42 = vpack.c.bf16 %v6246_v62, %v6244_v47  ;;  %v7915_v1 = vld [vmem:[#allocation42_spill] sm:$0xff]  ;;  %v7923_v28 = vld [vmem:[#allocation25_spill] sm:$0xff]  ;;  %v7939_v63 = vld [vmem:[#allocation92_spill] sm:$0xff] }
 0x1b6   : > { %4399 = vmatprep.subr.bf16.mxu0 %v4398_v18  ;;  %v7916_v24 = vld [vmem:[#allocation46_spill] sm:$0xff]  ;;  %v7928_v18 = vld [vmem:[#allocation53_spill] sm:$0xff]  ;;  %v7941_v38 = vld [vmem:[#allocation56_spill] sm:$0xff] }
 0x1b7   : > { %v7917_v62 = vld [vmem:[#allocation62_spill] sm:$0xff] }
 0x1b8   : > { %4589 = vmatpush1.bf16.msra.mxu1 %v4588_v19  ;;  %v7918_v47 = vld [vmem:[#allocation50_spill] sm:$0xff] }
 0x1b9   : > { %4591 = vmatprep.subr.bf16.mxu1 %v4590_v14  ;;  %4401 = vmatpush1.bf16.msra.mxu0 %v4400_v25  ;;  %v7929_v19 = vld [vmem:[#allocation54_spill] sm:$0xff]  ;;  %v7931_v14 = vld [vmem:[#allocation15_spill] sm:$0xff]  ;;  %v7932_v25 = vld [vmem:[#allocation60_spill] sm:$0xff] }
 0x1ba   : > { %4403 = vmatprep.subr.bf16.mxu0 %v4402_v45  ;;  %v7930_v61 = vld [vmem:[#allocation14_spill] sm:$0xff]  ;;  %v7933_v45 = vld [vmem:[#allocation19_spill] sm:$0xff] }
 0x1bc   : > { %4593 = vmatpush1.bf16.msra.mxu1 %v4592_v31  ;;  %v7934_v31 = vld [vmem:[#allocation17_spill] sm:$0xff] }
 0x1bd   : > { %4595 = vmatprep.subr.bf16.mxu1 %v4594_v34  ;;  %4405 = vmatpush1.bf16.msra.mxu0 %v4404_v43  ;;  %v7935_v34 = vld [vmem:[#allocation81_spill] sm:$0xff]  ;;  %v7936_v43 = vld [vmem:[#allocation83_spill] sm:$0xff] }
 0x1be   : > { %4407 = vmatprep.subr.bf16.mxu0 %v4406_v52  ;;  %v7937_v52 = vld [vmem:[#allocation89_spill] sm:$0xff] }
 0x1c0   : > { %4597 = vmatpush1.bf16.msra.mxu1 %v4596_v51  ;;  %v7940_v51 = vld [vmem:[#allocation95_spill] sm:$0xff] }
 0x1c1   : > { %4599 = vmatprep.subr.bf16.mxu1 %v4598_v15  ;;  %4409 = vmatpush1.bf16.msra.mxu0 %v4408_v21  ;;  %v7942_v15 = vand.u32 4294901760, %v7878_v6  ;;  %v7943_v21 = vand.u32 4294901760, %v7879_v58  ;;  %v7951_v6 = vand.u32 4294901760, %v7884_v0  ;;  %v7952_v58 = vand.u32 4294901760, %v7885_v5  ;;  %v7960_v5 = vld [vmem:[#allocation12_spill] sm:$0xff] }
 0x1c2   : > { %4411 = vmatprep.subr.bf16.mxu0 %v4410_v16  ;;  %v7959_v0 = vand.u32 4294901760, %v7891_v10  ;;  %v7970_v10 = vand.u32 4294901760, %v7897_v12 }
 0x1c3   : > { %v4446_v16 = vpack.c.bf16 %v7943_v21, %v7942_v15  ;;  %v4450_v15 = vpack.c.bf16 %v7952_v58, %v7951_v6  ;;  %v7953_v21 = vld [vmem:[#allocation66_spill] sm:$0xff]  ;;  %v7964_v58 = vld [vmem:[#allocation23_spill] sm:$0xff] }
 0x1c4   : > { %4601 = vmatpush1.bf16.msra.mxu1 %v4600_v56  ;;  %v7944_v56 = vld [vmem:[#allocation98_spill] sm:$0xff] }
 0x1c5   : > { %4603 = vmatprep.subr.bf16.mxu1 %v4602_v42  ;;  %4413 = vmatpush1.bf16.msra.mxu0 %v4412_v11  ;;  %v7945_v42 = vld [vmem:[#allocation63_spill] sm:$0xff]  ;;  %v7946_v11 = vld [vmem:[#allocation64_spill] sm:$0xff] }
 0x1c6   : > { %4415 = vmatprep.subr.bf16.mxu0 %v7913_v39 }
 0x1c8   : > { %4605 = vmatpush1.bf16.msra.mxu1 %v4604_v26  ;;  %2565 = vmatmul.mubr.f32.vlgmr.msra.gmra.mrb[2].mxu0 %v7914_v33  ;;  %v7947_v26 = vand.u32 4294901760, %v7880_v29  ;;  %v7955_v29 = vand.u32 4294901760, %v7887_v8  ;;  %v7965_v8 = vand.u32 4294901760, %v7964_v58  ;;  %v7984_v58 = vand.u32 4294901760, %v7816_v36  ;;  %v7991_v36 = vld [vmem:[#allocation74_spill] sm:$0xff] }
 0x1c9   : > { %4607 = vmatprep.subr.bf16.mxu1 %v7915_v1  ;;  %4417 = vmatpush1.bf16.msra.mxu0 %v7916_v24 }
 0x1ca   : > { %4419 = vmatprep.subr.bf16.mxu0 %v7917_v62  ;;  %2667 = vmatprep.mubr.f32.mxu0 %v7459_v7 }
 0x1cb   : > { %3420 = vmatmul.mubr.f32.vlgmr.msra.gmra.mrb[2].mxu1 %v7914_v33  ;;  %v7948_v33 = vand.u32 4294901760, %v7881_v40  ;;  %v7956_v40 = vand.u32 4294901760, %v7888_v55  ;;  %v7966_v55 = vld [vmem:[#allocation18_spill] sm:$0xff] }
 0x1cc   : > { %4609 = vmatpush1.bf16.msra.mxu1 %v7918_v47  ;;  %3522 = vmatprep.mubr.f32.mxu1 %v7459_v7 }
 0x1cd   : > { %4611 = vmatprep.subr.bf16.mxu1 %v7919_v54  ;;  %4421 = vmatpush1.bf16.msra.mxu0 %v7920_v41 }
 0x1ce   : > { %4423 = vmatprep.subr.bf16.mxu0 %v7921_v37 }
 0x1d0   : > { %4613 = vmatpush1.bf16.msra.mxu1 %v7922_v32 }
 0x1d1   : > { %4615 = vmatprep.subr.bf16.mxu1 %v7923_v28  ;;  %4425 = vmatpush1.bf16.msra.mxu0 %v7924_v3 }
 0x1d2   : > { %4427 = vmatprep.subr.bf16.mxu0 %v7925_v60 }
 0x1d4   : > { %4617 = vmatpush1.bf16.msra.mxu1 %v7926_v4 }
 0x1d5   : > { %4619 = vmatprep.subr.bf16.mxu1 %v7927_v35  ;;  %4429 = vmatpush1.bf16.msra.mxu0 %v7928_v18 }
 0x1d6   : > { %4431 = vmatprep.subr.bf16.mxu0 %v7929_v19 }
 0x1d8   : > { %4621 = vmatpush1.bf16.msra.mxu1 %v7930_v61 }
 0x1d9   : > { %4623 = vmatprep.subr.bf16.mxu1 %v7931_v14  ;;  %4433 = vmatpush1.bf16.msra.mxu0 %v7932_v25 }
 0x1da   : > { %4435 = vmatprep.subr.bf16.mxu0 %v7933_v45 }
 0x1dc   : > { %4625 = vmatpush1.bf16.msra.mxu1 %v7934_v31 }
 0x1dd   : > { %4627 = vmatprep.subr.bf16.mxu1 %v7935_v34  ;;  %4437 = vmatpush1.bf16.msra.mxu0 %v7936_v43 }
 0x1de   : > { %4439 = vmatprep.subr.bf16.mxu0 %v7937_v52 }
 0x1e0   : > { %4629 = vmatpush1.bf16.msra.mxu1 %v7938_v44 }
 0x1e1   : > { %4631 = vmatprep.subr.bf16.mxu1 %v7939_v63  ;;  %4441 = vmatpush1.bf16.msra.mxu0 %v7940_v51  ;;  %v4638_v63 = vpack.c.bf16 %v7948_v33, %v7947_v26  ;;  %v7949_v51 = vand.u32 4294901760, %v7882_v50  ;;  %v4640_v26 = vpack.c.bf16 %v7956_v40, %v7955_v29  ;;  %v7957_v50 = vand.u32 4294901760, %v7889_v27  ;;  %v7962_v33 = vld [vmem:[#allocation22_spill] sm:$0xff] }
 0x1e2   : > { %4443 = vmatprep.subr.bf16.mxu0 %v7941_v38  ;;  %v7950_v38 = vand.u32 4294901760, %v7883_v2  ;;  %v7958_v2 = vand.u32 4294901760, %v7890_v46  ;;  %v7963_v6 = vand.u32 4294901760, %v7962_v33  ;;  %v7967_v27 = vand.u32 4294901760, %v7966_v55  ;;  %v7968_v46 = vld [vmem:[#allocation21_spill] sm:$0xff] }
 0x1e3   : > { %v7972_v40 = vand.u32 4294901760, %v7899_v20  ;;  %v7981_v20 = vand.u32 4294901760, %v7906_v22  ;;  %v7987_v55 = vand.u32 4294901760, %v7796_v23  ;;  %v7988_v22 = vld [vmem:[#allocation69_spill] sm:$0xff]  ;;  %v7995_v23 = vld [vmem:[#allocation102_spill] sm:$0xff] }
 0x1e4   : > { %4633 = vmatpush1.bf16.msra.mxu1 %v7944_v56  ;;  %v4448_v44 = vpack.c.bf16 %v7950_v38, %v7949_v51  ;;  %v4642_v51 = vpack.c.bf16 %v7958_v2, %v7957_v50  ;;  %v7961_v38 = vand.u32 4294901760, %v7960_v5  ;;  %v7973_v50 = vld [vmem:[#allocation28_spill] sm:$0xff] }
 0x1e5   : > { %4635 = vmatprep.subr.bf16.mxu1 %v7945_v42  ;;  %4445 = vmatpush1.bf16.msra.mxu0 %v7946_v11  ;;  %v7954_v42 = vld [vmem:[#allocation79_spill] sm:$0xff]  ;;  %v7974_v2 = vand.u32 4294901760, %v7973_v50  ;;  %v8003_v50 = vld [vmem:[#allocation77_spill] sm:$0xff] }
 0x1e6   : > { %4447 = vmatprep.subr.bf16.mxu0 %v4446_v16  ;;  %v4452_v16 = vpack.c.bf16 %v7961_v38, %v7959_v0  ;;  %v7976_v0 = vld [vmem:[#allocation41_spill] sm:$0xff] }
 0x1e7   : > { %v7977_v5 = vand.u32 4294901760, %v7976_v0 }
 0x1e8   : > { %4637 = vmatpush1.bf16.msra.mxu1 %v7953_v21  ;;  %2671 = vmatmul.mubr.f32.vlgmr.msra.gmra.mrb[2].mxu0 %v7954_v42  ;;  %v4454_v21 = vpack.c.bf16 %v7965_v8, %v7963_v6 }
 0x1e9   : > { %4639 = vmatprep.subr.bf16.mxu1 %v4638_v63  ;;  %4449 = vmatpush1.bf16.msra.mxu0 %v4448_v44  ;;  %v7969_v44 = vand.u32 4294901760, %v7968_v46  ;;  %v7996_v46 = vld [vmem:[#allocation96_spill] sm:$0xff] }
 0x1ea   : > { %4451 = vmatprep.subr.bf16.mxu0 %v4450_v15  ;;  %2837 = vmatprep.mubr.f32.mxu0 %v7459_v7  ;;  %v7971_v15 = vand.u32 4294901760, %v7898_v49  ;;  %v7980_v49 = vand.u32 4294901760, %v7905_v9 }
 0x1eb   : > { %3526 = vmatmul.mubr.f32.vlgmr.msra.gmra.mrb[2].mxu1 %v7954_v42  ;;  %v4644_v63 = vpack.c.bf16 %v7969_v44, %v7967_v27  ;;  %v4456_v42 = vpack.c.bf16 %v7974_v2, %v7972_v40  ;;  %v7993_v27 = vld [vmem:[#allocation82_spill] sm:$0xff]  ;;  %v7997_v44 = vld [vmem:[#allocation99_spill] sm:$0xff] }
 0x1ec   : > { %4641 = vmatpush1.bf16.msra.mxu1 %v4640_v26  ;;  %3692 = vmatprep.mubr.f32.mxu1 %v7459_v7  ;;  %v4646_v29 = vpack.c.bf16 %v7971_v15, %v7970_v10  ;;  %v7975_v26 = vand.u32 4294901760, %v7901_v13  ;;  %v4650_v33 = vpack.c.bf16 %v7981_v20, %v7980_v49  ;;  %v7983_v13 = vand.u32 4294901760, %v7908_v17  ;;  %v7989_v17 = vld [vmem:[#allocation71_spill] sm:$0xff]  ;;  %v7999_v10 = vld [vmem:[#allocation100_spill] sm:$0xff]  ;;  %v8000_v15 = vld [vmem:[#allocation101_spill] sm:$0xff] }
 0x1ed   : > { %4643 = vmatprep.subr.bf16.mxu1 %v4642_v51  ;;  %4453 = vmatpush1.bf16.msra.mxu0 %v4452_v16  ;;  %v7978_v51 = vand.u32 4294901760, %v7903_v59  ;;  %v7979_v16 = vand.u32 4294901760, %v7904_v53  ;;  %v7985_v59 = vand.u32 4294901760, %v7828_v48  ;;  %v7986_v53 = vand.u32 4294901760, %v7909_v30  ;;  %v7992_v48 = vld [vmem:[#allocation36_spill] sm:$0xff]  ;;  %v7994_v30 = vld [vmem:[#allocation94_spill] sm:$0xff] }
 0x1ee   : > { %4455 = vmatprep.subr.bf16.mxu0 %v4454_v21  ;;  %v4458_v38 = vpack.c.bf16 %v7977_v5, %v7975_v26  ;;  %v7982_v21 = vand.u32 4294901760, %v7907_v57  ;;  %v7990_v57 = vld [vmem:[#allocation37_spill] sm:$0xff]  ;;  %v8002_v40 = vld [vmem:[#allocation103_spill] sm:$0xff] }
 0x1ef   : > { %v4648_v12 = vpack.c.bf16 %v7979_v16, %v7978_v51  ;;  %v4462_v8 = vpack.c.bf16 %v7985_v59, %v7984_v58  ;;  %v4652_v9 = vpack.c.bf16 %v7987_v55, %v7986_v53 }
 0x1f0   : > { %4645 = vmatpush1.bf16.msra.mxu1 %v4644_v63  ;;  %v4460_v6 = vpack.c.bf16 %v7983_v13, %v7982_v21  ;;  %v7998_v63 = vld [vmem:[#allocation55_spill] sm:$0xff] }
 0x1f1   : > { %4647 = vmatprep.subr.bf16.mxu1 %v4646_v29  ;;  %4457 = vmatpush1.bf16.msra.mxu0 %v4456_v42  ;;  %v8001_v29 = vld [vmem:[#allocation57_spill] sm:$0xff] }
 0x1f2   : > { %4459 = vmatprep.subr.bf16.mxu0 %v4458_v38 }
 0x1f4   : > { %4649 = vmatpush1.bf16.msra.mxu1 %v4648_v12 }
 0x1f5   : > { %4651 = vmatprep.subr.bf16.mxu1 %v4650_v33  ;;  %4461 = vmatpush1.bf16.msra.mxu0 %v4460_v6 }
 0x1f6   : > { %4463 = vmatprep.subr.bf16.mxu0 %v4462_v8 }
 0x1f8   : > { %4653 = vmatpush1.bf16.msra.mxu1 %v4652_v9 }
 0x1f9   : > { %4655 = vmatprep.subr.bf16.mxu1 %v7988_v22  ;;  %4465 = vmatpush1.bf16.msra.mxu0 %v7989_v17 }
 0x1fa   : > { %4467 = vmatprep.subr.bf16.mxu0 %v7990_v57 }
 0x1fc   : > { %4657 = vmatpush1.bf16.msra.mxu1 %v7991_v36 }
 0x1fd   : > { %4659 = vmatprep.subr.bf16.mxu1 %v7992_v48  ;;  %4469 = vmatpush1.bf16.msra.mxu0 %v7993_v27 }
 0x1fe   : > { %4471 = vmatprep.subr.bf16.mxu0 %v7994_v30 }
 0x200   : > { %4661 = vmatpush1.bf16.msra.mxu1 %v7995_v23 }
 0x201   : > { %4663 = vmatprep.subr.bf16.mxu1 %v7996_v46  ;;  %4473 = vmatpush1.bf16.msra.mxu0 %v7997_v44 }
 0x202   : > { %4475 = vmatprep.subr.bf16.mxu0 %v7998_v63 }
 0x204   : > { %4665 = vmatpush1.bf16.msra.mxu1 %v7999_v10 }
 0x205   : > { %4667 = vmatprep.subr.bf16.mxu1 %v8000_v15  ;;  %4477 = vmatpush1.bf16.msra.mxu0 %v8001_v29 }
 0x206   : > { %4479 = vmatprep.subr.bf16.mxu0 %v7913_v39  ;;  %v8005_v39 = vld [vmem:[#allocation92_spill] sm:$0xff] }
 0x208   : > { %4669 = vmatpush1.bf16.msra.mxu1 %v8002_v40  ;;  %2839 = vmatmul.mubr.f32.vlgmr.msra.gmra.mrb[2].mxu0 %v8003_v50 }
 0x209   : > { %4671 = vmatprep.subr.bf16.mxu1 %v7915_v1  ;;  %4481 = vmatpush1.bf16.msra.mxu0 %v7916_v24  ;;  %v8006_v1 = vld [vmem:[#allocation95_spill] sm:$0xff]  ;;  %v8007_v24 = vld [vmem:[#allocation56_spill] sm:$0xff] }
 0x20a   : > { %4483 = vmatprep.subr.bf16.mxu0 %v7917_v62  ;;  %2941 = vmatprep.mubr.f32.mxu0 %v7459_v7  ;;  %v8008_v62 = vld [vmem:[#allocation63_spill] sm:$0xff] }
 0x20b   : > { %3694 = vmatmul.mubr.f32.vlgmr.msra.gmra.mrb[2].mxu1 %v8003_v50 }
 0x20c   : > { %4673 = vmatpush1.bf16.msra.mxu1 %v7918_v47  ;;  %3796 = vmatprep.mubr.f32.mxu1 %v7459_v7  ;;  %v8004_v7 = vld [vmem:[#allocation86_spill] sm:$0xff] }
 0x20d   : > { %4675 = vmatprep.subr.bf16.mxu1 %v7919_v54  ;;  %4485 = vmatpush1.bf16.msra.mxu0 %v7920_v41  ;;  %v8009_v47 = vld [vmem:[#allocation66_spill] sm:$0xff]  ;;  %v344_v54 = vlaneseq }
 0x20e   : > { %4487 = vmatprep.subr.bf16.mxu0 %v7921_v37 }
 0x20f   : > { %v345_v41 = vshrl.u32 %v344_v54, 7 }
 0x210   : > { %4677 = vmatpush1.bf16.msra.mxu1 %v7922_v32  ;;  %v342_v32 = vld [vmem:[#allocation7] sm:$0xff] }
 0x211   : > { %4679 = vmatprep.subr.bf16.mxu1 %v7923_v28  ;;  %4489 = vmatpush1.bf16.msra.mxu0 %v7924_v3  ;;  %v346_v37 = vsub.s32 0, %v345_v41  ;;  %v350_v28 = vsub.s32 1, %v345_v41  ;;  %v354_v3 = vsub.s32 2, %v345_v41  ;;  %v370_v2 = vsub.s32 6, %v345_v41 }
 0x212   : > { %4491 = vmatprep.subr.bf16.mxu0 %v7925_v60  ;;  %v374_v26 = vsub.s32 7, %v345_v41 }
 0x213   : > { %v347_v60 = vrot.slane %v342_v32, %v346_v37  ;;  %v371_v38 = vrot.slane %v342_v32, %v370_v2 }
 0x214   : > { %4681 = vmatpush1.bf16.msra.mxu1 %v7926_v4  ;;  %v358_v4 = vsub.s32 3, %v345_v41  ;;  %v375_v12 = vrot.slane %v342_v32, %v374_v26 }
 0x215   : > { %4683 = vmatprep.subr.bf16.mxu1 %v7927_v35  ;;  %4493 = vmatpush1.bf16.msra.mxu0 %v7928_v18  ;;  %v351_v35 = vrot.slane %v342_v32, %v350_v28 }
 0x216   : > { %4495 = vmatprep.subr.bf16.mxu0 %v7929_v19  ;;  %v355_v19 = vrot.slane %v342_v32, %v354_v3 }
 0x218   : > { %4685 = vmatpush1.bf16.msra.mxu1 %v7930_v61 }
 0x219   : > { %4687 = vmatprep.subr.bf16.mxu1 %v7931_v14  ;;  %4497 = vmatpush1.bf16.msra.mxu0 %v7932_v25  ;;  %v359_v25 = vrot.slane %v342_v32, %v358_v4 }
 0x21a   : > { %4499 = vmatprep.subr.bf16.mxu0 %v7933_v45 }
 0x21c   : > { %4689 = vmatpush1.bf16.msra.mxu1 %v7934_v31 }
 0x21d   : > { %4691 = vmatprep.subr.bf16.mxu1 %v7935_v34  ;;  %4501 = vmatpush1.bf16.msra.mxu0 %v7936_v43 }
 0x21e   : > { %4503 = vmatprep.subr.bf16.mxu0 %v7937_v52 }
 0x220   : > { %4693 = vmatpush1.bf16.msra.mxu1 %v8004_v7 }
 0x221   : > { %4695 = vmatprep.subr.bf16.mxu1 %v8005_v39  ;;  %4505 = vmatpush1.bf16.msra.mxu0 %v8006_v1 }
 0x222   : > { %4507 = vmatprep.subr.bf16.mxu0 %v8007_v24 }
 0x224   : > { %4697 = vmatpush1.bf16.msra.mxu1 %v7944_v56  ;;  %v362_v56 = vsub.s32 4, %v345_v41 }
 0x225   : > { %4699 = vmatprep.subr.bf16.mxu1 %v8008_v62  ;;  %4509 = vmatpush1.bf16.msra.mxu0 %v7946_v11  ;;  %v366_v11 = vsub.s32 5, %v345_v41 }
 0x226   : > { %v363_v42 = vrot.slane %v342_v32, %v362_v56 }
 0x227   : > { %v367_v0 = vrot.slane %v342_v32, %v366_v11 }
 0x228   : > { %4701 = vmatpush1.bf16.msra.mxu1 %v8009_v47  ;;  %2943 = vmatmul.mubr.f32.vlgmr.msra.gmra.mrb[2].mxu0 %v8003_v50 }
 0x22b   : > { %3798 = vmatmul.mubr.f32.vlgmr.msra.gmra.mrb[2].mxu1 %v8003_v50 }
 0x232   : > { %v1234_v18 = vpop.f32.mrb[0].mxu0 }
 0x233   : > { %v4702_v61 = vadd.f32 %v1234_v18, %v347_v60  ;;  %v1236_v14 = vpop.f32.mrb[1].mxu0 }
 0x234   : > { %v4703_v45 = vadd.f32 %v1236_v14, %v351_v35  ;;  %v2089_v31 = vpop.f32.mrb[0].mxu1 }
 0x235   : > { %3804 = vst [vmem:[%s6955_s20] sm:$0xff] %v4702_v61  ;;  %v4704_v34 = vadd.f32 %v2089_v31, %v355_v19  ;;  %v2091_v43 = vpop.f32.mrb[1].mxu1 }
 0x236   : > { %3805 = vst [vmem:[%s6955_s20 + $0x8] sm:$0xff] %v4703_v45  ;;  %v4705_v52 = vadd.f32 %v2091_v43, %v359_v25 }
 0x237   : > { %3806 = vst [vmem:[%s6955_s20 + $0x10] sm:$0xff] %v4704_v34 }
 0x238   : > { %3807 = vst [vmem:[%s6955_s20 + $0x18] sm:$0xff] %v4705_v52 }
 0x2fb   : > { %v2944_v5 = vpop.f32.mrb[2].mxu0 }
 0x2fc   : > { %v4706_v51 = vadd.f32 %v2944_v5, %v363_v42  ;;  %v2946_v16 = vpop.f32.mrb[3].mxu0 }
 0x2fd   : > { %v4707_v49 = vadd.f32 %v2946_v16, %v367_v0 }
 0x2fe   : > { %3808 = vst [vmem:[%s6955_s20 + $0x20] sm:$0xff] %v4706_v51  ;;  %v3799_v20 = vpop.f32.mrb[2].mxu1 }
 0x2ff   : > { %v4708_v33 = vadd.f32 %v3799_v20, %v371_v38  ;;  %3809 = vst [vmem:[%s6955_s20 + $0x28] sm:$0xff] %v4707_v49  ;;  %v3801_v21 = vpop.f32.mrb[3].mxu1 }
 0x300   : > { %v4709_v13 = vadd.f32 %v3801_v21, %v375_v12 }
 0x301   : > { %3810 = vst [vmem:[%s6955_s20 + $0x30] sm:$0xff] %v4708_v33 }
 0x302   : > { %3811 = vst [vmem:[%s6955_s20 + $0x38] sm:$0xff] %v4709_v13 }
 0x303   : > { %4919 = shalt.err (!%p4916_p2)
}
 0x304   : > { %s4920_s9 = scalar_lea.hbm %s6968_s29, 1024  ;;  %s4924_s11 = scalar_lea.hbm %s7017_s3, 2048 }
 0x305   : > { %p4921_p13 = scmp.ne.s32.totalorder %s6968_s29, %s4920_s9  ;;  %p4925_p4 = scmp.lt.u32.totalorder %s6968_s29, %s7017_s3 }
 0x306   : > { %p4926_p5 = scmp.lt.u32.totalorder %s4924_s11, %s4920_s9  ;;  %p4928_p11 = scmp.lt.u32.totalorder %s4920_s9, %s6968_s29 }
 0x307   : > { %p4922_p6 = pnand %p4921_p13, %p8010_p0 }
 0x308   : > { %p4927_p8 = por %p4926_p5, %p4925_p4 }
 0x309   : > { %p4923_p10 = pneg %p4922_p6 }
 0x30a   : > { %p4929_p1 = por %p4928_p11, %p4927_p8 }
 0x30c   : > { %p4930_p3 = pnand %p4929_p1, %p4923_p10 }
 0x30e   : > { %4933 = shalt.err (!%p4930_p3)
}
 0x30f   : > { %4760 = dma.vmem_to_hbm [thread:$0]  (%p8010_p0), %s6970_s24, 1024, %s6968_s29, %s3813_s16  }
 0x310 PF: > { %s3839_s22 = sand.u32 1, %s4964_s12   ;;  %p8011_p7 = scmp.ne.s32.totalorder %s7357_s19, 0 }
 0x311   : > { %p8012_p9 = scmp.ge.s32.totalorder %s4976_s15, 2  ;;  %s3840_s18 = scalar_lea.sflag [#allocation4], %s3839_s22 }
 0x313   : > { %p4774_p12 = pnand %p8012_p9, %p8011_p7 }
 0x315   : > { %4959 = dma.done.wait (!%p4774_p12), %s3840_s18, 1024  }
 0x316   : > { %4961 = vsyncadd (!%p4774_p12), %s3840_s18, 4294966272  ;;  %p17_p2 = scmp.ge.s32.totalorder %s5115_s4, 4   ;;  %s8013_s12 = smov %s4968_s13 }
 0x317   : > { %s8014_s13 = smov %s4972_s14  ;;  %s8015_s14 = smov %s5131_s7 }
 0x318   : > { %s8016_s15 = smov %s5115_s4  ;;  %19 = sbr.rel (!%p17_p2) target bundleno = 6 (0x6), region = 85 }
 0x31f   :  { %3845 = vsyncpa [#allocation3], 1 }
 0x320   :  { %3847 = vsyncpa [#allocation3 + $0x1], 1 }
 0x321   :  { %3848 = vsyncpa [#allocation6], 1 }
 0x322   :  { %3849 = vsyncpa [#allocation4], 1 }
 0x323   :  { %3851 = vsyncpa [#allocation4 + $0x1], 1 }

</bundles_post_ra>
